<compile_context>
chip_gen: v7x
topology: tpu7x:2x2x1
jax: 0.10.0
libtpu: 0.0.40
codegen_flags: <defaults>
</compile_context>

<pallas_src>
import jax
import jax.numpy as jnp
from jax import lax
from jax.experimental import pallas as pl
from jax.experimental.pallas import tpu as pltpu


_VMEM_LIMIT = 32 * 1024 * 1024  # safe on v5e/v6e (128 MiB) and v7x (64 MiB)


def _cparams(*sem):
    return pltpu.CompilerParams(dimension_semantics=sem,
                                vmem_limit_bytes=_VMEM_LIMIT)


# --------------------------------------------------------------------------
# Kernel 1: 2x2x2 max-pool, grid (N, D/2), reads the input directly.
# --------------------------------------------------------------------------
def _maxpool_kernel(x_ref, o_ref):
    # x_ref: (2, H2, 2, W2, 2*C)  -- (dd, h2, hh, w2, [ww, c])
    # o_ref: (H2, W2, C)
    C = o_ref.shape[-1]
    a = jnp.maximum(x_ref[0, :, 0], x_ref[1, :, 0])   # (H2, W2, 2C), hh = 0
    b = jnp.maximum(x_ref[0, :, 1], x_ref[1, :, 1])   # (H2, W2, 2C), hh = 1
    m = jnp.maximum(a, b)
    o_ref[...] = jnp.maximum(m[..., :C], m[..., C:])  # reduce the W-pair (lanes)


def _maxpool2x2x2(x):
    # x: (N, D, H, W, C) float32, even spatial dims.
    N, D, H, W, C = x.shape
    D2, H2, W2 = D // 2, H // 2, W // 2
    # Free contiguous reshape: split H -> (H2, 2), fold the W-pair into lanes.
    xr = x.reshape(N, D, H2, 2, W2, 2 * C)
    return pl.pallas_call(
        _maxpool_kernel,
        grid=(N, D2),
        in_specs=[pl.BlockSpec((None, 2, H2, 2, W2, 2 * C),
                               lambda n, d2: (n, d2, 0, 0, 0, 0))],
        out_specs=pl.BlockSpec((None, None, H2, W2, C),
                               lambda n, d2: (n, d2, 0, 0, 0)),
        out_shape=jax.ShapeDtypeStruct((N, D2, H2, W2, C), x.dtype),
        compiler_params=_cparams("parallel", "parallel"),
    )(xr)


# --------------------------------------------------------------------------
# Kernel 2: Conv3d(k=3, pad=1) + bias, plus per-tile BN partial statistics.
# Grid (N, D_out); the three depth taps arrive as three shifted plane blocks.
# --------------------------------------------------------------------------
def _conv_kernel(x0_ref, x1_ref, x2_ref, w_ref, b_ref, y_ref, st_ref):
    # x{0,1,2}_ref: (H+2, W+2, Cin) bf16 -- padded depth planes d, d+1, d+2
    # w_ref       : (27*Cin, CP)    bf16 -- rows ordered (kd, kh, kw, cin)
    # b_ref       : (1, CP)         f32
    # y_ref       : (H*W, CP)       f32  -- conv + bias (pre-BN), lane-dense
    # st_ref      : (2, CP)         f32  -- per-tile channel sum / sum-of-squares
    Hp, Wp, Cin = x0_ref.shape
    H, W = Hp - 2, Wp - 2
    Kp = 9 * Cin
    acc = jnp.zeros(y_ref.shape, jnp.float32)
    for kd, x_ref in enumerate((x0_ref, x1_ref, x2_ref)):
        p = x_ref[...]
        # im2col slab for this depth tap: (H*W, 9*Cin), one MXU matmul.
        cols = [p[kh:kh + H, kw:kw + W, :].reshape(H * W, Cin)
                for kh in range(3) for kw in range(3)]
        slab = jnp.concatenate(cols, axis=-1)
        acc = acc + jnp.dot(slab, w_ref[kd * Kp:(kd + 1) * Kp, :],
                            preferred_element_type=jnp.float32)
    acc = acc + b_ref[...]
    y_ref[...] = acc
    s = jnp.sum(acc, axis=0, keepdims=True)
    sq = jnp.sum(acc * acc, axis=0, keepdims=True)
    st_ref[...] = jnp.concatenate([s, sq], axis=0)


# --------------------------------------------------------------------------
# Kernel 3: BN normalize (precomputed scale/shift) + ReLU epilogue (f32 math).
# --------------------------------------------------------------------------
def _bn_relu_kernel(y_ref, scale_ref, shift_ref, o_ref):
    v = y_ref[...] * scale_ref[...] + shift_ref[...]
    o_ref[...] = jnp.maximum(v, 0.0).astype(o_ref.dtype)


def _conv3_bn_relu(x, w, b, gamma, beta, out_dtype):
    # x: (N, D, H, W, Cx);  w: (3, 3, 3, Cw, Cout) with Cw <= Cx (extra input
    # channels are zero padding and get zero weights).
    # Returns (N, D, H, W, CP) with CP = 128-padded channels; channels >= Cout
    # are exactly zero.
    N, D, H, W, Cx = x.shape
    Cout = w.shape[-1]
    CP = 128 * pl.cdiv(Cout, 128)
    HW = H * W
    M = N * D * HW

    # Weights: pad input channels to Cx, flatten taps, pad Cout -> CP, bf16.
    if w.shape[3] < Cx:
        w = jnp.pad(w, ((0, 0), (0, 0), (0, 0), (0, Cx - w.shape[3]), (0, 0)))
    w_p = jnp.pad(w.reshape(27 * Cx, Cout),
                  ((0, 0), (0, CP - Cout))).astype(jnp.bfloat16)
    b_p = jnp.pad(b, (0, CP - Cout)).astype(jnp.float32).reshape(1, CP)

    # One halo pad + bf16 cast of the activation.
    # TODO(synk): the halo could be fetched via index_map boundary masking
    # instead of this jnp.pad HBM round trip.
    xp = jnp.pad(x.astype(jnp.bfloat16),
                 ((0, 0), (1, 1), (1, 1), (1, 1), (0, 0)))

    def plane_spec(kd):
        return pl.BlockSpec((None, None, H + 2, W + 2, Cx),
                            lambda n, d, kd=kd: (n, d + kd, 0, 0, 0))

    y, stats = pl.pallas_call(
        _conv_kernel,
        grid=(N, D),
        in_specs=[plane_spec(0), plane_spec(1), plane_spec(2),
                  pl.BlockSpec((27 * Cx, CP), lambda n, d: (0, 0)),  # resident
                  pl.BlockSpec((1, CP), lambda n, d: (0, 0))],       # resident
        out_specs=[pl.BlockSpec((None, None, HW, CP), lambda n, d: (n, d, 0, 0)),
                   pl.BlockSpec((None, None, 2, CP), lambda n, d: (n, d, 0, 0))],
        out_shape=[jax.ShapeDtypeStruct((N, D, HW, CP), jnp.float32),
                   jax.ShapeDtypeStruct((N, D, 2, CP), jnp.float32)],
        compiler_params=_cparams("parallel", "parallel"),
    )(xp, xp, xp, w_p, b_p)

    # Global biased batch statistics from per-tile partial sums (tiny reduce).
    s = jnp.sum(stats[:, :, 0, :], axis=(0, 1))
    sq = jnp.sum(stats[:, :, 1, :], axis=(0, 1))
    mean = s / M
    var = jnp.maximum(sq / M - mean * mean, 0.0)
    inv = lax.rsqrt(var + 1e-5)
    gamma_p = jnp.pad(gamma, (0, CP - Cout)).astype(jnp.float32)
    beta_p = jnp.pad(beta, (0, CP - Cout)).astype(jnp.float32)
    scale = (gamma_p * inv).reshape(1, CP)
    shift = (beta_p - mean * gamma_p * inv).reshape(1, CP)

    out = pl.pallas_call(
        _bn_relu_kernel,
        grid=(N, D),
        in_specs=[pl.BlockSpec((None, None, HW, CP), lambda n, d: (n, d, 0, 0)),
                  pl.BlockSpec((1, CP), lambda n, d: (0, 0)),
                  pl.BlockSpec((1, CP), lambda n, d: (0, 0))],
        out_specs=pl.BlockSpec((None, None, HW, CP), lambda n, d: (n, d, 0, 0)),
        out_shape=jax.ShapeDtypeStruct((N, D, HW, CP), out_dtype),
        compiler_params=_cparams("parallel", "parallel"),
    )(y, scale, shift)
    return out.reshape(N, D, H, W, CP)


# --------------------------------------------------------------------------
# Down.forward
# --------------------------------------------------------------------------
def down_forward(x_ncdhw, p):
    x = jnp.transpose(x_ncdhw, (0, 2, 3, 4, 1))            # NCDHW -> NDHWC
    x = _maxpool2x2x2(x)
    # Intermediate stays lane-dense (128 ch, extras are zero) and bf16.
    x = _conv3_bn_relu(x, p["w1"], p["b1"], p["g1"], p["beta1"], jnp.bfloat16)
    x = _conv3_bn_relu(x, p["w2"], p["b2"], p["g2"], p["beta2"], jnp.float32)
    x = x[..., :p["w2"].shape[-1]]                          # strip lane padding
    return jnp.transpose(x, (0, 4, 1, 2, 3))                # NDHWC -> NCDHW


def init_params(key, in_ch, out_ch):
    mid = out_ch  # ConvBlock: mid_channels defaults to out_channels
    ks = jax.random.split(key, 8)
    f32 = jnp.float32
    return {
        "w1": 0.1 * jax.random.normal(ks[0], (3, 3, 3, in_ch, mid), f32),
        "b1": 0.1 * jax.random.normal(ks[1], (mid,), f32),
        "g1": 1.0 + 0.1 * jax.random.normal(ks[2], (mid,), f32),
        "beta1": 0.1 * jax.random.normal(ks[3], (mid,), f32),
        "w2": 0.1 * jax.random.normal(ks[4], (3, 3, 3, mid, out_ch), f32),
        "b2": 0.1 * jax.random.normal(ks[5], (out_ch,), f32),
        "g2": 1.0 + 0.1 * jax.random.normal(ks[6], (out_ch,), f32),
        "beta2": 0.1 * jax.random.normal(ks[7], (out_ch,), f32),
    }


# Pure-JAX f32 reference (correctness check only).
def _ref_forward(x_ncdhw, p):
    x = jnp.transpose(x_ncdhw, (0, 2, 3, 4, 1))
    x = lax.reduce_window(x, -jnp.inf, lax.max,
                          (1, 2, 2, 2, 1), (1, 2, 2, 2, 1), "VALID")

    def cbr(x, w, b, g, beta):
        y = lax.conv_general_dilated(
            x, w, (1, 1, 1), "SAME",
            dimension_numbers=("NDHWC", "DHWIO", "NDHWC"),
            precision=lax.Precision.HIGHEST) + b
        m = jnp.mean(y, axis=(0, 1, 2, 3), keepdims=True)
        v = jnp.mean((y - m) ** 2, axis=(0, 1, 2, 3), keepdims=True)
        return jnp.maximum((y - m) * lax.rsqrt(v + 1e-5) * g + beta, 0.0)

    x = cbr(x, p["w1"], p["b1"], p["g1"], p["beta1"])
    x = cbr(x, p["w2"], p["b2"], p["g2"], p["beta2"])
    return jnp.transpose(x, (0, 4, 1, 2, 3))


if __name__ == "__main__":
    key = jax.random.PRNGKey(0)
    kx, kp = jax.random.split(key)

    N, C_in, C_out, S = 2, 4, 8, 16                 # input (N, C_in, S, S, S)
    x = jax.random.normal(kx, (N, C_in, S, S, S), jnp.float32)
    params = init_params(kp, C_in, C_out)

    out = jax.jit(down_forward)(x, params)
    out = jax.block_until_ready(out)
    assert out.shape == (N, C_out, S // 2, S // 2, S // 2), out.shape

    ref = _ref_forward(x, params)
    # bf16 MXU inputs (f32 accumulation) vs. f32-HIGHEST reference -> ~1e-2.
    err = float(jnp.max(jnp.abs(out - ref)))
    assert jnp.allclose(out, ref, rtol=2e-2, atol=2e-2), f"max abs err {err}"

    print("KERNEL_OK")
</pallas_src>

<mosaic_0001>
module attributes {stable_mosaic.version = 11 : i64} {
  func.func @_maxpool_kernel(%arg0: i32, %arg1: i32, %arg2: memref<1x2x8x2x8x8xf32, #tpu.memory_space<vmem>>, %arg3: memref<1x1x8x8x4xf32, #tpu.memory_space<vmem>>) attributes {dimension_semantics = [#tpu.dimension_semantics<parallel>, #tpu.dimension_semantics<parallel>], iteration_bounds = array<i64: 2, 8>, scalar_prefetch = 0 : i64, scratch_operands = 0 : i64, tpu.core_type = #tpu.core_type<tc>, window_params = [{transform_indices = @transform_0, window_bounds = array<i64: 1, 2, 8, 2, 8, 8>}, {transform_indices = @transform_1, window_bounds = array<i64: 1, 1, 8, 8, 4>}]} {
    %c0 = arith.constant 0 : index
    %c0_0 = arith.constant 0 : index
    %c0_1 = arith.constant 0 : index
    %c0_2 = arith.constant 0 : index
    %c0_3 = arith.constant 0 : index
    %c0_4 = arith.constant 0 : index
    %0 = vector.load %arg2[%c0, %c0_0, %c0_1, %c0_2, %c0_3, %c0_4] : memref<1x2x8x2x8x8xf32, #tpu.memory_space<vmem>>, vector<1x1x8x1x8x8xf32>
    %1 = vector.shape_cast %0 : vector<1x1x8x1x8x8xf32> to vector<8x8x8xf32>
    %c0_5 = arith.constant 0 : index
    %c1 = arith.constant 1 : index
    %c0_6 = arith.constant 0 : index
    %c0_7 = arith.constant 0 : index
    %c0_8 = arith.constant 0 : index
    %c0_9 = arith.constant 0 : index
    %2 = vector.load %arg2[%c0_5, %c1, %c0_6, %c0_7, %c0_8, %c0_9] : memref<1x2x8x2x8x8xf32, #tpu.memory_space<vmem>>, vector<1x1x8x1x8x8xf32>
    %3 = vector.shape_cast %2 : vector<1x1x8x1x8x8xf32> to vector<8x8x8xf32>
    %4 = arith.maximumf %1, %3 : vector<8x8x8xf32>
    %c0_10 = arith.constant 0 : index
    %c0_11 = arith.constant 0 : index
    %c0_12 = arith.constant 0 : index
    %c1_13 = arith.constant 1 : index
    %c0_14 = arith.constant 0 : index
    %c0_15 = arith.constant 0 : index
    %5 = vector.load %arg2[%c0_10, %c0_11, %c0_12, %c1_13, %c0_14, %c0_15] : memref<1x2x8x2x8x8xf32, #tpu.memory_space<vmem>>, vector<1x1x8x1x8x8xf32>
    %6 = vector.shape_cast %5 : vector<1x1x8x1x8x8xf32> to vector<8x8x8xf32>
    %c0_16 = arith.constant 0 : index
    %c1_17 = arith.constant 1 : index
    %c0_18 = arith.constant 0 : index
    %c1_19 = arith.constant 1 : index
    %c0_20 = arith.constant 0 : index
    %c0_21 = arith.constant 0 : index
    %7 = vector.load %arg2[%c0_16, %c1_17, %c0_18, %c1_19, %c0_20, %c0_21] : memref<1x2x8x2x8x8xf32, #tpu.memory_space<vmem>>, vector<1x1x8x1x8x8xf32>
    %8 = vector.shape_cast %7 : vector<1x1x8x1x8x8xf32> to vector<8x8x8xf32>
    %9 = arith.maximumf %6, %8 : vector<8x8x8xf32>
    %10 = arith.maximumf %4, %9 : vector<8x8x8xf32>
    %11 = vector.extract_strided_slice %10 {offsets = [0, 0, 0], sizes = [8, 8, 4], strides = [1, 1, 1]} : vector<8x8x8xf32> to vector<8x8x4xf32>
    %12 = vector.extract_strided_slice %10 {offsets = [0, 0, 4], sizes = [8, 8, 4], strides = [1, 1, 1]} : vector<8x8x8xf32> to vector<8x8x4xf32>
    %13 = arith.maximumf %11, %12 : vector<8x8x4xf32>
    %c0_22 = arith.constant 0 : index
    %c0_23 = arith.constant 0 : index
    %c0_24 = arith.constant 0 : index
    %c0_25 = arith.constant 0 : index
    %c0_26 = arith.constant 0 : index
    %14 = vector.load %arg3[%c0_22, %c0_23, %c0_24, %c0_25, %c0_26] : memref<1x1x8x8x4xf32, #tpu.memory_space<vmem>>, vector<1x1x8x8x4xf32>
    %15 = vector.shape_cast %14 : vector<1x1x8x8x4xf32> to vector<8x8x4xf32>
    %16 = vector.shape_cast %13 : vector<8x8x4xf32> to vector<1x1x8x8x4xf32>
    tpu.vector_store %arg3[%c0_22, %c0_23, %c0_24, %c0_25, %c0_26], %16 {strides = array<i32>} : memref<1x1x8x8x4xf32, #tpu.memory_space<vmem>>, vector<1x1x8x8x4xf32>,
    return
  }
  func.func @transform_0(%arg0: i32, %arg1: i32) -> (i32, i32, i32, i32, i32, i32) {
    %c0_i32 = arith.constant 0 : i32
    %c0_i32_0 = arith.constant 0 : i32
    %c0_i32_1 = arith.constant 0 : i32
    %c0_i32_2 = arith.constant 0 : i32
    %c0_i32_3 = arith.constant 0 : i32
    return %arg0, %arg1, %c0_i32, %c0_i32_0, %c0_i32_1, %c0_i32_2 : i32, i32, i32, i32, i32, i32
  }
  func.func @transform_1(%arg0: i32, %arg1: i32) -> (i32, i32, i32, i32, i32) {
    %c0_i32 = arith.constant 0 : i32
    %c0_i32_0 = arith.constant 0 : i32
    %c0_i32_1 = arith.constant 0 : i32
    %c0_i32_2 = arith.constant 0 : i32
    return %arg0, %arg1, %c0_i32, %c0_i32_0, %c0_i32_1 : i32, i32, i32, i32, i32
  }
}

module attributes {stable_mosaic.version = 11 : i64} {
  func.func @_conv_kernel(%arg0: i32, %arg1: i32, %arg2: memref<1x1x10x10x4xbf16, #tpu.memory_space<vmem>>, %arg3: memref<1x1x10x10x4xbf16, #tpu.memory_space<vmem>>, %arg4: memref<1x1x10x10x4xbf16, #tpu.memory_space<vmem>>, %arg5: memref<108x128xbf16, #tpu.memory_space<vmem>>, %arg6: memref<1x128xf32, #tpu.memory_space<vmem>>, %arg7: memref<1x1x64x128xf32, #tpu.memory_space<vmem>>, %arg8: memref<1x1x2x128xf32, #tpu.memory_space<vmem>>) attributes {dimension_semantics = [#tpu.dimension_semantics<parallel>, #tpu.dimension_semantics<parallel>], iteration_bounds = array<i64: 2, 8>, scalar_prefetch = 0 : i64, scratch_operands = 0 : i64, tpu.core_type = #tpu.core_type<tc>, window_params = [{transform_indices = @transform_0, window_bounds = array<i64: 1, 1, 10, 10, 4>}, {transform_indices = @transform_1, window_bounds = array<i64: 1, 1, 10, 10, 4>}, {transform_indices = @transform_2, window_bounds = array<i64: 1, 1, 10, 10, 4>}, {pipeline_mode = #tpu.pipeline_mode<synchronous>, transform_indices = @transform_3, window_bounds = array<i64: 108, 128>}, {pipeline_mode = #tpu.pipeline_mode<synchronous>, transform_indices = @transform_4, window_bounds = array<i64: 1, 128>}, {transform_indices = @transform_5, window_bounds = array<i64: 1, 1, 64, 128>}, {transform_indices = @transform_6, window_bounds = array<i64: 1, 1, 2, 128>}]} {
    %cst = arith.constant 0.000000e+00 : f32
    %0 = vector.broadcast %cst : f32 to vector<64x128xf32>
    %c0 = arith.constant 0 : index
    %c0_0 = arith.constant 0 : index
    %c0_1 = arith.constant 0 : index
    %c0_2 = arith.constant 0 : index
    %c0_3 = arith.constant 0 : index
    %1 = vector.load %arg2[%c0, %c0_0, %c0_1, %c0_2, %c0_3] : memref<1x1x10x10x4xbf16, #tpu.memory_space<vmem>>, vector<1x1x10x10x4xbf16>
    %2 = vector.shape_cast %1 : vector<1x1x10x10x4xbf16> to vector<10x10x4xbf16>
    %3 = vector.extract_strided_slice %2 {offsets = [0, 0, 0], sizes = [8, 8, 4], strides = [1, 1, 1]} : vector<10x10x4xbf16> to vector<8x8x4xbf16>
    %4 = vector.shape_cast %3 : vector<8x8x4xbf16> to vector<64x4xbf16>
    %5 = vector.extract_strided_slice %2 {offsets = [0, 1, 0], sizes = [8, 8, 4], strides = [1, 1, 1]} : vector<10x10x4xbf16> to vector<8x8x4xbf16>
    %6 = vector.shape_cast %5 : vector<8x8x4xbf16> to vector<64x4xbf16>
    %7 = vector.extract_strided_slice %2 {offsets = [0, 2, 0], sizes = [8, 8, 4], strides = [1, 1, 1]} : vector<10x10x4xbf16> to vector<8x8x4xbf16>
    %8 = vector.shape_cast %7 : vector<8x8x4xbf16> to vector<64x4xbf16>
    %9 = vector.extract_strided_slice %2 {offsets = [1, 0, 0], sizes = [8, 8, 4], strides = [1, 1, 1]} : vector<10x10x4xbf16> to vector<8x8x4xbf16>
    %10 = vector.shape_cast %9 : vector<8x8x4xbf16> to vector<64x4xbf16>
    %11 = vector.extract_strided_slice %2 {offsets = [1, 1, 0], sizes = [8, 8, 4], strides = [1, 1, 1]} : vector<10x10x4xbf16> to vector<8x8x4xbf16>
    %12 = vector.shape_cast %11 : vector<8x8x4xbf16> to vector<64x4xbf16>
    %13 = vector.extract_strided_slice %2 {offsets = [1, 2, 0], sizes = [8, 8, 4], strides = [1, 1, 1]} : vector<10x10x4xbf16> to vector<8x8x4xbf16>
    %14 = vector.shape_cast %13 : vector<8x8x4xbf16> to vector<64x4xbf16>
    %15 = vector.extract_strided_slice %2 {offsets = [2, 0, 0], sizes = [8, 8, 4], strides = [1, 1, 1]} : vector<10x10x4xbf16> to vector<8x8x4xbf16>
    %16 = vector.shape_cast %15 : vector<8x8x4xbf16> to vector<64x4xbf16>
    %17 = vector.extract_strided_slice %2 {offsets = [2, 1, 0], sizes = [8, 8, 4], strides = [1, 1, 1]} : vector<10x10x4xbf16> to vector<8x8x4xbf16>
    %18 = vector.shape_cast %17 : vector<8x8x4xbf16> to vector<64x4xbf16>
    %19 = vector.extract_strided_slice %2 {offsets = [2, 2, 0], sizes = [8, 8, 4], strides = [1, 1, 1]} : vector<10x10x4xbf16> to vector<8x8x4xbf16>
    %20 = vector.shape_cast %19 : vector<8x8x4xbf16> to vector<64x4xbf16>
    %21 = tpu.concatenate %4, %6, %8, %10, %12, %14, %16, %18, %20 in 1 : vector<64x4xbf16>, vector<64x4xbf16>, vector<64x4xbf16>, vector<64x4xbf16>, vector<64x4xbf16>, vector<64x4xbf16>, vector<64x4xbf16>, vector<64x4xbf16>, vector<64x4xbf16> -> vector<64x36xbf16>
    %c0_4 = arith.constant 0 : index
    %c0_5 = arith.constant 0 : index
    %22 = vector.load %arg5[%c0_4, %c0_5] : memref<108x128xbf16, #tpu.memory_space<vmem>>, vector<36x128xbf16>
    %cst_6 = arith.constant dense<0.000000e+00> : vector<64x128xf32>
    %23 = tpu.matmul %21, %22, %cst_6 {dimension_numbers = #tpu.dot_dimension_numbers<[1], [0], [0], [1], [0, 0, 1, 1], [], []>} : vector<64x36xbf16>, vector<36x128xbf16>, vector<64x128xf32> -> vector<64x128xf32>
    %24 = arith.addf %0, %23 : vector<64x128xf32>
    %c0_7 = arith.constant 0 : index
    %c0_8 = arith.constant 0 : index
    %c0_9 = arith.constant 0 : index
    %c0_10 = arith.constant 0 : index
    %c0_11 = arith.constant 0 : index
    %25 = vector.load %arg3[%c0_7, %c0_8, %c0_9, %c0_10, %c0_11] : memref<1x1x10x10x4xbf16, #tpu.memory_space<vmem>>, vector<1x1x10x10x4xbf16>
    %26 = vector.shape_cast %25 : vector<1x1x10x10x4xbf16> to vector<10x10x4xbf16>
    %27 = vector.extract_strided_slice %26 {offsets = [0, 0, 0], sizes = [8, 8, 4], strides = [1, 1, 1]} : vector<10x10x4xbf16> to vector<8x8x4xbf16>
    %28 = vector.shape_cast %27 : vector<8x8x4xbf16> to vector<64x4xbf16>
    %29 = vector.extract_strided_slice %26 {offsets = [0, 1, 0], sizes = [8, 8, 4], strides = [1, 1, 1]} : vector<10x10x4xbf16> to vector<8x8x4xbf16>
    %30 = vector.shape_cast %29 : vector<8x8x4xbf16> to vector<64x4xbf16>
    %31 = vector.extract_strided_slice %26 {offsets = [0, 2, 0], sizes = [8, 8, 4], strides = [1, 1, 1]} : vector<10x10x4xbf16> to vector<8x8x4xbf16>
    %32 = vector.shape_cast %31 : vector<8x8x4xbf16> to vector<64x4xbf16>
    %33 = vector.extract_strided_slice %26 {offsets = [1, 0, 0], sizes = [8, 8, 4], strides = [1, 1, 1]} : vector<10x10x4xbf16> to vector<8x8x4xbf16>
    %34 = vector.shape_cast %33 : vector<8x8x4xbf16> to vector<64x4xbf16>
    %35 = vector.extract_strided_slice %26 {offsets = [1, 1, 0], sizes = [8, 8, 4], strides = [1, 1, 1]} : vector<10x10x4xbf16> to vector<8x8x4xbf16>
    %36 = vector.shape_cast %35 : vector<8x8x4xbf16> to vector<64x4xbf16>
    %37 = vector.extract_strided_slice %26 {offsets = [1, 2, 0], sizes = [8, 8, 4], strides = [1, 1, 1]} : vector<10x10x4xbf16> to vector<8x8x4xbf16>
    %38 = vector.shape_cast %37 : vector<8x8x4xbf16> to vector<64x4xbf16>
    %39 = vector.extract_strided_slice %26 {offsets = [2, 0, 0], sizes = [8, 8, 4], strides = [1, 1, 1]} : vector<10x10x4xbf16> to vector<8x8x4xbf16>
    %40 = vector.shape_cast %39 : vector<8x8x4xbf16> to vector<64x4xbf16>
    %41 = vector.extract_strided_slice %26 {offsets = [2, 1, 0], sizes = [8, 8, 4], strides = [1, 1, 1]} : vector<10x10x4xbf16> to vector<8x8x4xbf16>
    %42 = vector.shape_cast %41 : vector<8x8x4xbf16> to vector<64x4xbf16>
    %43 = vector.extract_strided_slice %26 {offsets = [2, 2, 0], sizes = [8, 8, 4], strides = [1, 1, 1]} : vector<10x10x4xbf16> to vector<8x8x4xbf16>
    %44 = vector.shape_cast %43 : vector<8x8x4xbf16> to vector<64x4xbf16>
    %45 = tpu.concatenate %28, %30, %32, %34, %36, %38, %40, %42, %44 in 1 : vector<64x4xbf16>, vector<64x4xbf16>, vector<64x4xbf16>, vector<64x4xbf16>, vector<64x4xbf16>, vector<64x4xbf16>, vector<64x4xbf16>, vector<64x4xbf16>, vector<64x4xbf16> -> vector<64x36xbf16>
    %c36 = arith.constant 36 : index
    %c0_12 = arith.constant 0 : index
    %46 = vector.load %arg5[%c36, %c0_12] : memref<108x128xbf16, #tpu.memory_space<vmem>>, vector<36x128xbf16>
    %cst_13 = arith.constant dense<0.000000e+00> : vector<64x128xf32>
    %47 = tpu.matmul %45, %46, %cst_13 {dimension_numbers = #tpu.dot_dimension_numbers<[1], [0], [0], [1], [0, 0, 1, 1], [], []>} : vector<64x36xbf16>, vector<36x128xbf16>, vector<64x128xf32> -> vector<64x128xf32>
    %48 = arith.addf %24, %47 : vector<64x128xf32>
    %c0_14 = arith.constant 0 : index
    %c0_15 = arith.constant 0 : index
    %c0_16 = arith.constant 0 : index
    %c0_17 = arith.constant 0 : index
    %c0_18 = arith.constant 0 : index
    %49 = vector.load %arg4[%c0_14, %c0_15, %c0_16, %c0_17, %c0_18] : memref<1x1x10x10x4xbf16, #tpu.memory_space<vmem>>, vector<1x1x10x10x4xbf16>
    %50 = vector.shape_cast %49 : vector<1x1x10x10x4xbf16> to vector<10x10x4xbf16>
    %51 = vector.extract_strided_slice %50 {offsets = [0, 0, 0], sizes = [8, 8, 4], strides = [1, 1, 1]} : vector<10x10x4xbf16> to vector<8x8x4xbf16>
    %52 = vector.shape_cast %51 : vector<8x8x4xbf16> to vector<64x4xbf16>
    %53 = vector.extract_strided_slice %50 {offsets = [0, 1, 0], sizes = [8, 8, 4], strides = [1, 1, 1]} : vector<10x10x4xbf16> to vector<8x8x4xbf16>
    %54 = vector.shape_cast %53 : vector<8x8x4xbf16> to vector<64x4xbf16>
    %55 = vector.extract_strided_slice %50 {offsets = [0, 2, 0], sizes = [8, 8, 4], strides = [1, 1, 1]} : vector<10x10x4xbf16> to vector<8x8x4xbf16>
    %56 = vector.shape_cast %55 : vector<8x8x4xbf16> to vector<64x4xbf16>
    %57 = vector.extract_strided_slice %50 {offsets = [1, 0, 0], sizes = [8, 8, 4], strides = [1, 1, 1]} : vector<10x10x4xbf16> to vector<8x8x4xbf16>
    %58 = vector.shape_cast %57 : vector<8x8x4xbf16> to vector<64x4xbf16>
    %59 = vector.extract_strided_slice %50 {offsets = [1, 1, 0], sizes = [8, 8, 4], strides = [1, 1, 1]} : vector<10x10x4xbf16> to vector<8x8x4xbf16>
    %60 = vector.shape_cast %59 : vector<8x8x4xbf16> to vector<64x4xbf16>
    %61 = vector.extract_strided_slice %50 {offsets = [1, 2, 0], sizes = [8, 8, 4], strides = [1, 1, 1]} : vector<10x10x4xbf16> to vector<8x8x4xbf16>
    %62 = vector.shape_cast %61 : vector<8x8x4xbf16> to vector<64x4xbf16>
    %63 = vector.extract_strided_slice %50 {offsets = [2, 0, 0], sizes = [8, 8, 4], strides = [1, 1, 1]} : vector<10x10x4xbf16> to vector<8x8x4xbf16>
    %64 = vector.shape_cast %63 : vector<8x8x4xbf16> to vector<64x4xbf16>
    %65 = vector.extract_strided_slice %50 {offsets = [2, 1, 0], sizes = [8, 8, 4], strides = [1, 1, 1]} : vector<10x10x4xbf16> to vector<8x8x4xbf16>
    %66 = vector.shape_cast %65 : vector<8x8x4xbf16> to vector<64x4xbf16>
    %67 = vector.extract_strided_slice %50 {offsets = [2, 2, 0], sizes = [8, 8, 4], strides = [1, 1, 1]} : vector<10x10x4xbf16> to vector<8x8x4xbf16>
    %68 = vector.shape_cast %67 : vector<8x8x4xbf16> to vector<64x4xbf16>
    %69 = tpu.concatenate %52, %54, %56, %58, %60, %62, %64, %66, %68 in 1 : vector<64x4xbf16>, vector<64x4xbf16>, vector<64x4xbf16>, vector<64x4xbf16>, vector<64x4xbf16>, vector<64x4xbf16>, vector<64x4xbf16>, vector<64x4xbf16>, vector<64x4xbf16> -> vector<64x36xbf16>
    %c72 = arith.constant 72 : index
    %c0_19 = arith.constant 0 : index
    %70 = vector.load %arg5[%c72, %c0_19] : memref<108x128xbf16, #tpu.memory_space<vmem>>, vector<36x128xbf16>
    %cst_20 = arith.constant dense<0.000000e+00> : vector<64x128xf32>
    %71 = tpu.matmul %69, %70, %cst_20 {dimension_numbers = #tpu.dot_dimension_numbers<[1], [0], [0], [1], [0, 0, 1, 1], [], []>} : vector<64x36xbf16>, vector<36x128xbf16>, vector<64x128xf32> -> vector<64x128xf32>
    %72 = arith.addf %48, %71 : vector<64x128xf32>
    %c0_21 = arith.constant 0 : index
    %c0_22 = arith.constant 0 : index
    %73 = vector.load %arg6[%c0_21, %c0_22] : memref<1x128xf32, #tpu.memory_space<vmem>>, vector<1x128xf32>
    %74 = vector.broadcast %73 : vector<1x128xf32> to vector<64x128xf32>
    %75 = arith.addf %72, %74 : vector<64x128xf32>
    %c0_23 = arith.constant 0 : index
    %c0_24 = arith.constant 0 : index
    %c0_25 = arith.constant 0 : index
    %c0_26 = arith.constant 0 : index
    %76 = vector.load %arg7[%c0_23, %c0_24, %c0_25, %c0_26] : memref<1x1x64x128xf32, #tpu.memory_space<vmem>>, vector<1x1x64x128xf32>
    %77 = vector.shape_cast %76 : vector<1x1x64x128xf32> to vector<64x128xf32>
    %78 = vector.shape_cast %75 : vector<64x128xf32> to vector<1x1x64x128xf32>
    tpu.vector_store %arg7[%c0_23, %c0_24, %c0_25, %c0_26], %78 {strides = array<i32>} : memref<1x1x64x128xf32, #tpu.memory_space<vmem>>, vector<1x1x64x128xf32>,
    %cst_27 = arith.constant dense<0.000000e+00> : vector<128xf32>
    %79 = vector.multi_reduction <add>, %75, %cst_27 [0] : vector<64x128xf32> to vector<128xf32>
    %80 = vector.shape_cast %79 : vector<128xf32> to vector<1x128xf32>
    %81 = arith.mulf %75, %75 : vector<64x128xf32>
    %cst_28 = arith.constant dense<0.000000e+00> : vector<128xf32>
    %82 = vector.multi_reduction <add>, %81, %cst_28 [0] : vector<64x128xf32> to vector<128xf32>
    %83 = vector.shape_cast %82 : vector<128xf32> to vector<1x128xf32>
    %84 = tpu.concatenate %80, %83 in 0 : vector<1x128xf32>, vector<1x128xf32> -> vector<2x128xf32>
    %c0_29 = arith.constant 0 : index
    %c0_30 = arith.constant 0 : index
    %c0_31 = arith.constant 0 : index
    %c0_32 = arith.constant 0 : index
    %85 = vector.load %arg8[%c0_29, %c0_30, %c0_31, %c0_32] : memref<1x1x2x128xf32, #tpu.memory_space<vmem>>, vector<1x1x2x128xf32>
    %86 = vector.shape_cast %85 : vector<1x1x2x128xf32> to vector<2x128xf32>
    %87 = vector.shape_cast %84 : vector<2x128xf32> to vector<1x1x2x128xf32>
    tpu.vector_store %arg8[%c0_29, %c0_30, %c0_31, %c0_32], %87 {strides = array<i32>} : memref<1x1x2x128xf32, #tpu.memory_space<vmem>>, vector<1x1x2x128xf32>,
    return
  }
  func.func @transform_0(%arg0: i32, %arg1: i32) -> (i32, i32, i32, i32, i32) {
    %c0_i32 = arith.constant 0 : i32
    %0 = arith.addi %arg1, %c0_i32 : i32
    %c0_i32_0 = arith.constant 0 : i32
    %c0_i32_1 = arith.constant 0 : i32
    %c0_i32_2 = arith.constant 0 : i32
    %c0_i32_3 = arith.constant 0 : i32
    return %arg0, %0, %c0_i32_0, %c0_i32_1, %c0_i32_2 : i32, i32, i32, i32, i32
  }
  func.func @transform_1(%arg0: i32, %arg1: i32) -> (i32, i32, i32, i32, i32) {
    %c1_i32 = arith.constant 1 : i32
    %0 = arith.addi %arg1, %c1_i32 : i32
    %c0_i32 = arith.constant 0 : i32
    %c0_i32_0 = arith.constant 0 : i32
    %c0_i32_1 = arith.constant 0 : i32
    %c0_i32_2 = arith.constant 0 : i32
    return %arg0, %0, %c0_i32, %c0_i32_0, %c0_i32_1 : i32, i32, i32, i32, i32
  }
  func.func @transform_2(%arg0: i32, %arg1: i32) -> (i32, i32, i32, i32, i32) {
    %c2_i32 = arith.constant 2 : i32
    %0 = arith.addi %arg1, %c2_i32 : i32
    %c0_i32 = arith.constant 0 : i32
    %c0_i32_0 = arith.constant 0 : i32
    %c0_i32_1 = arith.constant 0 : i32
    %c0_i32_2 = arith.constant 0 : i32
    return %arg0, %0, %c0_i32, %c0_i32_0, %c0_i32_1 : i32, i32, i32, i32, i32
  }
  func.func @transform_3(%arg0: i32, %arg1: i32) -> (i32, i32) {
    %c0_i32 = arith.constant 0 : i32
    %c0_i32_0 = arith.constant 0 : i32
    %c0_i32_1 = arith.constant 0 : i32
    return %c0_i32, %c0_i32_0 : i32, i32
  }
  func.func @transform_4(%arg0: i32, %arg1: i32) -> (i32, i32) {
    %c0_i32 = arith.constant 0 : i32
    %c0_i32_0 = arith.constant 0 : i32
    %c0_i32_1 = arith.constant 0 : i32
    return %c0_i32, %c0_i32_0 : i32, i32
  }
  func.func @transform_5(%arg0: i32, %arg1: i32) -> (i32, i32, i32, i32) {
    %c0_i32 = arith.constant 0 : i32
    %c0_i32_0 = arith.constant 0 : i32
    %c0_i32_1 = arith.constant 0 : i32
    return %arg0, %arg1, %c0_i32, %c0_i32_0 : i32, i32, i32, i32
  }
  func.func @transform_6(%arg0: i32, %arg1: i32) -> (i32, i32, i32, i32) {
    %c0_i32 = arith.constant 0 : i32
    %c0_i32_0 = arith.constant 0 : i32
    %c0_i32_1 = arith.constant 0 : i32
    return %arg0, %arg1, %c0_i32, %c0_i32_0 : i32, i32, i32, i32
  }
}

module attributes {stable_mosaic.version = 11 : i64} {
  func.func @_bn_relu_kernel(%arg0: i32, %arg1: i32, %arg2: memref<1x1x64x128xf32, #tpu.memory_space<vmem>>, %arg3: memref<1x128xf32, #tpu.memory_space<vmem>>, %arg4: memref<1x128xf32, #tpu.memory_space<vmem>>, %arg5: memref<1x1x64x128xbf16, #tpu.memory_space<vmem>>) attributes {dimension_semantics = [#tpu.dimension_semantics<parallel>, #tpu.dimension_semantics<parallel>], iteration_bounds = array<i64: 2, 8>, scalar_prefetch = 0 : i64, scratch_operands = 0 : i64, tpu.core_type = #tpu.core_type<tc>, window_params = [{transform_indices = @transform_0, window_bounds = array<i64: 1, 1, 64, 128>}, {pipeline_mode = #tpu.pipeline_mode<synchronous>, transform_indices = @transform_1, window_bounds = array<i64: 1, 128>}, {pipeline_mode = #tpu.pipeline_mode<synchronous>, transform_indices = @transform_2, window_bounds = array<i64: 1, 128>}, {transform_indices = @transform_3, window_bounds = array<i64: 1, 1, 64, 128>}]} {
    %c0 = arith.constant 0 : index
    %c0_0 = arith.constant 0 : index
    %c0_1 = arith.constant 0 : index
    %c0_2 = arith.constant 0 : index
    %0 = vector.load %arg2[%c0, %c0_0, %c0_1, %c0_2] : memref<1x1x64x128xf32, #tpu.memory_space<vmem>>, vector<1x1x64x128xf32>
    %1 = vector.shape_cast %0 : vector<1x1x64x128xf32> to vector<64x128xf32>
    %c0_3 = arith.constant 0 : index
    %c0_4 = arith.constant 0 : index
    %2 = vector.load %arg3[%c0_3, %c0_4] : memref<1x128xf32, #tpu.memory_space<vmem>>, vector<1x128xf32>
    %3 = vector.broadcast %2 : vector<1x128xf32> to vector<64x128xf32>
    %4 = arith.mulf %1, %3 : vector<64x128xf32>
    %c0_5 = arith.constant 0 : index
    %c0_6 = arith.constant 0 : index
    %5 = vector.load %arg4[%c0_5, %c0_6] : memref<1x128xf32, #tpu.memory_space<vmem>>, vector<1x128xf32>
    %6 = vector.broadcast %5 : vector<1x128xf32> to vector<64x128xf32>
    %7 = arith.addf %4, %6 : vector<64x128xf32>
    %cst = arith.constant 0.000000e+00 : f32
    %8 = vector.broadcast %cst : f32 to vector<64x128xf32>
    %9 = arith.maximumf %7, %8 : vector<64x128xf32>
    %10 = arith.truncf %9 : vector<64x128xf32> to vector<64x128xbf16>
    %c0_7 = arith.constant 0 : index
    %c0_8 = arith.constant 0 : index
    %c0_9 = arith.constant 0 : index
    %c0_10 = arith.constant 0 : index
    %11 = vector.load %arg5[%c0_7, %c0_8, %c0_9, %c0_10] : memref<1x1x64x128xbf16, #tpu.memory_space<vmem>>, vector<1x1x64x128xbf16>
    %12 = vector.shape_cast %11 : vector<1x1x64x128xbf16> to vector<64x128xbf16>
    %13 = vector.shape_cast %10 : vector<64x128xbf16> to vector<1x1x64x128xbf16>
    tpu.vector_store %arg5[%c0_7, %c0_8, %c0_9, %c0_10], %13 {strides = array<i32>} : memref<1x1x64x128xbf16, #tpu.memory_space<vmem>>, vector<1x1x64x128xbf16>,
    return
  }
  func.func @transform_0(%arg0: i32, %arg1: i32) -> (i32, i32, i32, i32) {
    %c0_i32 = arith.constant 0 : i32
    %c0_i32_0 = arith.constant 0 : i32
    %c0_i32_1 = arith.constant 0 : i32
    return %arg0, %arg1, %c0_i32, %c0_i32_0 : i32, i32, i32, i32
  }
  func.func @transform_1(%arg0: i32, %arg1: i32) -> (i32, i32) {
    %c0_i32 = arith.constant 0 : i32
    %c0_i32_0 = arith.constant 0 : i32
    %c0_i32_1 = arith.constant 0 : i32
    return %c0_i32, %c0_i32_0 : i32, i32
  }
  func.func @transform_2(%arg0: i32, %arg1: i32) -> (i32, i32) {
    %c0_i32 = arith.constant 0 : i32
    %c0_i32_0 = arith.constant 0 : i32
    %c0_i32_1 = arith.constant 0 : i32
    return %c0_i32, %c0_i32_0 : i32, i32
  }
  func.func @transform_3(%arg0: i32, %arg1: i32) -> (i32, i32, i32, i32) {
    %c0_i32 = arith.constant 0 : i32
    %c0_i32_0 = arith.constant 0 : i32
    %c0_i32_1 = arith.constant 0 : i32
    return %arg0, %arg1, %c0_i32, %c0_i32_0 : i32, i32, i32, i32
  }
}

module attributes {stable_mosaic.version = 11 : i64} {
  func.func @_bn_relu_kernel(%arg0: i32, %arg1: i32, %arg2: memref<1x1x64x128xf32, #tpu.memory_space<vmem>>, %arg3: memref<1x128xf32, #tpu.memory_space<vmem>>, %arg4: memref<1x128xf32, #tpu.memory_space<vmem>>, %arg5: memref<1x1x64x128xf32, #tpu.memory_space<vmem>>) attributes {dimension_semantics = [#tpu.dimension_semantics<parallel>, #tpu.dimension_semantics<parallel>], iteration_bounds = array<i64: 2, 8>, scalar_prefetch = 0 : i64, scratch_operands = 0 : i64, tpu.core_type = #tpu.core_type<tc>, window_params = [{transform_indices = @transform_0, window_bounds = array<i64: 1, 1, 64, 128>}, {pipeline_mode = #tpu.pipeline_mode<synchronous>, transform_indices = @transform_1, window_bounds = array<i64: 1, 128>}, {pipeline_mode = #tpu.pipeline_mode<synchronous>, transform_indices = @transform_2, window_bounds = array<i64: 1, 128>}, {transform_indices = @transform_3, window_bounds = array<i64: 1, 1, 64, 128>}]} {
    %c0 = arith.constant 0 : index
    %c0_0 = arith.constant 0 : index
    %c0_1 = arith.constant 0 : index
    %c0_2 = arith.constant 0 : index
    %0 = vector.load %arg2[%c0, %c0_0, %c0_1, %c0_2] : memref<1x1x64x128xf32, #tpu.memory_space<vmem>>, vector<1x1x64x128xf32>
    %1 = vector.shape_cast %0 : vector<1x1x64x128xf32> to vector<64x128xf32>
    %c0_3 = arith.constant 0 : index
    %c0_4 = arith.constant 0 : index
    %2 = vector.load %arg3[%c0_3, %c0_4] : memref<1x128xf32, #tpu.memory_space<vmem>>, vector<1x128xf32>
    %3 = vector.broadcast %2 : vector<1x128xf32> to vector<64x128xf32>
    %4 = arith.mulf %1, %3 : vector<64x128xf32>
    %c0_5 = arith.constant 0 : index
    %c0_6 = arith.constant 0 : index
    %5 = vector.load %arg4[%c0_5, %c0_6] : memref<1x128xf32, #tpu.memory_space<vmem>>, vector<1x128xf32>
    %6 = vector.broadcast %5 : vector<1x128xf32> to vector<64x128xf32>
    %7 = arith.addf %4, %6 : vector<64x128xf32>
    %cst = arith.constant 0.000000e+00 : f32
    %8 = vector.broadcast %cst : f32 to vector<64x128xf32>
    %9 = arith.maximumf %7, %8 : vector<64x128xf32>
    %c0_7 = arith.constant 0 : index
    %c0_8 = arith.constant 0 : index
    %c0_9 = arith.constant 0 : index
    %c0_10 = arith.constant 0 : index
    %10 = vector.load %arg5[%c0_7, %c0_8, %c0_9, %c0_10] : memref<1x1x64x128xf32, #tpu.memory_space<vmem>>, vector<1x1x64x128xf32>
    %11 = vector.shape_cast %10 : vector<1x1x64x128xf32> to vector<64x128xf32>
    %12 = vector.shape_cast %9 : vector<64x128xf32> to vector<1x1x64x128xf32>
    tpu.vector_store %arg5[%c0_7, %c0_8, %c0_9, %c0_10], %12 {strides = array<i32>} : memref<1x1x64x128xf32, #tpu.memory_space<vmem>>, vector<1x1x64x128xf32>,
    return
  }
  func.func @transform_0(%arg0: i32, %arg1: i32) -> (i32, i32, i32, i32) {
    %c0_i32 = arith.constant 0 : i32
    %c0_i32_0 = arith.constant 0 : i32
    %c0_i32_1 = arith.constant 0 : i32
    return %arg0, %arg1, %c0_i32, %c0_i32_0 : i32, i32, i32, i32
  }
  func.func @transform_1(%arg0: i32, %arg1: i32) -> (i32, i32) {
    %c0_i32 = arith.constant 0 : i32
    %c0_i32_0 = arith.constant 0 : i32
    %c0_i32_1 = arith.constant 0 : i32
    return %c0_i32, %c0_i32_0 : i32, i32
  }
  func.func @transform_2(%arg0: i32, %arg1: i32) -> (i32, i32) {
    %c0_i32 = arith.constant 0 : i32
    %c0_i32_0 = arith.constant 0 : i32
    %c0_i32_1 = arith.constant 0 : i32
    return %c0_i32, %c0_i32_0 : i32, i32
  }
  func.func @transform_3(%arg0: i32, %arg1: i32) -> (i32, i32, i32, i32) {
    %c0_i32 = arith.constant 0 : i32
    %c0_i32_0 = arith.constant 0 : i32
    %c0_i32_1 = arith.constant 0 : i32
    return %arg0, %arg1, %c0_i32, %c0_i32_0 : i32, i32, i32, i32
  }
}

module attributes {stable_mosaic.version = 11 : i64} {
  func.func @_conv_kernel(%arg0: i32, %arg1: i32, %arg2: memref<1x1x10x10x128xbf16, #tpu.memory_space<vmem>>, %arg3: memref<1x1x10x10x128xbf16, #tpu.memory_space<vmem>>, %arg4: memref<1x1x10x10x128xbf16, #tpu.memory_space<vmem>>, %arg5: memref<3456x128xbf16, #tpu.memory_space<vmem>>, %arg6: memref<1x128xf32, #tpu.memory_space<vmem>>, %arg7: memref<1x1x64x128xf32, #tpu.memory_space<vmem>>, %arg8: memref<1x1x2x128xf32, #tpu.memory_space<vmem>>) attributes {dimension_semantics = [#tpu.dimension_semantics<parallel>, #tpu.dimension_semantics<parallel>], iteration_bounds = array<i64: 2, 8>, scalar_prefetch = 0 : i64, scratch_operands = 0 : i64, tpu.core_type = #tpu.core_type<tc>, window_params = [{transform_indices = @transform_0, window_bounds = array<i64: 1, 1, 10, 10, 128>}, {transform_indices = @transform_1, window_bounds = array<i64: 1, 1, 10, 10, 128>}, {transform_indices = @transform_2, window_bounds = array<i64: 1, 1, 10, 10, 128>}, {pipeline_mode = #tpu.pipeline_mode<synchronous>, transform_indices = @transform_3, window_bounds = array<i64: 3456, 128>}, {pipeline_mode = #tpu.pipeline_mode<synchronous>, transform_indices = @transform_4, window_bounds = array<i64: 1, 128>}, {transform_indices = @transform_5, window_bounds = array<i64: 1, 1, 64, 128>}, {transform_indices = @transform_6, window_bounds = array<i64: 1, 1, 2, 128>}]} {
    %cst = arith.constant 0.000000e+00 : f32
    %0 = vector.broadcast %cst : f32 to vector<64x128xf32>
    %c0 = arith.constant 0 : index
    %c0_0 = arith.constant 0 : index
    %c0_1 = arith.constant 0 : index
    %c0_2 = arith.constant 0 : index
    %c0_3 = arith.constant 0 : index
    %1 = vector.load %arg2[%c0, %c0_0, %c0_1, %c0_2, %c0_3] : memref<1x1x10x10x128xbf16, #tpu.memory_space<vmem>>, vector<1x1x10x10x128xbf16>
    %2 = vector.shape_cast %1 : vector<1x1x10x10x128xbf16> to vector<10x10x128xbf16>
    %3 = vector.extract_strided_slice %2 {offsets = [0, 0, 0], sizes = [8, 8, 128], strides = [1, 1, 1]} : vector<10x10x128xbf16> to vector<8x8x128xbf16>
    %4 = vector.shape_cast %3 : vector<8x8x128xbf16> to vector<64x128xbf16>
    %5 = vector.extract_strided_slice %2 {offsets = [0, 1, 0], sizes = [8, 8, 128], strides = [1, 1, 1]} : vector<10x10x128xbf16> to vector<8x8x128xbf16>
    %6 = vector.shape_cast %5 : vector<8x8x128xbf16> to vector<64x128xbf16>
    %7 = vector.extract_strided_slice %2 {offsets = [0, 2, 0], sizes = [8, 8, 128], strides = [1, 1, 1]} : vector<10x10x128xbf16> to vector<8x8x128xbf16>
    %8 = vector.shape_cast %7 : vector<8x8x128xbf16> to vector<64x128xbf16>
    %9 = vector.extract_strided_slice %2 {offsets = [1, 0, 0], sizes = [8, 8, 128], strides = [1, 1, 1]} : vector<10x10x128xbf16> to vector<8x8x128xbf16>
    %10 = vector.shape_cast %9 : vector<8x8x128xbf16> to vector<64x128xbf16>
    %11 = vector.extract_strided_slice %2 {offsets = [1, 1, 0], sizes = [8, 8, 128], strides = [1, 1, 1]} : vector<10x10x128xbf16> to vector<8x8x128xbf16>
    %12 = vector.shape_cast %11 : vector<8x8x128xbf16> to vector<64x128xbf16>
    %13 = vector.extract_strided_slice %2 {offsets = [1, 2, 0], sizes = [8, 8, 128], strides = [1, 1, 1]} : vector<10x10x128xbf16> to vector<8x8x128xbf16>
    %14 = vector.shape_cast %13 : vector<8x8x128xbf16> to vector<64x128xbf16>
    %15 = vector.extract_strided_slice %2 {offsets = [2, 0, 0], sizes = [8, 8, 128], strides = [1, 1, 1]} : vector<10x10x128xbf16> to vector<8x8x128xbf16>
    %16 = vector.shape_cast %15 : vector<8x8x128xbf16> to vector<64x128xbf16>
    %17 = vector.extract_strided_slice %2 {offsets = [2, 1, 0], sizes = [8, 8, 128], strides = [1, 1, 1]} : vector<10x10x128xbf16> to vector<8x8x128xbf16>
    %18 = vector.shape_cast %17 : vector<8x8x128xbf16> to vector<64x128xbf16>
    %19 = vector.extract_strided_slice %2 {offsets = [2, 2, 0], sizes = [8, 8, 128], strides = [1, 1, 1]} : vector<10x10x128xbf16> to vector<8x8x128xbf16>
    %20 = vector.shape_cast %19 : vector<8x8x128xbf16> to vector<64x128xbf16>
    %21 = tpu.concatenate %4, %6, %8, %10, %12, %14, %16, %18, %20 in 1 : vector<64x128xbf16>, vector<64x128xbf16>, vector<64x128xbf16>, vector<64x128xbf16>, vector<64x128xbf16>, vector<64x128xbf16>, vector<64x128xbf16>, vector<64x128xbf16>, vector<64x128xbf16> -> vector<64x1152xbf16>
    %c0_4 = arith.constant 0 : index
    %c0_5 = arith.constant 0 : index
    %22 = vector.load %arg5[%c0_4, %c0_5] : memref<3456x128xbf16, #tpu.memory_space<vmem>>, vector<1152x128xbf16>
    %cst_6 = arith.constant dense<0.000000e+00> : vector<64x128xf32>
    %23 = tpu.matmul %21, %22, %cst_6 {dimension_numbers = #tpu.dot_dimension_numbers<[1], [0], [0], [1], [0, 0, 1, 1], [], []>} : vector<64x1152xbf16>, vector<1152x128xbf16>, vector<64x128xf32> -> vector<64x128xf32>
    %24 = arith.addf %0, %23 : vector<64x128xf32>
    %c0_7 = arith.constant 0 : index
    %c0_8 = arith.constant 0 : index
    %c0_9 = arith.constant 0 : index
    %c0_10 = arith.constant 0 : index
    %c0_11 = arith.constant 0 : index
    %25 = vector.load %arg3[%c0_7, %c0_8, %c0_9, %c0_10, %c0_11] : memref<1x1x10x10x128xbf16, #tpu.memory_space<vmem>>, vector<1x1x10x10x128xbf16>
    %26 = vector.shape_cast %25 : vector<1x1x10x10x128xbf16> to vector<10x10x128xbf16>
    %27 = vector.extract_strided_slice %26 {offsets = [0, 0, 0], sizes = [8, 8, 128], strides = [1, 1, 1]} : vector<10x10x128xbf16> to vector<8x8x128xbf16>
    %28 = vector.shape_cast %27 : vector<8x8x128xbf16> to vector<64x128xbf16>
    %29 = vector.extract_strided_slice %26 {offsets = [0, 1, 0], sizes = [8, 8, 128], strides = [1, 1, 1]} : vector<10x10x128xbf16> to vector<8x8x128xbf16>
    %30 = vector.shape_cast %29 : vector<8x8x128xbf16> to vector<64x128xbf16>
    %31 = vector.extract_strided_slice %26 {offsets = [0, 2, 0], sizes = [8, 8, 128], strides = [1, 1, 1]} : vector<10x10x128xbf16> to vector<8x8x128xbf16>
    %32 = vector.shape_cast %31 : vector<8x8x128xbf16> to vector<64x128xbf16>
    %33 = vector.extract_strided_slice %26 {offsets = [1, 0, 0], sizes = [8, 8, 128], strides = [1, 1, 1]} : vector<10x10x128xbf16> to vector<8x8x128xbf16>
    %34 = vector.shape_cast %33 : vector<8x8x128xbf16> to vector<64x128xbf16>
    %35 = vector.extract_strided_slice %26 {offsets = [1, 1, 0], sizes = [8, 8, 128], strides = [1, 1, 1]} : vector<10x10x128xbf16> to vector<8x8x128xbf16>
    %36 = vector.shape_cast %35 : vector<8x8x128xbf16> to vector<64x128xbf16>
    %37 = vector.extract_strided_slice %26 {offsets = [1, 2, 0], sizes = [8, 8, 128], strides = [1, 1, 1]} : vector<10x10x128xbf16> to vector<8x8x128xbf16>
    %38 = vector.shape_cast %37 : vector<8x8x128xbf16> to vector<64x128xbf16>
    %39 = vector.extract_strided_slice %26 {offsets = [2, 0, 0], sizes = [8, 8, 128], strides = [1, 1, 1]} : vector<10x10x128xbf16> to vector<8x8x128xbf16>
    %40 = vector.shape_cast %39 : vector<8x8x128xbf16> to vector<64x128xbf16>
    %41 = vector.extract_strided_slice %26 {offsets = [2, 1, 0], sizes = [8, 8, 128], strides = [1, 1, 1]} : vector<10x10x128xbf16> to vector<8x8x128xbf16>
    %42 = vector.shape_cast %41 : vector<8x8x128xbf16> to vector<64x128xbf16>
    %43 = vector.extract_strided_slice %26 {offsets = [2, 2, 0], sizes = [8, 8, 128], strides = [1, 1, 1]} : vector<10x10x128xbf16> to vector<8x8x128xbf16>
    %44 = vector.shape_cast %43 : vector<8x8x128xbf16> to vector<64x128xbf16>
    %45 = tpu.concatenate %28, %30, %32, %34, %36, %38, %40, %42, %44 in 1 : vector<64x128xbf16>, vector<64x128xbf16>, vector<64x128xbf16>, vector<64x128xbf16>, vector<64x128xbf16>, vector<64x128xbf16>, vector<64x128xbf16>, vector<64x128xbf16>, vector<64x128xbf16> -> vector<64x1152xbf16>
    %c1152 = arith.constant 1152 : index
    %c0_12 = arith.constant 0 : index
    %46 = vector.load %arg5[%c1152, %c0_12] : memref<3456x128xbf16, #tpu.memory_space<vmem>>, vector<1152x128xbf16>
    %cst_13 = arith.constant dense<0.000000e+00> : vector<64x128xf32>
    %47 = tpu.matmul %45, %46, %cst_13 {dimension_numbers = #tpu.dot_dimension_numbers<[1], [0], [0], [1], [0, 0, 1, 1], [], []>} : vector<64x1152xbf16>, vector<1152x128xbf16>, vector<64x128xf32> -> vector<64x128xf32>
    %48 = arith.addf %24, %47 : vector<64x128xf32>
    %c0_14 = arith.constant 0 : index
    %c0_15 = arith.constant 0 : index
    %c0_16 = arith.constant 0 : index
    %c0_17 = arith.constant 0 : index
    %c0_18 = arith.constant 0 : index
    %49 = vector.load %arg4[%c0_14, %c0_15, %c0_16, %c0_17, %c0_18] : memref<1x1x10x10x128xbf16, #tpu.memory_space<vmem>>, vector<1x1x10x10x128xbf16>
    %50 = vector.shape_cast %49 : vector<1x1x10x10x128xbf16> to vector<10x10x128xbf16>
    %51 = vector.extract_strided_slice %50 {offsets = [0, 0, 0], sizes = [8, 8, 128], strides = [1, 1, 1]} : vector<10x10x128xbf16> to vector<8x8x128xbf16>
    %52 = vector.shape_cast %51 : vector<8x8x128xbf16> to vector<64x128xbf16>
    %53 = vector.extract_strided_slice %50 {offsets = [0, 1, 0], sizes = [8, 8, 128], strides = [1, 1, 1]} : vector<10x10x128xbf16> to vector<8x8x128xbf16>
    %54 = vector.shape_cast %53 : vector<8x8x128xbf16> to vector<64x128xbf16>
    %55 = vector.extract_strided_slice %50 {offsets = [0, 2, 0], sizes = [8, 8, 128], strides = [1, 1, 1]} : vector<10x10x128xbf16> to vector<8x8x128xbf16>
    %56 = vector.shape_cast %55 : vector<8x8x128xbf16> to vector<64x128xbf16>
    %57 = vector.extract_strided_slice %50 {offsets = [1, 0, 0], sizes = [8, 8, 128], strides = [1, 1, 1]} : vector<10x10x128xbf16> to vector<8x8x128xbf16>
    %58 = vector.shape_cast %57 : vector<8x8x128xbf16> to vector<64x128xbf16>
    %59 = vector.extract_strided_slice %50 {offsets = [1, 1, 0], sizes = [8, 8, 128], strides = [1, 1, 1]} : vector<10x10x128xbf16> to vector<8x8x128xbf16>
    %60 = vector.shape_cast %59 : vector<8x8x128xbf16> to vector<64x128xbf16>
    %61 = vector.extract_strided_slice %50 {offsets = [1, 2, 0], sizes = [8, 8, 128], strides = [1, 1, 1]} : vector<10x10x128xbf16> to vector<8x8x128xbf16>
    %62 = vector.shape_cast %61 : vector<8x8x128xbf16> to vector<64x128xbf16>
    %63 = vector.extract_strided_slice %50 {offsets = [2, 0, 0], sizes = [8, 8, 128], strides = [1, 1, 1]} : vector<10x10x128xbf16> to vector<8x8x128xbf16>
    %64 = vector.shape_cast %63 : vector<8x8x128xbf16> to vector<64x128xbf16>
    %65 = vector.extract_strided_slice %50 {offsets = [2, 1, 0], sizes = [8, 8, 128], strides = [1, 1, 1]} : vector<10x10x128xbf16> to vector<8x8x128xbf16>
    %66 = vector.shape_cast %65 : vector<8x8x128xbf16> to vector<64x128xbf16>
    %67 = vector.extract_strided_slice %50 {offsets = [2, 2, 0], sizes = [8, 8, 128], strides = [1, 1, 1]} : vector<10x10x128xbf16> to vector<8x8x128xbf16>
    %68 = vector.shape_cast %67 : vector<8x8x128xbf16> to vector<64x128xbf16>
    %69 = tpu.concatenate %52, %54, %56, %58, %60, %62, %64, %66, %68 in 1 : vector<64x128xbf16>, vector<64x128xbf16>, vector<64x128xbf16>, vector<64x128xbf16>, vector<64x128xbf16>, vector<64x128xbf16>, vector<64x128xbf16>, vector<64x128xbf16>, vector<64x128xbf16> -> vector<64x1152xbf16>
    %c2304 = arith.constant 2304 : index
    %c0_19 = arith.constant 0 : index
    %70 = vector.load %arg5[%c2304, %c0_19] : memref<3456x128xbf16, #tpu.memory_space<vmem>>, vector<1152x128xbf16>
    %cst_20 = arith.constant dense<0.000000e+00> : vector<64x128xf32>
    %71 = tpu.matmul %69, %70, %cst_20 {dimension_numbers = #tpu.dot_dimension_numbers<[1], [0], [0], [1], [0, 0, 1, 1], [], []>} : vector<64x1152xbf16>, vector<1152x128xbf16>, vector<64x128xf32> -> vector<64x128xf32>
    %72 = arith.addf %48, %71 : vector<64x128xf32>
    %c0_21 = arith.constant 0 : index
    %c0_22 = arith.constant 0 : index
    %73 = vector.load %arg6[%c0_21, %c0_22] : memref<1x128xf32, #tpu.memory_space<vmem>>, vector<1x128xf32>
    %74 = vector.broadcast %73 : vector<1x128xf32> to vector<64x128xf32>
    %75 = arith.addf %72, %74 : vector<64x128xf32>
    %c0_23 = arith.constant 0 : index
    %c0_24 = arith.constant 0 : index
    %c0_25 = arith.constant 0 : index
    %c0_26 = arith.constant 0 : index
    %76 = vector.load %arg7[%c0_23, %c0_24, %c0_25, %c0_26] : memref<1x1x64x128xf32, #tpu.memory_space<vmem>>, vector<1x1x64x128xf32>
    %77 = vector.shape_cast %76 : vector<1x1x64x128xf32> to vector<64x128xf32>
    %78 = vector.shape_cast %75 : vector<64x128xf32> to vector<1x1x64x128xf32>
    tpu.vector_store %arg7[%c0_23, %c0_24, %c0_25, %c0_26], %78 {strides = array<i32>} : memref<1x1x64x128xf32, #tpu.memory_space<vmem>>, vector<1x1x64x128xf32>,
    %cst_27 = arith.constant dense<0.000000e+00> : vector<128xf32>
    %79 = vector.multi_reduction <add>, %75, %cst_27 [0] : vector<64x128xf32> to vector<128xf32>
    %80 = vector.shape_cast %79 : vector<128xf32> to vector<1x128xf32>
    %81 = arith.mulf %75, %75 : vector<64x128xf32>
    %cst_28 = arith.constant dense<0.000000e+00> : vector<128xf32>
    %82 = vector.multi_reduction <add>, %81, %cst_28 [0] : vector<64x128xf32> to vector<128xf32>
    %83 = vector.shape_cast %82 : vector<128xf32> to vector<1x128xf32>
    %84 = tpu.concatenate %80, %83 in 0 : vector<1x128xf32>, vector<1x128xf32> -> vector<2x128xf32>
    %c0_29 = arith.constant 0 : index
    %c0_30 = arith.constant 0 : index
    %c0_31 = arith.constant 0 : index
    %c0_32 = arith.constant 0 : index
    %85 = vector.load %arg8[%c0_29, %c0_30, %c0_31, %c0_32] : memref<1x1x2x128xf32, #tpu.memory_space<vmem>>, vector<1x1x2x128xf32>
    %86 = vector.shape_cast %85 : vector<1x1x2x128xf32> to vector<2x128xf32>
    %87 = vector.shape_cast %84 : vector<2x128xf32> to vector<1x1x2x128xf32>
    tpu.vector_store %arg8[%c0_29, %c0_30, %c0_31, %c0_32], %87 {strides = array<i32>} : memref<1x1x2x128xf32, #tpu.memory_space<vmem>>, vector<1x1x2x128xf32>,
    return
  }
  func.func @transform_0(%arg0: i32, %arg1: i32) -> (i32, i32, i32, i32, i32) {
    %c0_i32 = arith.constant 0 : i32
    %0 = arith.addi %arg1, %c0_i32 : i32
    %c0_i32_0 = arith.constant 0 : i32
    %c0_i32_1 = arith.constant 0 : i32
    %c0_i32_2 = arith.constant 0 : i32
    %c0_i32_3 = arith.constant 0 : i32
    return %arg0, %0, %c0_i32_0, %c0_i32_1, %c0_i32_2 : i32, i32, i32, i32, i32
  }
  func.func @transform_1(%arg0: i32, %arg1: i32) -> (i32, i32, i32, i32, i32) {
    %c1_i32 = arith.constant 1 : i32
    %0 = arith.addi %arg1, %c1_i32 : i32
    %c0_i32 = arith.constant 0 : i32
    %c0_i32_0 = arith.constant 0 : i32
    %c0_i32_1 = arith.constant 0 : i32
    %c0_i32_2 = arith.constant 0 : i32
    return %arg0, %0, %c0_i32, %c0_i32_0, %c0_i32_1 : i32, i32, i32, i32, i32
  }
  func.func @transform_2(%arg0: i32, %arg1: i32) -> (i32, i32, i32, i32, i32) {
    %c2_i32 = arith.constant 2 : i32
    %0 = arith.addi %arg1, %c2_i32 : i32
    %c0_i32 = arith.constant 0 : i32
    %c0_i32_0 = arith.constant 0 : i32
    %c0_i32_1 = arith.constant 0 : i32
    %c0_i32_2 = arith.constant 0 : i32
    return %arg0, %0, %c0_i32, %c0_i32_0, %c0_i32_1 : i32, i32, i32, i32, i32
  }
  func.func @transform_3(%arg0: i32, %arg1: i32) -> (i32, i32) {
    %c0_i32 = arith.constant 0 : i32
    %c0_i32_0 = arith.constant 0 : i32
    %c0_i32_1 = arith.constant 0 : i32
    return %c0_i32, %c0_i32_0 : i32, i32
  }
  func.func @transform_4(%arg0: i32, %arg1: i32) -> (i32, i32) {
    %c0_i32 = arith.constant 0 : i32
    %c0_i32_0 = arith.constant 0 : i32
    %c0_i32_1 = arith.constant 0 : i32
    return %c0_i32, %c0_i32_0 : i32, i32
  }
  func.func @transform_5(%arg0: i32, %arg1: i32) -> (i32, i32, i32, i32) {
    %c0_i32 = arith.constant 0 : i32
    %c0_i32_0 = arith.constant 0 : i32
    %c0_i32_1 = arith.constant 0 : i32
    return %arg0, %arg1, %c0_i32, %c0_i32_0 : i32, i32, i32, i32
  }
  func.func @transform_6(%arg0: i32, %arg1: i32) -> (i32, i32, i32, i32) {
    %c0_i32 = arith.constant 0 : i32
    %c0_i32_0 = arith.constant 0 : i32
    %c0_i32_1 = arith.constant 0 : i32
    return %arg0, %arg1, %c0_i32, %c0_i32_0 : i32, i32, i32, i32
  }
}

</mosaic_0001>

<bundles_post_ra>
// kernel: down_forward.5
= control target key start
LH: loop header
LB: loop body
LE: loop exit
PB: predicated region body
PF: predicated region fallthrough
CT: control target
= control target key end

     0   :  { %s491_s6 = smov 0   ;;  %s493_s7 = smov 0   ;;  %s601_s0 = inlined_call_operand.vmem [shape: f32[2,16,8,2,8,8], index: 0, kind: input, shape index: {}]   ;;  %s602_s1 = inlined_call_operand.vmem [shape: f32[2,8,8,8,4], index: 1, kind: output, shape index: {}]  }
   0x1   :  { %s495_s8 = smov 0   ;;  %s497_s9 = smov 0  }
   0x2   :  { %s499_s10 = smov 0  }
   0x3 LB: > { %s20_s11 = sadd.s32 1, %s470_s8  ;;  %s23_s12 = sadd.s32 1, %s474_s9  ;;  %s478_s10 = sphi %s499_s10, %s11_s10   ;;  %s474_s9 = sphi %s497_s9, %s606_s9   ;;  %s470_s8 = sphi %s495_s8, %s605_s8   ;;  %s466_s7 = sphi %s493_s7, %s604_s7   ;;  %s462_s6 = sphi %s491_s6, %s603_s6  }
   0x4   : > { %p21_p0 = scmp.ge.s32.totalorder %s20_s11, 8  ;;  %p365_p1 = scmp.ge.s32.totalorder %s478_s10, 1 }
   0x5   : > { %p109_p2 = scmp.lt.s32.totalorder %s478_s10, 17 }
   0x6   : > { %s608_s11 = smov (%p21_p0, %s20_s11), 0  ;;  %s610_s12 = smov (!%p21_p0, %s23_s12), %s474_s9 }
   0x7   : > { %p110_p3 = pnand %p365_p1, %p109_p2  ;;  %p25_p4 = scmp.ge.s32.totalorder %s610_s12, 2 }
   0x8   : > { %s366_s13 = sshll.u32 (!%p110_p3), %s462_s6, 1  ;;  %p139_p5 = scmp.lt.s32.totalorder (!%p110_p3), %s466_s7, 1  ;;  %vm257_vm0 = vcmask (!%p110_p3), 31744  }
   0x9   : > { %s612_s12 = smov (%p25_p4, %s610_s12), 0  ;;  %113 = sbr.rel (%p110_p3) target bundleno = 159 (0x9f), region = 24 }
   0xa   : > { %p141_p6 = scmp.lt.s32.totalorder (!%p110_p3), %s366_s13, 15  ;;  %s480_s21 = smov (!%p110_p3), 124  }
   0xb   : > { %p151_p7 = scmp.lt.s32.totalorder (!%p110_p3), %s462_s6, 7 }
  0x10   : > { %s614_s7 = smov (!%p139_p5, %s466_s7), 1  ;;  %s616_s13 = smov (!%p141_p6, %s366_s13), 15 }
  0x11   : > { %s368_s14 = sshll.u32 %s614_s7, 8  ;;  %s367_s15 = sshll.u32 %s616_s13, 4 }
  0x12   : > { %s145_s16 = sadd.s32 %s368_s14, %s367_s15  ;;  %s618_s6 = smov (!%p151_p7, %s462_s6), 7 }
  0x13   : > { %s369_s17 = sshll.u32 %s145_s16, 3  ;;  %s370_s22 = sshll.u32 %s618_s6, 3 }
  0x14   : > { %s530_s20 = scalar_lea.vmem %s601_s0, %s369_s17  ;;  %s371_s23 = sshll.u32 %s614_s7, 6 }
  0x15   : > { %v160_v0 = vld [vmem:[%s530_s20 + $0x20] sm:$0xff]  ;;  %v383_v2 = vld [vmem:[%s530_s20 + $0x28] sm:$0xff]  ;;  %v161_v11 = vld [vmem:[%s530_s20 + $0x30] sm:$0xff]  ;;  %s155_s24 = sadd.s32 %s371_s23, %s370_s22 }
  0x16   : > { %v375_v1 = vld [vmem:[%s530_s20 + $0xa0] sm:$0xff]  ;;  %v391_v4 = vld [vmem:[%s530_s20 + $0xa8] sm:$0xff]  ;;  %v376_v13 = vld [vmem:[%s530_s20 + $0xb0] sm:$0xff]  ;;  %s372_s25 = sshll.u32 %s155_s24, 3 }
  0x17   : > { %v177_v3 = vmax.f32 %v160_v0, %v375_v1  ;;  %v158_v5 = vld [vmem:[%s530_s20] sm:$0xff]  ;;  %v203_v7 = vmax.f32 %v383_v2, %v391_v4  ;;  %v381_v9 = vld [vmem:[%s530_s20 + $0x8] sm:$0xff]  ;;  %v384_v14 = vld [vmem:[%s530_s20 + $0x38] sm:$0xff]  ;;  %v178_v17 = vmax.f32 %v161_v11, %v376_v13  ;;  %s157_s28 = scalar_lea.vmem %s602_s1, %s372_s25 }
  0x18   : > { %v373_v6 = vld [vmem:[%s530_s20 + $0x80] sm:$0xff]  ;;  %v389_v10 = vld [vmem:[%s530_s20 + $0x88] sm:$0xff]  ;;  %v392_v15 = vld [vmem:[%s530_s20 + $0xb8] sm:$0xff] }
  0x19   : > { %v175_v8 = vmax.f32 %v158_v5, %v373_v6  ;;  %v201_v12 = vmax.f32 %v381_v9, %v389_v10  ;;  %v211_v16 = vmax.f32 %v177_v3, %v203_v7  ;;  %v204_v18 = vmax.f32 %v384_v14, %v392_v15  ;;  %v159_v19 = vld [vmem:[%s530_s20 + $0x10] sm:$0xff]  ;;  %v382_v21 = vld [vmem:[%s530_s20 + $0x18] sm:$0xff]  ;;  %v162_v32 = vld [vmem:[%s530_s20 + $0x40] sm:$0xff] }
  0x1a   : > { %v374_v20 = vld [vmem:[%s530_s20 + $0x90] sm:$0xff]  ;;  %v390_v24 = vld [vmem:[%s530_s20 + $0x98] sm:$0xff]  ;;  %v377_v34 = vld [vmem:[%s530_s20 + $0xc0] sm:$0xff] }
  0x1b   : > { %v209_v22 = vmax.f32 %v175_v8, %v201_v12  ;;  %v176_v23 = vmax.f32 %v159_v19, %v374_v20  ;;  %v163_v25 = vld [vmem:[%s530_s20 + $0x50] sm:$0xff]  ;;  %229 = vrot.lane.b32.xlu1 %v211_v16, %s480_s21  ;;  %v212_v27 = vmax.f32 %v178_v17, %v204_v18  ;;  %v202_v28 = vmax.f32 %v382_v21, %v390_v24  ;;  %v386_v30 = vld [vmem:[%s530_s20 + $0x58] sm:$0xff]  ;;  %v385_v35 = vld [vmem:[%s530_s20 + $0x48] sm:$0xff] }
  0x1c   : > { %v378_v26 = vld [vmem:[%s530_s20 + $0xd0] sm:$0xff]  ;;  %v394_v31 = vld [vmem:[%s530_s20 + $0xd8] sm:$0xff]  ;;  %v393_v36 = vld [vmem:[%s530_s20 + $0xc8] sm:$0xff]  ;;  %v179_v38 = vmax.f32 %v162_v32, %v377_v34 }
  0x1d   : > { %v180_v29 = vmax.f32 %v163_v25, %v378_v26  ;;  %225 = vrot.lane.b32.xlu0 %v209_v22, %s480_s21  ;;  %v206_v33 = vmax.f32 %v386_v30, %v394_v31  ;;  %v210_v37 = vmax.f32 %v176_v23, %v202_v28  ;;  %v205_v39 = vmax.f32 %v385_v35, %v393_v36  ;;  %v165_v40 = vld [vmem:[%s530_s20 + $0x70] sm:$0xff]  ;;  %v388_v42 = vld [vmem:[%s530_s20 + $0x78] sm:$0xff]  ;;  %v164_v44 = vld [vmem:[%s530_s20 + $0x60] sm:$0xff] }
  0x1e   : > { %v380_v41 = vld [vmem:[%s530_s20 + $0xf0] sm:$0xff]  ;;  %v396_v43 = vld [vmem:[%s530_s20 + $0xf8] sm:$0xff]  ;;  %v379_v45 = vld [vmem:[%s530_s20 + $0xe0] sm:$0xff] }
  0x1f   : > { %231 = vrot.lane.b32.xlu1 %v212_v27, %s480_s21  ;;  %v214_v46 = vmax.f32 %v180_v29, %v206_v33  ;;  %v182_v47 = vmax.f32 %v165_v40, %v380_v41  ;;  %v208_v48 = vmax.f32 %v388_v42, %v396_v43  ;;  %v387_v49 = vld [vmem:[%s530_s20 + $0x68] sm:$0xff]  ;;  %v213_v51 = vmax.f32 %v179_v38, %v205_v39 }
  0x20   : > { %v395_v50 = vld [vmem:[%s530_s20 + $0xe8] sm:$0xff]  ;;  %v181_v52 = vmax.f32 %v164_v44, %v379_v45 }
  0x21   : > { %227 = vrot.lane.b32.xlu0 %v210_v37, %s480_s21  ;;  %v207_v53 = vmax.f32 %v387_v49, %v395_v50  ;;  %v216_v54 = vmax.f32 %v182_v47, %v208_v48 }
  0x23   : > { %235 = vrot.lane.b32.xlu1 %v214_v46, %s480_s21  ;;  %v215_v55 = vmax.f32 %v181_v52, %v207_v53 }
  0x25   : > { %233 = vrot.lane.b32.xlu0 %v213_v51, %s480_s21 }
  0x27   : > { %239 = vrot.lane.b32.xlu1 %v216_v54, %s480_s21 }
  0x29   : > { %237 = vrot.lane.b32.xlu0 %v215_v55, %s480_s21 }
  0x8d   : > { %v230_v56 = vpop.permute.xlu1 %229 }
  0x8e   : > { %v251_v57 = vmax.f32 %v211_v16, %v230_v56 }
  0x8f   : > { %v226_v58 = vpop.permute.xlu0 %225 }
  0x90   : > { %v249_v59 = vmax.f32 %v209_v22, %v226_v58  ;;  %260 = vst.msk [vmem:[%s157_s28 + $0x10] sm:$0xff] %vm257_vm0, %v251_v57 }
  0x91   : > { %v232_v60 = vpop.permute.xlu1 %231 }
  0x92   : > { %258 = vst.msk [vmem:[%s157_s28] sm:$0xff] %vm257_vm0, %v249_v59  ;;  %v252_v61 = vmax.f32 %v212_v27, %v232_v60 }
  0x93   : > { %v228_v62 = vpop.permute.xlu0 %227 }
  0x94   : > { %v250_v63 = vmax.f32 %v210_v37, %v228_v62  ;;  %261 = vst.msk [vmem:[%s157_s28 + $0x18] sm:$0xff] %vm257_vm0, %v252_v61 }
  0x95   : > { %v236_v0 = vpop.permute.xlu1 %235 }
  0x96   : > { %259 = vst.msk [vmem:[%s157_s28 + $0x8] sm:$0xff] %vm257_vm0, %v250_v63  ;;  %v254_v1 = vmax.f32 %v214_v46, %v236_v0 }
  0x97   : > { %v234_v2 = vpop.permute.xlu0 %233 }
  0x98   : > { %v253_v3 = vmax.f32 %v213_v51, %v234_v2  ;;  %263 = vst.msk [vmem:[%s157_s28 + $0x28] sm:$0xff] %vm257_vm0, %v254_v1 }
  0x99   : > { %v240_v4 = vpop.permute.xlu1 %239 }
  0x9a   : > { %262 = vst.msk [vmem:[%s157_s28 + $0x20] sm:$0xff] %vm257_vm0, %v253_v3  ;;  %v256_v5 = vmax.f32 %v216_v54, %v240_v4 }
  0x9b   : > { %v238_v6 = vpop.permute.xlu0 %237 }
  0x9c   : > { %v255_v7 = vmax.f32 %v215_v55, %v238_v6  ;;  %265 = vst.msk [vmem:[%s157_s28 + $0x38] sm:$0xff] %vm257_vm0, %v256_v5 }
  0x9e   : > { %264 = vst.msk [vmem:[%s157_s28 + $0x30] sm:$0xff] %vm257_vm0, %v255_v7 }
  0x9f PF: > { %s11_s10 = sadd.s32 1, %s478_s10   ;;  %s603_s6 = smov %s470_s8 }
  0xa0   : > { %p8_p8 = scmp.ge.s32.totalorder %s11_s10, 18   ;;  %s604_s7 = smov %s474_s9 }
  0xa1   : > { %s605_s8 = smov %s608_s11  ;;  %s606_s9 = smov %s612_s12 }
  0xa2   :  { %10 = sbr.rel (!%p8_p8) target bundleno = 3 (0x3), region = 57 }

// kernel: down_forward.7
= control target key start
LH: loop header
LB: loop body
LE: loop exit
PB: predicated region body
PF: predicated region fallthrough
CT: control target
= control target key end

     0   :  { %s542_s12 = smov 0   ;;  %s544_s13 = smov 0   ;;  %s603_s0 = inlined_call_operand.vmem [shape: f32[2,8,64,128], index: 0, kind: input, shape index: {}]   ;;  %s604_s1 = inlined_call_operand.vmem [shape: f32[1,128], index: 1, kind: input, shape index: {}]   ;;  %s605_s2 = inlined_call_operand.vmem [shape: f32[1,128], index: 2, kind: input, shape index: {}]   ;;  %s606_s3 = inlined_call_operand.vmem [shape: bf16[2,8,64,128], index: 3, kind: output, shape index: {}]  }
   0x1   :  { %s546_s14 = smov 0   ;;  %s548_s15 = smov 0  }
   0x2   :  { %s550_s16 = smov 0  }
   0x3 LB: > { %s22_s17 = sadd.s32 1, %s512_s14  ;;  %s25_s18 = sadd.s32 1, %s516_s15  ;;  %s520_s16 = sphi %s550_s16, %s13_s16   ;;  %s516_s15 = sphi %s548_s15, %s610_s15   ;;  %s512_s14 = sphi %s546_s14, %s609_s14   ;;  %s508_s13 = sphi %s544_s13, %s608_s13   ;;  %s504_s12 = sphi %s542_s12, %s607_s12  }
   0x4   : > { %p23_p0 = scmp.ge.s32.totalorder %s22_s17, 8  ;;  %p392_p1 = scmp.ge.s32.totalorder %s520_s16, 1 }
   0x5   : > { %p157_p2 = scmp.lt.s32.totalorder %s520_s16, 17 }
   0x6   : > { %s612_s17 = smov (%p23_p0, %s22_s17), 0  ;;  %s614_s18 = smov (!%p23_p0, %s25_s18), %s516_s15 }
   0x7   : > { %p158_p3 = pnand %p392_p1, %p157_p2  ;;  %p27_p4 = scmp.ge.s32.totalorder %s614_s18, 2 }
   0x8   : > { %p189_p5 = scmp.lt.s32.totalorder (!%p158_p3), %s508_s13, 1  ;;  %p191_p6 = scmp.lt.s32.totalorder (!%p158_p3), %s504_s12, 7  ;;  %v399_v0 = vld [vmem:[%s604_s1] ss:$0 sm:$0xff] (!%p158_p3) }
   0x9   : > { %s616_s18 = smov (%p27_p4, %s614_s18), 0  ;;  %161 = sbr.rel (%p158_p3) target bundleno = 34 (0x22), region = 32 }
   0xa   : > { %v400_v1 = vld [vmem:[%s605_s2] ss:$0 sm:$0xff] (!%p158_p3) }
  0x10   : > { %s618_s13 = smov (!%p189_p5, %s508_s13), 1  ;;  %s620_s12 = smov (!%p191_p6, %s504_s12), 7 }
  0x11   : > { %s394_s19 = sshll.u32 %s618_s13, 6  ;;  %s393_s20 = sshll.u32 %s620_s12, 3 }
  0x12   : > { %s572_s21 = sadd.s32 %s394_s19, %s393_s20 }
  0x13   : > { %s395_s22 = sshll.u32 %s572_s21, 3  ;;  %s398_s30 = sshll.u32 %s572_s21, 2 }
  0x14   : > { %s197_s27 = scalar_lea.vmem %s603_s0, %s395_s22  ;;  %s206_s6 = scalar_lea.vmem %s606_s3, %s398_s30 }
  0x15   : > { %v207_v2 = vld [vmem:[%s197_s27] sm:$0xff]  ;;  %v208_v3 = vld [vmem:[%s197_s27 + $0x8] sm:$0xff]  ;;  %v209_v4 = vld [vmem:[%s197_s27 + $0x10] sm:$0xff] }
  0x16   : > { %v222_v5 = vmul.f32 %v399_v0, %v207_v2  ;;  %v223_v6 = vmul.f32 %v399_v0, %v208_v3  ;;  %v210_v7 = vld [vmem:[%s197_s27 + $0x18] sm:$0xff]  ;;  %v224_v8 = vmul.f32 %v399_v0, %v209_v4  ;;  %v211_v9 = vld [vmem:[%s197_s27 + $0x20] sm:$0xff]  ;;  %v212_v10 = vld [vmem:[%s197_s27 + $0x28] sm:$0xff] }
  0x17   : > { %v225_v11 = vmul.f32 %v399_v0, %v210_v7  ;;  %v226_v12 = vmul.f32 %v399_v0, %v211_v9  ;;  %v227_v13 = vmul.f32 %v399_v0, %v212_v10  ;;  %v213_v14 = vld [vmem:[%s197_s27 + $0x30] sm:$0xff]  ;;  %v214_v15 = vld [vmem:[%s197_s27 + $0x38] sm:$0xff] }
  0x18   : > { %v237_v16 = vadd.f32 %v400_v1, %v222_v5  ;;  %v238_v17 = vadd.f32 %v400_v1, %v223_v6  ;;  %v239_v18 = vadd.f32 %v400_v1, %v224_v8  ;;  %v228_v19 = vmul.f32 %v399_v0, %v213_v14 }
  0x19   : > { %v240_v20 = vadd.f32 %v400_v1, %v225_v11  ;;  %v241_v21 = vadd.f32 %v400_v1, %v226_v12  ;;  %v242_v22 = vadd.f32 %v400_v1, %v227_v13  ;;  %v229_v23 = vmul.f32 %v399_v0, %v214_v15 }
  0x1a   : > { %v245_v24 = vmax.f32 %v237_v16, 0.0  ;;  %v246_v25 = vmax.f32 %v238_v17, 0.0  ;;  %v247_v26 = vmax.f32 %v239_v18, 0.0  ;;  %v243_v27 = vadd.f32 %v400_v1, %v228_v19 }
  0x1b   : > { %v248_v28 = vmax.f32 %v240_v20, 0.0  ;;  %v249_v29 = vmax.f32 %v241_v21, 0.0  ;;  %v250_v30 = vmax.f32 %v242_v22, 0.0  ;;  %v244_v31 = vadd.f32 %v400_v1, %v229_v23 }
  0x1c   : > { %v422_v32 = vpack.c.bf16 %v246_v25, %v245_v24  ;;  %v251_v33 = vmax.f32 %v243_v27, 0.0 }
  0x1d   : > { %v427_v34 = vpack.c.bf16 %v248_v28, %v247_v26  ;;  %v432_v35 = vpack.c.bf16 %v250_v30, %v249_v29  ;;  %v252_v36 = vmax.f32 %v244_v31, 0.0 }
  0x1e   : > { %423 = vst [vmem:[%s206_s6] sm:$0xff] %v422_v32  }
  0x1f   : > { %439 = vst [vmem:[%s206_s6 + $0x8] sm:$0xff] %v427_v34   ;;  %440 = vst [vmem:[%s206_s6 + $0x10] sm:$0xff] %v432_v35   ;;  %v437_v37 = vpack.c.bf16 %v252_v36, %v251_v33 }
  0x21   : > { %441 = vst [vmem:[%s206_s6 + $0x18] sm:$0xff] %v437_v37  }
  0x22 PF: > { %s13_s16 = sadd.s32 1, %s520_s16   ;;  %s607_s12 = smov %s512_s14 }
  0x23   : > { %p10_p7 = scmp.ge.s32.totalorder %s13_s16, 18   ;;  %s608_s13 = smov %s516_s15 }
  0x24   : > { %s609_s14 = smov %s612_s17  ;;  %s610_s15 = smov %s616_s18 }
  0x25   :  { %12 = sbr.rel (!%p10_p7) target bundleno = 3 (0x3), region = 62 }

// kernel: down_forward.6
= control target key start
LH: loop header
LB: loop body
LE: loop exit
PB: predicated region body
PF: predicated region fallthrough
CT: control target
= control target key end

     0   :  { %s2593_s21 = smov 0   ;;  %s2595_s22 = smov 0   ;;  %s3672_s0 = inlined_call_operand.vmem [shape: bf16[2,10,10,10,4], index: 0, kind: input, shape index: {}, may-alias: {0,1,2}]   ;;  %s3673_s1 = inlined_call_operand.vmem [shape: bf16[2,10,10,10,4], index: 1, kind: input, shape index: {}, may-alias: {0,1,2}]   ;;  %s3674_s2 = inlined_call_operand.vmem [shape: bf16[2,10,10,10,4], index: 2, kind: input, shape index: {}, may-alias: {0,1,2}]   ;;  %s3675_s3 = inlined_call_operand.vmem [shape: bf16[108,128], index: 3, kind: input, shape index: {}]   ;;  %s3676_s4 = inlined_call_operand.vmem [shape: f32[1,128], index: 4, kind: input, shape index: {}]   ;;  %s3677_s5 = inlined_call_operand.vmem [shape: f32[2,8,64,128], index: 5, kind: output, shape index: {0}]   ;;  %s3678_s6 = inlined_call_operand.vmem [shape: f32[2,8,2,128], index: 6, kind: output, shape index: {1}]  }
   0x1   :  { %s2597_s23 = smov 0   ;;  %s2599_s24 = smov 0  }
   0x2   :  { %s2601_s25 = smov 0  }
   0x3 LB: > { %s26_s26 = sadd.s32 1, %s2540_s23  ;;  %s29_s27 = sadd.s32 1, %s2544_s24  ;;  %s2548_s25 = sphi %s2601_s25, %s17_s25   ;;  %s2544_s24 = sphi %s2599_s24, %s3686_s24   ;;  %s2540_s23 = sphi %s2597_s23, %s3685_s23   ;;  %s2536_s22 = sphi %s2595_s22, %s3684_s22   ;;  %s2532_s21 = sphi %s2593_s21, %s3683_s21  }
   0x4   : > { %p27_p0 = scmp.ge.s32.totalorder %s26_s26, 8  ;;  %p2185_p1 = scmp.ge.s32.totalorder %s2548_s25, 1 }
   0x5   : > { %p277_p2 = scmp.lt.s32.totalorder %s2548_s25, 17 }
   0x6   : > { %s3688_s26 = smov (%p27_p0, %s26_s26), 0  ;;  %s3690_s27 = smov (!%p27_p0, %s29_s27), %s2544_s24 }
   0x7   : > { %p278_p3 = pnand %p2185_p1, %p277_p2  ;;  %p31_p4 = scmp.ge.s32.totalorder %s3690_s27, 2 }
   0x8   : > { %p343_p5 = scmp.lt.s32.totalorder (!%p278_p3), %s2536_s22, 1  ;;  %p345_p6 = scmp.lt.s32.totalorder (!%p278_p3), %s2532_s21, 9  ;;  %vm543_vm0 = vcmask (!%p278_p3), 1042432   ;;  %vm544_vm1 = vcmask (!%p278_p3), 1046532   ;;  %vm412_vm3 = vsmask.f32 (!%p278_p3), 3328 }
   0x9   : > { %s3692_s27 = smov (%p31_p4, %s3690_s27), 0  ;;  %281 = sbr.rel (%p278_p3) target bundleno = 577 (0x241), region = 40 }
   0xa   : > { %vm2638_vm2 = vmor (!%p278_p3), %vm543_vm0, %vm544_vm1  ;;  %s352_s12 = sadd.s32 (!%p278_p3), 1, %s2532_s21  ;;  %vm413_vm4 = vsmask.f32 (!%p278_p3), 7440  ;;  %s2550_s13 = smov (!%p278_p3), 12   ;;  %vm1264_vm6 = vcmask (!%p278_p3), 1041408   ;;  %vm1247_vm7 = vcmask (!%p278_p3), 1045504  }
   0xb   : > { %p355_p7 = scmp.lt.s32.totalorder (!%p278_p3), %s352_s12, 9  ;;  %s2551_s14 = smov (!%p278_p3), 24   ;;  %vm2708_vm5 = vmor (!%p278_p3), %vm412_vm3, %vm413_vm4  ;;  %vm739_vm8 = vcmask (!%p278_p3), 31744   ;;  %vm752_vm9 = vcmask (!%p278_p3), 64512   ;;  %vm761_vm10 = vcmask (!%p278_p3), 97280   ;;  %vm770_vm11 = vcmask (!%p278_p3), 130048  }
   0xc   : > { %s2552_s15 = smov (!%p278_p3), 8   ;;  %s2553_s19 = smov (!%p278_p3), 20   ;;  %vm779_vm12 = vcmask (!%p278_p3), 162816   ;;  %vm788_vm13 = vcmask (!%p278_p3), 195584   ;;  %vm797_vm14 = vcmask (!%p278_p3), 228352   ;;  %vm806_vm15 = vcmask (!%p278_p3), 261120  }
   0xd   : > { %s2554_s9 = smov (!%p278_p3), 4   ;;  %s363_s20 = sadd.s32 (!%p278_p3), 2, %s2532_s21  ;;  %vm1255_vm0 = vcmask (!%p278_p3), 293888   ;;  %vm1994_vm1 = vcmask (!%p278_p3), 1040384  }
   0xe   : > { %p366_p8 = scmp.lt.s32.totalorder (!%p278_p3), %s363_s20, 9  ;;  %p376_p9 = scmp.lt.s32.totalorder (!%p278_p3), %s2532_s21, 7 }
  0x10   : > { %s3694_s22 = smov (!%p343_p5, %s2536_s22), 1  ;;  %s3696_s12 = smov (!%p355_p7, %s352_s12), 9 }
  0x11   : > { %s346_s28 = scalar_select %p345_p6, %s2532_s21, 9 }
  0x12   : > { %s2630_s29 = smul.u32 200, %s3694_s22  ;;  %s3698_s20 = smov (!%p366_p8, %s363_s20), 9 }
  0x13   : > { %s2418_s30 = smul.u32 20, %s346_s28  ;;  %s3700_s21 = smov (!%p376_p9, %s2532_s21), 7 }
  0x14   : > { %s2420_s16 = smul.u32 20, %s3696_s12 }
  0x15   : > { %s349_s7 = sadd.s32 %s2630_s29, %s2418_s30  ;;  %s2421_s28 = smul.u32 20, %s3698_s20 }
  0x16   : > { %s2186_s8 = sshll.u32 %s349_s7, 2  ;;  %s359_s17 = sadd.s32 %s2420_s16, %s2630_s29 }
  0x17   : > { %s2636_s11 = scalar_lea.vmem %s3672_s0, %s2186_s8  ;;  %s2187_s18 = sshll.u32 %s359_s17, 2 }
  0x18   : > { %v2644_v1 = vld [vmem:[%s2636_s11 + $0x18] sm:$0xf]  ;;  %v2647_v2 = vld [vmem:[%s2636_s11 + $0x20] sm:$0xf]  ;;  %v394_v3 = vld [vmem:[%s2636_s11 + $0x8] sm:$0xf]  ;;  %s2721_s30 = scalar_lea.vmem %s3673_s1, %s2187_s18  ;;  %s370_s7 = sadd.s32 %s2421_s28, %s2630_s29 }
  0x19   : > { %v2217_v4 = vcombine.low %v2644_v1, %v2647_v2  ;;  %v2653_v5 = vld [vmem:[%s2636_s11 + $0x10] sm:$0xf]  ;;  %v392_v6 = vld [vmem:[%s2636_s11] sm:$0xf]  ;;  %v393_v7 = vld [vmem:[%s2636_s11 + $0x4] sm:$0x1] }
  0x1a   : > { %v2216_v8 = vcombine.low %v394_v3, %v2653_v5  ;;  %v2660_v9 = vcombine.low %v2653_v5, %v2644_v1  ;;  %v395_v10 = vld [vmem:[%s2636_s11 + $0xc] sm:$0x1]  ;;  %v2194_v11 = vrot.slane %v392_v6, 9  ;;  %v548_v12 = vrot.slane %v393_v7, 5  ;;  %v397_v13 = vld [vmem:[%s2636_s11 + $0x14] sm:$0x1] }
  0x1b   : > { %677 = vrot.lane.b32.xlu1 %v2217_v4, %s2550_s13  ;;  %v2195_v14 = vrot.slane %v394_v3, 9  ;;  %v552_v15 = vrot.slane %v395_v10, 5  ;;  %v2196_v16 = vrot.slane %v2653_v5, 9  ;;  %v556_v17 = vrot.slane %v397_v13, 5  ;;  %v399_v18 = vld [vmem:[%s2636_s11 + $0x1c] sm:$0x1] }
  0x1c   : > { %675 = vrot.lane.b32.xlu0 %v2216_v8, %s2550_s13  ;;  %v549_v19 = vsel %vm2638_vm2, %v2194_v11, %v548_v12  ;;  %v2197_v20 = vrot.slane %v2644_v1, 9  ;;  %v560_v21 = vrot.slane %v399_v18, 5  ;;  %v2672_v22 = vld [vmem:[%s2636_s11 + $0x24] sm:$0x1]  ;;  %v2198_v23 = vrot.slane %v2647_v2, 9  ;;  %s2555_s16 = smov 16  }
  0x1d   : > { %v553_v24 = vsel %vm2638_vm2, %v2195_v14, %v552_v15  ;;  %v557_v25 = vsel %vm2638_vm2, %v2196_v16, %v556_v17  ;;  %v564_v26 = vrot.slane %v2672_v22, 5  ;;  %v416_v27 = vshrl.u32 %v392_v6, 16  ;;  %v2685_v32 = vld [vmem:[%s2636_s11 + $0x28] sm:$0xf]  ;;  %v2728_v8 = vld [vmem:[%s2636_s11 + $0x2c] sm:$0x1] }
  0x1e   : > { %v2212_v28 = vcombine.low %v549_v19, %v553_v24  ;;  %v2224_v29 = vcombine.low %v553_v24, %v557_v25  ;;  %v561_v30 = vsel %vm2638_vm2, %v2197_v20, %v560_v21  ;;  %v419_v31 = vshll.u32 %v392_v6, 16  ;;  %v2735_v14 = vld [vmem:[%s2721_s30] sm:$0xf]  ;;  %v2739_v17 = vld [vmem:[%s2721_s30 + $0x4] sm:$0x1]  ;;  %s2556_s17 = smov 28  }
  0x1f   : > { %v2689_v33 = vcombine.low %v557_v25, %v561_v30  ;;  %v2693_v34 = vsel %vm2638_vm2, %v2198_v23, %v564_v26  ;;  %v418_v35 = vrot.slane %v416_v27, 4  ;;  %v425_v36 = vshll.u32 %v393_v7, 16  ;;  %v2749_v26 = vld [vmem:[%s2721_s30 + $0x8] sm:$0xf]  ;;  %s2557_s18 = smov 32   ;;  %s2188_s8 = sshll.u32 %s370_s7, 2 }
  0x20   : > { %711 = vrot.lane.b32.xlu0 %v2660_v9, %s2551_s14  ;;  %662 = vrot.lane.b32.xlu1 %v2212_v28, %s2552_s15  ;;  %v2225_v37 = vcombine.low %v561_v30, %v2693_v34  ;;  %v421_v38 = vrot.slane %v419_v31, 5  ;;  %v430_v39 = vshrl.u32 %v394_v3, 16  ;;  %v433_v40 = vshll.u32 %v394_v3, 16  ;;  %v2757_v30 = vld [vmem:[%s2721_s30 + $0xc] sm:$0x1]  ;;  %s2963_s12 = scalar_lea.vmem %s3674_s2, %s2188_s8 }
  0x21   : > { %v427_v41 = vrot.slane %v425_v36, 5  ;;  %v439_v42 = vshll.u32 %v395_v10, 16  ;;  %v2701_v43 = vcombine.low %v2647_v2, %v2685_v32  ;;  %v444_v44 = vshrl.u32 %v2653_v5, 16 }
  0x22   : > { %v422_v45 = vor.u32 %v421_v38, %v418_v35  ;;  %v432_v46 = vrot.slane %v430_v39, 4  ;;  %v435_v47 = vrot.slane %v433_v40, 5  ;;  %v447_v48 = vshll.u32 %v2653_v5, 16 }
  0x23   : > { %v441_v50 = vrot.slane %v439_v42, 5  ;;  %v446_v51 = vrot.slane %v444_v44, 4  ;;  %v453_v52 = vshll.u32 %v397_v13, 16  ;;  %v458_v53 = vshrl.u32 %v2644_v1, 16 }
  0x24   : > { %701 = vrot.lane.b32.xlu0 %v2224_v29, %s2553_s19  ;;  %664 = vrot.lane.b32.xlu1 %v2689_v33, %s2552_s15  ;;  %v423_v54 = vrot.slane %v422_v45, 4  ;;  %v436_v55 = vor.u32 %v435_v47, %v432_v46  ;;  %v449_v56 = vrot.slane %v447_v48, 5  ;;  %v461_v57 = vshll.u32 %v2644_v1, 16  ;;  %v2764_v45 = vld [vmem:[%s2636_s11 + $0x30] sm:$0xf] }
  0x25   : > { %v455_v58 = vrot.slane %v453_v52, 5  ;;  %v460_v59 = vrot.slane %v458_v53, 4  ;;  %v467_v60 = vshll.u32 %v399_v18, 16  ;;  %v472_v61 = vshrl.u32 %v2647_v2, 16 }
  0x26   : > { %v428_v62 = vsel %vm2708_vm5, %v423_v54, %v427_v41  ;;  %v437_v63 = vrot.slane %v436_v55, 4  ;;  %v450_v3 = vor.u32 %v449_v56, %v446_v51  ;;  %v463_v4 = vrot.slane %v461_v57, 5  ;;  %v2772_v55 = vld [vmem:[%s2636_s11 + $0x34] sm:$0x1]  ;;  %v2775_v56 = vld [vmem:[%s2636_s11 + $0x38] sm:$0xf] }
  0x27   : > { %v469_v5 = vrot.slane %v467_v60, 5  ;;  %v474_v1 = vrot.slane %v472_v61, 4  ;;  %v475_v6 = vshll.u32 %v2647_v2, 16  ;;  %v481_v7 = vshll.u32 %v2672_v22, 16  ;;  %v2488_v22 = vld [vmem:[%s3675_s3] sm:$0xff]   ;;  %v2490_v61 = vld [vmem:[%s3675_s3 + $0x8] sm:$0xff]  }
  0x28   : > { %703 = vrot.lane.b32.xlu1 %v2225_v37, %s2553_s19  ;;  %v442_v10 = vsel %vm2708_vm5, %v437_v63, %v441_v50  ;;  %v451_v11 = vrot.slane %v450_v3, 4  ;;  %v464_v12 = vor.u32 %v463_v4, %v460_v59  ;;  %v486_v13 = vshrl.u32 %v2685_v32, 16  ;;  %2364 = vmatprep.subr.bf16.mxu0 %v2488_v22  ;;  %v2789_v4 = vld [vmem:[%s2636_s11 + $0x3c] sm:$0x1] }
  0x29   : > { %v2208_v15 = vcombine.low %v428_v62, %v442_v10  ;;  %v477_v16 = vrot.slane %v475_v6, 5  ;;  %v489_v2 = vshll.u32 %v2685_v32, 16  ;;  %v495_v21 = vshll.u32 %v2728_v8, 16  ;;  %2365 = vmatpush3.bf16.msra.mxu0 %v2488_v22 }
  0x2a   : > { %v456_v18 = vsel %vm2708_vm5, %v451_v11, %v455_v58  ;;  %v465_v19 = vrot.slane %v464_v12, 4  ;;  %v488_v20 = vrot.slane %v486_v13, 4  ;;  %v483_v24 = vrot.slane %v481_v7, 5  ;;  %2366 = vmatprep.subr.bf16.mxu0 %v2490_v61 }
  0x2b   : > { %642 = vrot.lane.b32.xlu0 %v2208_v15, %s2554_s9  ;;  %v478_v23 = vor.u32 %v477_v16, %v474_v1  ;;  %v491_v25 = vrot.slane %v489_v2, 5  ;;  %v841_v27 = vshrl.u32 %v2735_v14, 16  ;;  %v497_v29 = vrot.slane %v495_v21, 5  ;;  %v2802_v2 = vld [vmem:[%s2721_s30 + $0x10] sm:$0xf] }
  0x2c   : > { %713 = vrot.lane.b32.xlu1 %v2701_v43, %s2551_s14  ;;  %v470_v28 = vsel %vm2708_vm5, %v465_v19, %v469_v5  ;;  %v844_v31 = vshll.u32 %v2735_v14, 16  ;;  %v850_v35 = vshll.u32 %v2739_v17, 16  ;;  %v2220_v40 = vcombine.low %v442_v10, %v456_v18  ;;  %v2811_v21 = vld [vmem:[%s2721_s30 + $0x18] sm:$0xf] }
  0x2d   : > { %v2209_v36 = vcombine.low %v456_v18, %v470_v28  ;;  %v479_v37 = vrot.slane %v478_v23, 4  ;;  %v492_v38 = vor.u32 %v491_v25, %v488_v20  ;;  %v843_v39 = vrot.slane %v841_v27, 4  ;;  %2367 = vmatpush3.bf16.msra.mxu0 %v2490_v61  ;;  %v2808_v20 = vld [vmem:[%s2721_s30 + $0x14] sm:$0x1] }
  0x2e   : > { %v846_v41 = vrot.slane %v844_v31, 5  ;;  %v855_v42 = vshrl.u32 %v2749_v26, 16  ;;  %v858_v44 = vshll.u32 %v2749_v26, 16  ;;  %v864_v48 = vshll.u32 %v2757_v30, 16 }
  0x2f   : > { %644 = vrot.lane.b32.xlu0 %v2209_v36, %s2554_s9  ;;  %v484_v46 = vsel %vm2708_vm5, %v479_v37, %v483_v24  ;;  %v493_v47 = vrot.slane %v492_v38, 4  ;;  %v2199_v50 = vrot.slane %v2685_v32, 9  ;;  %v852_v58 = vrot.slane %v850_v35, 5  ;;  %v827_v37 = vld [vmem:[%s2721_s30 + $0x1c] sm:$0x1] }
  0x30   : > { %v2221_v51 = vcombine.low %v470_v28, %v484_v46  ;;  %v847_v52 = vor.u32 %v846_v41, %v843_v39  ;;  %v857_v53 = vrot.slane %v855_v42, 4  ;;  %v860_v54 = vrot.slane %v858_v44, 5 }
  0x31   : > { %v2779_v57 = vsel %vm2708_vm5, %v493_v47, %v497_v29  ;;  %v568_v59 = vrot.slane %v2728_v8, 5  ;;  %v500_v60 = vshrl.u32 %v2764_v45, 16  ;;  %v503_v5 = vshll.u32 %v2764_v45, 16 }
  0x32   : > { %690 = vrot.lane.b32.xlu1 %v2221_v51, %s2555_s16  ;;  %v2210_v62 = vcombine.low %v484_v46, %v2779_v57  ;;  %v848_v63 = vrot.slane %v847_v52, 4  ;;  %v861_v3 = vor.u32 %v860_v54, %v857_v53  ;;  %v866_v1 = vrot.slane %v864_v48, 5 }
  0x33   : > { %688 = vrot.lane.b32.xlu0 %v2220_v40, %s2555_s16  ;;  %v502_v6 = vrot.slane %v500_v60, 4  ;;  %v509_v7 = vshll.u32 %v2772_v55, 16  ;;  %v514_v8 = vshrl.u32 %v2775_v56, 16  ;;  %v2797_v11 = vsel %vm2638_vm2, %v2199_v50, %v568_v59 }
  0x34   : > { %v862_v10 = vrot.slane %v861_v3, 4  ;;  %v505_v12 = vrot.slane %v503_v5, 5  ;;  %v517_v15 = vshll.u32 %v2775_v56, 16  ;;  %v523_v16 = vshll.u32 %v2789_v4, 16 }
  0x35   : > { %v516_v13 = vrot.slane %v514_v8, 4  ;;  %v853_v18 = vsel %vm2708_vm5, %v848_v63, %v852_v58  ;;  %v2214_v23 = vcombine.low %v2693_v34, %v2797_v11  ;;  %v511_v24 = vrot.slane %v509_v7, 5  ;;  %v2861_v7 = vld [vmem:[%s2636_s11 + $0x40] sm:$0xf] }
  0x36   : > { %723 = vrot.lane.b32.xlu1 %v2210_v62, %s2556_s17  ;;  %v506_v19 = vor.u32 %v505_v12, %v502_v6  ;;  %v2816_v22 = vsel %vm2708_vm5, %v862_v10, %v866_v1  ;;  %v519_v25 = vrot.slane %v517_v15, 5  ;;  %v525_v28 = vrot.slane %v523_v16, 5 }
  0x37   : > { %721 = vrot.lane.b32.xlu0 %v2209_v36, %s2556_s17  ;;  %v2231_v29 = vrot.slane %v2735_v14, 9  ;;  %v869_v31 = vshrl.u32 %v2802_v2, 16  ;;  %v872_v38 = vshll.u32 %v2802_v2, 16  ;;  %v878_v36 = vshll.u32 %v2808_v20, 16 }
  0x38   : > { %v507_v27 = vrot.slane %v506_v19, 4  ;;  %v520_v35 = vor.u32 %v519_v25, %v516_v13  ;;  %v883_v39 = vshrl.u32 %v2811_v21, 16  ;;  %v2245_v34 = vcombine.low %v853_v18, %v2816_v22 }
  0x39   : > { %v970_v40 = vrot.slane %v2739_v17, 5  ;;  %v871_v41 = vrot.slane %v869_v31, 4  ;;  %v886_v42 = vshll.u32 %v2811_v21, 16  ;;  %v2232_v44 = vrot.slane %v2749_v26, 9 }
  0x3a   : > { %646 = vrot.lane.b32.xlu1 %v2210_v62, %s2554_s9  ;;  %v521_v14 = vrot.slane %v520_v35, 4  ;;  %v974_v46 = vrot.slane %v2757_v30, 5  ;;  %v874_v47 = vrot.slane %v872_v38, 5  ;;  %v2836_v48 = vsel %vm2708_vm5, %v507_v27, %v511_v24  ;;  %v2886_v24 = vld [vmem:[%s2721_s30 + $0x20] sm:$0xf] }
  0x3b   : > { %731 = vrot.lane.b32.xlu0 %v2689_v33, %s2557_s18  ;;  %v885_v50 = vrot.slane %v883_v39, 4  ;;  %v888_v51 = vrot.slane %v886_v42, 5  ;;  %v892_v17 = vshll.u32 %v827_v37, 16  ;;  %v880_v33 = vrot.slane %v878_v36, 5  ;;  %v829_v42 = vld [vmem:[%s2721_s30 + $0x24] sm:$0x1] }
  0x3c   : > { %v2840_v52 = vsel %vm2708_vm5, %v521_v14, %v525_v28  ;;  %v875_v53 = vor.u32 %v874_v47, %v871_v41  ;;  %v971_v30 = vsel %vm2638_vm2, %v2231_v29, %v970_v40  ;;  %v2852_v60 = vsel %vm2638_vm2, %v2232_v44, %v974_v46 }
  0x3d   : > { %v889_v54 = vor.u32 %v888_v51, %v885_v50  ;;  %v894_v58 = vrot.slane %v892_v17, 5  ;;  %v2848_v59 = vcombine.low %v2836_v48, %v2840_v52  ;;  %v2200_v62 = vrot.slane %v2764_v45, 9 }
  0x3e   : > { %1064 = vrot.lane.b32.xlu1 %v2245_v34, %s2554_s9  ;;  %v876_v61 = vrot.slane %v875_v53, 4  ;;  %v572_v3 = vrot.slane %v2772_v55, 5  ;;  %v2201_v5 = vrot.slane %v2775_v56, 9  ;;  %v576_v1 = vrot.slane %v2789_v4, 5 }
  0x3f   : > { %733 = vrot.lane.b32.xlu0 %v2214_v23, %s2557_s18  ;;  %v890_v63 = vrot.slane %v889_v54, 4  ;;  %v2249_v8 = vcombine.low %v971_v30, %v2852_v60  ;;  %v2233_v55 = vrot.slane %v2802_v2, 9  ;;  %v978_v12 = vrot.slane %v2808_v20, 5 }
  0x40   : > { %v881_v6 = vsel %vm2708_vm5, %v876_v61, %v880_v33  ;;  %v2234_v13 = vrot.slane %v2811_v21, 9  ;;  %v982_v15 = vrot.slane %v827_v37, 5  ;;  %v573_v16 = vsel %vm2638_vm2, %v2200_v62, %v572_v3  ;;  %v409_v37 = vld [vmem:[%s2636_s11 + $0x44] sm:$0x1]  ;;  %v2932_v33 = vld [vmem:[%s2636_s11 + $0x48] sm:$0xf] }
  0x41   : > { %v2867_v10 = vsel %vm2708_vm5, %v890_v63, %v894_v58  ;;  %v2881_v18 = vsel %vm2638_vm2, %v2201_v5, %v576_v1  ;;  %v579_v19 = vshrl.u32 %v2861_v7, 16  ;;  %v2218_v20 = vcombine.low %v2685_v32, %v2764_v45  ;;  %v2950_v3 = vld [vmem:[%s2721_s30 + $0x28] sm:$0xf] }
  0x42   : > { %666 = vrot.lane.b32.xlu1 %v2214_v23, %s2552_s15  ;;  %v2873_v4 = vcombine.low %v881_v6, %v2867_v10  ;;  %v582_v23 = vshll.u32 %v2861_v7, 16  ;;  %v2894_v25 = vcombine.low %v573_v16, %v2881_v18  ;;  %v979_v27 = vsel %vm2638_vm2, %v2233_v55, %v978_v12 }
  0x43   : > { %648 = vrot.lane.b32.xlu0 %v2848_v59, %s2554_s9  ;;  %v2900_v28 = vsel %vm2638_vm2, %v2234_v13, %v982_v15  ;;  %v581_v29 = vrot.slane %v579_v19, 4  ;;  %v897_v35 = vshrl.u32 %v2886_v24, 16  ;;  %v900_v32 = vshll.u32 %v2886_v24, 16 }
  0x44   : > { %v584_v31 = vrot.slane %v582_v23, 5  ;;  %v2253_v38 = vcombine.low %v2749_v26, %v2802_v2  ;;  %v2912_v36 = vcombine.low %v979_v27, %v2900_v28  ;;  %v588_v34 = vshll.u32 %v409_v37, 16 }
  0x45   : > { %v899_v40 = vrot.slane %v897_v35, 4  ;;  %v902_v41 = vrot.slane %v900_v32, 5  ;;  %v2222_v14 = vcombine.low %v2779_v57, %v2836_v48  ;;  %v2219_v26 = vcombine.low %v2775_v56, %v2861_v7 }
  0x46   : > { %1084 = vrot.lane.b32.xlu1 %v2249_v8, %s2552_s15  ;;  %v585_v39 = vor.u32 %v584_v31, %v581_v29  ;;  %v590_v46 = vrot.slane %v588_v34, 5  ;;  %v906_v50 = vshll.u32 %v829_v42, 16  ;;  %v2257_v51 = vcombine.low %v2816_v22, %v881_v6  ;;  %v831_v29 = vld [vmem:[%s2721_s30 + $0x2c] sm:$0x1] }
  0x47   : > { %1066 = vrot.lane.b32.xlu0 %v2873_v4, %s2554_s9  ;;  %v903_v47 = vor.u32 %v902_v41, %v899_v40  ;;  %v2254_v57 = vcombine.low %v2811_v21, %v2886_v24  ;;  %v2226_v30 = vcombine.low %v2797_v11, %v573_v16  ;;  %v2202_v54 = vrot.slane %v2861_v7, 9  ;;  %v2977_v16 = vld [vmem:[%s2963_s12] sm:$0xf] }
  0x48   : > { %v586_v44 = vrot.slane %v585_v39, 4  ;;  %v908_v53 = vrot.slane %v906_v50, 5  ;;  %v596_v61 = vrot.slane %v409_v37, 5  ;;  %v599_v62 = vshrl.u32 %v2932_v33, 16 }
  0x49   : > { %v904_v17 = vrot.slane %v903_v47, 4  ;;  %v602_v63 = vshll.u32 %v2932_v33, 16  ;;  %v2261_v11 = vcombine.low %v2852_v60, %v979_v27  ;;  %v2235_v5 = vrot.slane %v2886_v24, 9  ;;  %v411_v60 = vld [vmem:[%s2636_s11 + $0x4c] sm:$0x1] }
  0x4a   : > { %679 = vrot.lane.b32.xlu1 %v2218_v20, %s2550_s13  ;;  %v2929_v48 = vsel %vm2708_vm5, %v586_v44, %v590_v46  ;;  %v2958_v1 = vsel %vm2638_vm2, %v2202_v54, %v596_v61  ;;  %v986_v6 = vrot.slane %v829_v42, 5  ;;  %v601_v8 = vrot.slane %v599_v62, 4  ;;  %v2984_v27 = vld [vmem:[%s2963_s12 + $0x8] sm:$0xf] }
  0x4b   : > { %668 = vrot.lane.b32.xlu0 %v2894_v25, %s2552_s15  ;;  %v2223_v22 = vcombine.low %v2840_v52, %v2929_v48  ;;  %v2943_v58 = vsel %vm2708_vm5, %v904_v17, %v908_v53  ;;  %v604_v55 = vrot.slane %v602_v63, 5  ;;  %v914_v12 = vshll.u32 %v2950_v3, 16  ;;  %v3019_v53 = vld [vmem:[%s2721_s30 + $0x38] sm:$0xf] }
  0x4c   : > { %v2258_v52 = vcombine.low %v2867_v10, %v2943_v58  ;;  %v911_v10 = vshrl.u32 %v2950_v3, 16  ;;  %v2971_v13 = vcombine.low %v2764_v45, %v2775_v56  ;;  %v2227_v15 = vcombine.low %v2881_v18, %v2958_v1 }
  0x4d   : > { %v2981_v19 = vsel %vm2638_vm2, %v2235_v5, %v986_v6  ;;  %v605_v23 = vor.u32 %v604_v55, %v601_v8  ;;  %v608_v20 = vshll.u32 %v411_v60, 16  ;;  %v916_v45 = vrot.slane %v914_v12, 5  ;;  %v3036_v5 = vld [vmem:[%s2721_s30 + $0x3c] sm:$0x1] }
  0x4e   : > { %1097 = vrot.lane.b32.xlu1 %v2253_v38, %s2550_s13  ;;  %v913_v31 = vrot.slane %v911_v10, 4  ;;  %v2991_v56 = vcombine.low %v2802_v2, %v2811_v21  ;;  %v1445_v18 = vshrl.u32 %v2977_v16, 16  ;;  %v1448_v35 = vshll.u32 %v2977_v16, 16  ;;  %v3001_v2 = vld [vmem:[%s2963_s12 + $0x4] sm:$0x1] }
  0x4f   : > { %1086 = vrot.lane.b32.xlu0 %v2912_v36, %s2552_s15  ;;  %v2262_v32 = vcombine.low %v2900_v28, %v2981_v19  ;;  %v1459_v37 = vshrl.u32 %v2984_v27, 16  ;;  %v1462_v38 = vshll.u32 %v2984_v27, 16  ;;  %v606_v39 = vrot.slane %v605_v23, 4  ;;  %v3006_v21 = vld [vmem:[%s2963_s12 + $0xc] sm:$0x1] }
  0x50   : > { %v610_v34 = vrot.slane %v608_v20, 5  ;;  %v920_v40 = vshll.u32 %v831_v29, 16  ;;  %v917_v41 = vor.u32 %v916_v45, %v913_v31  ;;  %v1447_v42 = vrot.slane %v1445_v18, 4  ;;  %v3046_v10 = vld [vmem:[%s2963_s12 + $0x10] sm:$0xf] }
  0x51   : > { %v2228_v28 = vcombine.low %v2861_v7, %v2932_v33  ;;  %v2203_v44 = vrot.slane %v2932_v33, 9  ;;  %v1461_v46 = vrot.slane %v1459_v37, 4  ;;  %v1464_v47 = vrot.slane %v1462_v38, 5  ;;  %v3053_v20 = vld [vmem:[%s2963_s12 + $0x18] sm:$0xf] }
  0x52   : > { %692 = vrot.lane.b32.xlu1 %v2222_v14, %s2555_s16  ;;  %v1450_v14 = vrot.slane %v1448_v35, 5  ;;  %v611_v50 = vsel %vm2708_vm5, %v606_v39, %v610_v34  ;;  %v1454_v17 = vshll.u32 %v3001_v2, 16  ;;  %v2236_v61 = vrot.slane %v2950_v3, 9  ;;  %v2492_v18 = vld [vmem:[%s3675_s3 + $0x10] ss:$0 sps:$4 sm:$0x33]  }
  0x53   : > { %681 = vrot.lane.b32.xlu0 %v2219_v26, %s2550_s13  ;;  %v3009_v26 = vld [vmem:[%s2721_s30 + $0x30] sm:$0xf]  ;;  %v990_v62 = vrot.slane %v831_v29, 5  ;;  %v3030_v63 = vcombine.low %v2886_v24, %v2950_v3  ;;  %v939_v6 = vshrl.u32 %v3019_v53, 16  ;;  %v2229_v8 = vcombine.low %v2929_v48, %v611_v50  ;;  %v3095_v50 = vld [vmem:[%s2963_s12 + $0x14] sm:$0x1]  ;;  %2415 = vmatprep.subr.msk.bf16.mxu0 %vm1264_vm6, %v2492_v18 }
  0x54   : > { %v925_v7 = vshrl.u32 %v3009_v26, 16  ;;  %v928_v33 = vshll.u32 %v3009_v26, 16  ;;  %v1451_v54 = vor.u32 %v1450_v14, %v1447_v42  ;;  %v948_v45 = vshll.u32 %v3036_v5, 16 }
  0x55   : > { %v3059_v29 = vsel %vm2638_vm2, %v2236_v61, %v990_v62  ;;  %v1473_v37 = vshrl.u32 %v3046_v10, 16  ;;  %v1476_v39 = vshll.u32 %v3046_v10, 16  ;;  %v1487_v34 = vshrl.u32 %v3053_v20, 16  ;;  %v3111_v62 = vld [vmem:[%s2963_s12 + $0x2c] sm:$0x1] }
  0x56   : > { %1110 = vrot.lane.b32.xlu1 %v2257_v51, %s2555_s16  ;;  %v922_v51 = vrot.slane %v920_v40, 5  ;;  %v930_v23 = vrot.slane %v928_v33, 5  ;;  %v1452_v48 = vrot.slane %v1451_v54, 4  ;;  %v1490_v40 = vshll.u32 %v3053_v20, 16 }
  0x57   : > { %1099 = vrot.lane.b32.xlu0 %v2254_v57, %s2550_s13  ;;  %v616_v57 = vrot.slane %v411_v60, 5  ;;  %v1456_v60 = vrot.slane %v1454_v17, 5  ;;  %v2282_v14 = vrot.slane %v2977_v16, 9  ;;  %v1489_v17 = vrot.slane %v1487_v34, 4 }
  0x58   : > { %v2283_v61 = vrot.slane %v2984_v27, 9 }
  0x59   : > { %v3043_v55 = vsel %vm2638_vm2, %v2203_v44, %v616_v57  ;;  %v3084_v44 = vcombine.low %v2981_v19, %v3059_v29  ;;  %v1475_v19 = vrot.slane %v1473_v37, 4  ;;  %v1478_v57 = vrot.slane %v1476_v39, 5 }
  0x5a   : > { %705 = vrot.lane.b32.xlu1 %v2226_v30, %s2553_s19  ;;  %v918_v30 = vrot.slane %v917_v41, 4  ;;  %v2230_v38 = vcombine.low %v2958_v1, %v3043_v55  ;;  %v1457_v1 = vsel %vm2708_vm5, %v1452_v48, %v1456_v60  ;;  %v1437_v60 = vld [vmem:[%s2963_s12 + $0x34] sm:$0x1]  ;;  %v2237_v37 = vrot.slane %v3009_v26, 9 }
  0x5b   : > { %694 = vrot.lane.b32.xlu0 %v2223_v22, %s2555_s16  ;;  %v1468_v22 = vshll.u32 %v3006_v21, 16 }
  0x5c   : > { %v3050_v24 = vsel %vm2708_vm5, %v918_v30, %v922_v51  ;;  %v3098_v51 = vld [vmem:[%s2963_s12 + $0x1c] sm:$0x1]  ;;  %v1492_v30 = vrot.slane %v1490_v40, 5 }
  0x5d   : > { %v1470_v12 = vrot.slane %v1468_v22, 5  ;;  %v2247_v41 = vcombine.low %v2943_v58, %v3050_v24  ;;  %v1357_v22 = vsel %vm1264_vm6, %v2492_v18, 0 }
  0x5e   : > { %1123 = vrot.lane.b32.xlu1 %v2261_v11, %s2553_s19  ;;  %v1465_v11 = vor.u32 %v1464_v47, %v1461_v46  ;;  %v3087_v47 = vld [vmem:[%s2963_s12 + $0x28] sm:$0xf]  ;;  %2369 = vmatpush3.bf16.msra.mxu0 %v1357_v22 }
  0x5f   : > { %1112 = vrot.lane.b32.xlu0 %v2258_v52, %s2555_s16  ;;  %v3033_v52 = vld [vmem:[%s2721_s30 + $0x34] sm:$0x1]  ;;  %v1518_v55 = vshll.u32 %v3087_v47, 16 }
  0x60   : > { %v934_v31 = vshll.u32 %v3033_v52, 16  ;;  %v1466_v35 = vrot.slane %v1465_v11, 4  ;;  %v1515_v11 = vshrl.u32 %v3087_v47, 16  ;;  %v994_v39 = vrot.slane %v3033_v52, 5 }
  0x62   : > { %715 = vrot.lane.b32.xlu1 %v2971_v13, %s2551_s14  ;;  %v936_v46 = vrot.slane %v934_v31, 5  ;;  %v3092_v58 = vsel %vm2708_vm5, %v1466_v35, %v1470_v12  ;;  %v1479_v31 = vor.u32 %v1478_v57, %v1475_v19  ;;  %v1524_v35 = vshll.u32 %v3111_v62, 16 }
  0x63   : > { %707 = vrot.lane.b32.xlu0 %v2227_v15, %s2553_s19  ;;  %v927_v15 = vrot.slane %v925_v7, 4  ;;  %v3103_v7 = vld [vmem:[%s2963_s12 + $0x30] sm:$0xf]  ;;  %v998_v19 = vrot.slane %v3036_v5, 5  ;;  %v3153_v22 = vsel %vm2638_vm2, %v2237_v37, %v994_v39  ;;  %v3158_v5 = vld [vmem:[%s2721_s30 + $0x40] sm:$0xf] }
  0x64   : > { %v1529_v48 = vshrl.u32 %v3103_v7, 16  ;;  %v1532_v18 = vshll.u32 %v3103_v7, 16  ;;  %v2500_v37 = vld [vmem:[%s3675_s3 + $0x18] sm:$0xff]   ;;  %v2501_v39 = vld [vmem:[%s3675_s3 + $0x20] ss:$0 sps:$4 sm:$0xff]  }
  0x65   : > { %v931_v42 = vor.u32 %v930_v23, %v927_v15  ;;  %v1496_v15 = vshll.u32 %v3098_v51, 16  ;;  %v1517_v23 = vrot.slane %v1515_v11, 4  ;;  %v1594_v11 = vrot.slane %v3111_v62, 5 }
  0x66   : > { %1133 = vrot.lane.b32.xlu1 %v2991_v56, %s2551_s14  ;;  %v1534_v40 = vrot.slane %v1532_v18, 5  ;;  %v1004_v18 = vshll.u32 %v3158_v5, 16 }
  0x67   : > { %1125 = vrot.lane.b32.xlu0 %v2262_v32, %s2553_s19  ;;  %v941_v32 = vrot.slane %v939_v6, 4  ;;  %v932_v33 = vrot.slane %v931_v42, 4  ;;  %v2296_v6 = vcombine.low %v1457_v1, %v3092_v58  ;;  %v1498_v1 = vrot.slane %v1496_v15, 5 }
  0x6a   : > { %725 = vrot.lane.b32.xlu1 %v2848_v59, %s2556_s17  ;;  %v942_v59 = vshll.u32 %v3019_v53, 16 }
  0x6b   : > { %717 = vrot.lane.b32.xlu0 %v2228_v28, %s2551_s14  ;;  %v1574_v28 = vrot.slane %v3001_v2, 5  ;;  %v950_v2 = vrot.slane %v948_v45, 5  ;;  %v1493_v45 = vor.u32 %v1492_v30, %v1489_v17 }
  0x6d   : > { %v3107_v54 = vsel %vm2638_vm2, %v2282_v14, %v1574_v28 }
  0x6e   : > { %1143 = vrot.lane.b32.xlu1 %v2873_v4, %s2556_s17  ;;  %v944_v4 = vrot.slane %v942_v59, 5  ;;  %v1578_v59 = vrot.slane %v3006_v21, 5  ;;  %v3127_v21 = vsel %vm2708_vm5, %v932_v33, %v936_v46  ;;  %v1494_v46 = vrot.slane %v1493_v45, 4 }
  0x6f   : > { %1135 = vrot.lane.b32.xlu0 %v3030_v63, %s2551_s14 }
  0x70   : > { %v3140_v14 = vsel %vm2638_vm2, %v2283_v61, %v1578_v59  ;;  %v2287_v61 = vrot.slane %v3087_v47, 9  ;;  %v1598_v59 = vrot.slane %v1437_v60, 5 }
  0x71   : > { %v2300_v30 = vcombine.low %v3107_v54, %v3140_v14 }
  0x72   : > { %735 = vrot.lane.b32.xlu1 %v2894_v25, %s2557_s18  ;;  %v945_v25 = vor.u32 %v944_v4, %v941_v32  ;;  %v1531_v32 = vrot.slane %v1529_v48, 4  ;;  %v1538_v4 = vshll.u32 %v1437_v60, 16  ;;  %v1586_v48 = vrot.slane %v3098_v51, 5 }
  0x73   : > { %727 = vrot.lane.b32.xlu0 %v2229_v8, %s2556_s17  ;;  %v1482_v8 = vshll.u32 %v3095_v50, 16 }
  0x74   : > { %v946_v12 = vrot.slane %v945_v25, 4  ;;  %v2238_v25 = vrot.slane %v3019_v53, 9  ;;  %v1535_v52 = vor.u32 %v1534_v40, %v1531_v32  ;;  %v1540_v17 = vrot.slane %v1538_v4, 5  ;;  %v2499_v32 = vld [vmem:[%s3675_s3 + $0x10] sm:$0xfc]  }
  0x75   : > { %v1484_v28 = vrot.slane %v1482_v8, 5  ;;  %v3169_v8 = vsel %vm2708_vm5, %v1494_v46, %v1498_v1  ;;  %v3215_v4 = vld [vmem:[%s2963_s12 + $0x20] sm:$0xf]  ;;  %v1006_v46 = vrot.slane %v1004_v18, 5  ;;  %v2259_v18 = vcombine.low %v3050_v24, %v3127_v21 }
  0x76   : > { %1153 = vrot.lane.b32.xlu1 %v2912_v36, %s2557_s18  ;;  %v1520_v36 = vrot.slane %v1518_v55, 5  ;;  %v3136_v42 = vsel %vm2708_vm5, %v946_v12, %v950_v2  ;;  %v1536_v33 = vrot.slane %v1535_v52, 4  ;;  %v2284_v55 = vrot.slane %v3046_v10, 9 }
  0x77   : > { %1145 = vrot.lane.b32.xlu0 %v2247_v41, %s2556_s17  ;;  %v3147_v2 = vcombine.low %v3127_v21, %v3136_v42  ;;  %v1582_v12 = vrot.slane %v3095_v50, 5  ;;  %v3175_v15 = vsel %vm2638_vm2, %v2238_v25, %v998_v19  ;;  %v2285_v50 = vrot.slane %v3053_v20, 9  ;;  %v837_v19 = vld [vmem:[%s2721_s30 + $0x44] sm:$0x1] }
  0x78   : > { %v1521_v34 = vor.u32 %v1520_v36, %v1517_v23  ;;  %v3183_v60 = vsel %vm2708_vm5, %v1536_v33, %v1540_v17  ;;  %v2306_v23 = vcombine.low %v3087_v47, %v3103_v7  ;;  %v3228_v40 = vcombine.low %v3153_v22, %v3175_v15 }
  0x79   : > { %v3238_v1 = vsel %vm2638_vm2, %v2285_v50, %v1586_v48  ;;  %v1501_v25 = vshrl.u32 %v3215_v4, 16  ;;  %v1248_v52 = vrot.slane %v2499_v32, 2  ;;  %v2304_v17 = vcombine.low %v2984_v27, %v3046_v10  ;;  %v1433_v48 = vld [vmem:[%s2963_s12 + $0x24] sm:$0x1] }
  0x7a   : > { %1068 = vrot.lane.b32.xlu1 %v2247_v41, %s2554_s9  ;;  %v1480_v41 = vrot.slane %v1479_v31, 4  ;;  %v1522_v57 = vrot.slane %v1521_v34, 4  ;;  %v1001_v31 = vshrl.u32 %v3158_v5, 16  ;;  %v2255_v34 = vcombine.low %v2950_v3, %v3009_v26 }
  0x7b   : > { %737 = vrot.lane.b32.xlu0 %v2230_v38, %s2557_s18  ;;  %v1526_v38 = vrot.slane %v1524_v35, 5  ;;  %v1504_v3 = vshll.u32 %v3215_v4, 16  ;;  %v2256_v32 = vcombine.low %v3019_v53, %v3158_v5 }
  0x7c   : > { %v3165_v54 = vsel %vm2708_vm5, %v1480_v41, %v1484_v28  ;;  %v3234_v28 = vsel %vm2638_vm2, %v2284_v55, %v1582_v12  ;;  %v1003_v41 = vrot.slane %v1001_v31, 4  ;;  %v1503_v55 = vrot.slane %v1501_v25, 4 }
  0x7d   : > { %v3179_v62 = vsel %vm2708_vm5, %v1522_v57, %v1526_v38  ;;  %v3198_v36 = vcombine.low %v3165_v54, %v3169_v8  ;;  %v1249_v57 = vrot.slane %v2500_v37, 2  ;;  %v1251_v38 = vrot.slane %v2501_v39, 2 }
  0x7e   : > { %1668 = vrot.lane.b32.xlu1 %v2296_v6, %s2554_s9  ;;  %v2288_v6 = vrot.slane %v3103_v7, 9  ;;  %v2310_v45 = vcombine.low %v3179_v62, %v3183_v60  ;;  %v3252_v33 = vcombine.low %v3234_v28, %v3238_v1  ;;  %v1506_v12 = vrot.slane %v1504_v3, 5 }
  0x7f   : > { %1155 = vrot.lane.b32.xlu0 %v3084_v44, %s2557_s18  ;;  %v2308_v24 = vcombine.low %v3092_v58, %v3165_v54  ;;  %v1266_v21 = vsel %vm1264_vm6, %v1251_v38, 0  ;;  %v2305_v3 = vcombine.low %v3053_v20, %v3215_v4  ;;  %v2263_v54 = vcombine.low %v3059_v29, %v3153_v22  ;;  %v2506_v22 = vld [vmem:[%s2636_s11 + $0x8] sm:$0xf] }
  0x80   : > { %v3207_v51 = vsel %vm2638_vm2, %v2288_v6, %v1598_v59  ;;  %v1007_v6 = vor.u32 %v1006_v46, %v1003_v41  ;;  %v1010_v59 = vshll.u32 %v837_v19, 16  ;;  %v1510_v41 = vshll.u32 %v1433_v48, 16 }
  0x81   : > { %v2312_v29 = vcombine.low %v3140_v14, %v3234_v28 }
  0x82   : > { %1088 = vrot.lane.b32.xlu1 %v3084_v44, %s2552_s15  ;;  %v3203_v44 = vsel %vm2638_vm2, %v2287_v61, %v1594_v11  ;;  %v1250_v61 = vsel %vm1247_vm7, %v1248_v52, %v1249_v57  ;;  %v1252_v11 = vsel %vm1247_vm7, %v1249_v57, %v1251_v38  ;;  %v1008_v37 = vrot.slane %v1007_v6, 4 }
  0x83   : > { %1070 = vrot.lane.b32.xlu0 %v3147_v2, %s2554_s9  ;;  %v2314_v35 = vcombine.low %v3203_v44, %v3207_v51  ;;  %2350 = vmatprep.subr.bf16.mxu1 %v1250_v61  ;;  %v1012_v39 = vrot.slane %v1010_v59, 5  ;;  %v1018_v6 = vrot.slane %v837_v19, 5 }
  0x84   : > { %2351 = vmatpush3.bf16.msra.mxu1 %v1250_v61 }
  0x85   : > { %2352 = vmatprep.subr.bf16.mxu1 %v1252_v11  ;;  %v3278_v52 = vsel %vm2708_vm5, %v1008_v37, %v1012_v39  ;;  %v2286_v37 = vrot.slane %v3215_v4, 9  ;;  %v1590_v39 = vrot.slane %v1433_v48, 5 }
  0x86   : > { %1688 = vrot.lane.b32.xlu1 %v2300_v30, %s2552_s15  ;;  %v2292_v30 = vcombine.low %v2977_v16, %v2984_v27  ;;  %v2260_v61 = vcombine.low %v3136_v42, %v3278_v52  ;;  %v2507_v42 = vld [vmem:[%s2636_s11] sm:$0xf] }
  0x87   : > { %1670 = vrot.lane.b32.xlu0 %v3198_v36, %s2554_s9 }
  0x88   : > { %2353 = vmatpush3.bf16.msra.mxu1 %v1252_v11  ;;  %v2239_v11 = vrot.slane %v3158_v5, 9 }
  0x89   : > { %2414 = vmatprep.subr.msk.bf16.mxu1 %vm1264_vm6, %v1251_v38 }
  0x8a   : > { %1101 = vrot.lane.b32.xlu1 %v2255_v34, %s2550_s13  ;;  %v1507_v34 = vor.u32 %v1506_v12, %v1503_v55  ;;  %v3292_v55 = vld [vmem:[%s2721_s30 + $0x48] sm:$0xf] }
  0x8b   : > { %1090 = vrot.lane.b32.xlu0 %v3228_v40, %s2552_s15  ;;  %v1024_v14 = vshll.u32 %v3292_v55, 16 }
  0x8c   : > { %v1508_v57 = vrot.slane %v1507_v34, 4  ;;  %2355 = vmatpush3.bf16.msra.mxu1 %v1266_v21  ;;  %v1021_v34 = vshrl.u32 %v3292_v55, 16  ;;  %v3322_v21 = vsel %vm2638_vm2, %v2286_v37, %v1590_v39 }
  0x8d   : > { %v3254_v50 = vpop.permute.xlu1 %677 }
  0x8e   : > { %1701 = vrot.lane.b32.xlu1 %v2304_v17, %s2550_s13  ;;  %v3258_v31 = vpop.permute.xlu0 %675  ;;  %v1512_v17 = vrot.slane %v1510_v41, 5 }
  0x8f   : > { %1690 = vrot.lane.b32.xlu0 %v3252_v33, %s2552_s15 }
  0x90   : > { %v3289_v59 = vsel %vm2708_vm5, %v1508_v57, %v1512_v17  ;;  %v1026_v57 = vrot.slane %v1024_v14, 5 }
  0x91   : > { %v2309_v19 = vcombine.low %v3169_v8, %v3289_v59 }
  0x92   : > { %1114 = vrot.lane.b32.xlu1 %v2259_v18, %s2555_s16  ;;  %v3267_v46 = vpop.permute.xlu0 %711  ;;  %v663_v25 = vpop.permute.xlu1 %662  ;;  %v2204_v18 = vcombine.low %v2507_v42, %v2506_v22 }
  0x93   : > { %1103 = vrot.lane.b32.xlu0 %v2256_v32, %s2550_s13  ;;  %v3306_v32 = vsel %vm2638_vm2, %v2239_v11, %v1018_v6  ;;  %v2313_v11 = vcombine.low %v3238_v1, %v3322_v21 }
  0x94   : > { %v2264_v48 = vcombine.low %v3175_v15, %v3306_v32  ;;  %v3334_v15 = vcombine.low %v3046_v10, %v3053_v20 }
  0x96   : > { %1714 = vrot.lane.b32.xlu1 %v2308_v24, %s2555_s16  ;;  %v665_v58 = vpop.permute.xlu1 %664  ;;  %v702_v38 = vpop.permute.xlu0 %701  ;;  %v3314_v24 = vcombine.low %v3009_v26, %v3019_v53 }
  0x97   : > { %1703 = vrot.lane.b32.xlu0 %v2305_v3, %s2550_s13  ;;  %v1023_v3 = vrot.slane %v1021_v34, 4 }
  0x99   : > { %v1027_v6 = vor.u32 %v1026_v57, %v1023_v3 }
  0x9a   : > { %1127 = vrot.lane.b32.xlu1 %v2263_v54, %s2553_s19  ;;  %v3295_v12 = vpop.permute.xlu1 %703  ;;  %v3325_v54 = vld [vmem:[%s2721_s30 + $0x4c] sm:$0x1] }
  0x9b   : > { %1116 = vrot.lane.b32.xlu0 %v2260_v61, %s2555_s16  ;;  %v1028_v39 = vrot.slane %v1027_v6, 4 }
  0x9d   : > { %v643_v28 = vpop.permute.xlu0 %642 }
  0x9e   : > { %1727 = vrot.lane.b32.xlu1 %v2312_v29, %s2553_s19  ;;  %v714_v41 = vpop.permute.xlu1 %713  ;;  %v742_v8 = vsel %vm739_vm8, %v2204_v18, %v643_v28  ;;  %v3342_v29 = vld [vmem:[%s2963_s12 + $0x38] sm:$0xf] }
  0x9f   : > { %1716 = vrot.lane.b32.xlu0 %v2309_v19, %s2555_s16  ;;  %v754_v26 = vsel %vm752_vm9, %v742_v8, %v663_v25  ;;  %v1546_v18 = vshll.u32 %v3342_v29, 16  ;;  %v1439_v8 = vld [vmem:[%s2963_s12 + $0x3c] sm:$0x1] }
  0xa0   : > { %v763_v10 = vsel %vm761_vm10, %v754_v26, %v3258_v31  ;;  %v1543_v31 = vshrl.u32 %v3342_v29, 16 }
  0xa1   : > { %v645_v17 = vpop.permute.xlu0 %644  ;;  %v1548_v3 = vrot.slane %v1546_v18, 5  ;;  %v2289_v18 = vrot.slane %v3342_v29, 9 }
  0xa2   : > { %v745_v53 = vsel %vm739_vm8, %v2660_v9, %v645_v17  ;;  %1137 = vrot.lane.b32.xlu1 %v3314_v24, %s2551_s14  ;;  %v1030_v9 = vshll.u32 %v3325_v54, 16  ;;  %v2240_v17 = vrot.slane %v3292_v55, 9 }
  0xa3   : > { %v756_v61 = vsel %vm752_vm9, %v745_v53, %v665_v58  ;;  %1129 = vrot.lane.b32.xlu0 %v2264_v48, %s2553_s19  ;;  %v3351_v58 = vld [vmem:[%s3675_s3 + $0x24] sm:$0xff]   ;;  %v1545_v48 = vrot.slane %v1543_v31, 4  ;;  %v1038_v53 = vrot.slane %v3325_v54, 5  ;;  %v3401_v54 = vld [vmem:[%s3675_s3 + $0x2c] sm:$0xff]  }
  0xa4   : > { %v691_v25 = vpop.permute.xlu1 %690  ;;  %v765_v22 = vsel %vm761_vm10, %v756_v61, %v3254_v50  ;;  %v2265_v50 = vcombine.low %v3158_v5, %v3292_v55  ;;  %2378 = vmatprep.subr.bf16.mxu0 %v3351_v58  ;;  %v1032_v34 = vrot.slane %v1030_v9, 5  ;;  %2392 = vmatprep.subr.bf16.mxu1 %v3351_v58  ;;  %v3371_v5 = vcombine.low %v3215_v4, %v3087_v47  ;;  %v3395_v55 = vld [vmem:[%s2963_s12 + $0x40] sm:$0xf]  ;;  %v3423_v31 = vld [vmem:[%s3675_s3 + $0x34] ss:$0 sps:$4 sm:$0x33]  }
  0xa5   : > { %v689_v20 = vpop.permute.xlu0 %688  ;;  %v774_v19 = vsel %vm770_vm11, %v765_v22, %v691_v25  ;;  %v1552_v61 = vshll.u32 %v1439_v8, 16  ;;  %v1549_v25 = vor.u32 %v1548_v3, %v1545_v48 }
  0xa6   : > { %v772_v1 = vsel %vm770_vm11, %v763_v10, %v689_v20  ;;  %1737 = vrot.lane.b32.xlu1 %v3334_v15, %s2551_s14  ;;  %v783_v28 = vsel %vm779_vm12, %v774_v19, %v3295_v12  ;;  %v2298_v10 = vcombine.low %v3289_v59, %v3179_v62 }
  0xa7   : > { %v781_v42 = vsel %vm779_vm12, %v772_v1, %v702_v38  ;;  %1729 = vrot.lane.b32.xlu0 %v2313_v11, %s2553_s19  ;;  %v792_v12 = vsel %vm788_vm13, %v783_v28, %v714_v41  ;;  %v1554_v22 = vrot.slane %v1552_v61, 5  ;;  %v1550_v20 = vrot.slane %v1549_v25, 4 }
  0xa8   : > { %v724_v37 = vpop.permute.xlu1 %723  ;;  %v790_v14 = vsel %vm788_vm13, %v781_v42, %v3267_v46  ;;  %v1605_v1 = vshrl.u32 %v3395_v55, 16  ;;  %v1608_v42 = vshll.u32 %v3395_v55, 16 }
  0xa9   : > { %v722_v38 = vpop.permute.xlu0 %721  ;;  %v801_v41 = vsel %vm797_vm14, %v792_v12, %v724_v37  ;;  %v1555_v19 = vsel %vm2708_vm5, %v1550_v20, %v1554_v22  ;;  %v1602_v37 = vrot.slane %v1439_v8, 5  ;;  %v2302_v8 = vcombine.low %v3322_v21, %v3203_v44 }
  0xaa   : > { %1147 = vrot.lane.b32.xlu1 %v3147_v2, %s2556_s17  ;;  %v1033_v2 = vsel %vm2708_vm5, %v1028_v39, %v1032_v34  ;;  %v799_v46 = vsel %vm797_vm14, %v790_v14, %v722_v38  ;;  %v1607_v39 = vrot.slane %v1605_v1, 4  ;;  %v1610_v34 = vrot.slane %v1608_v42, 5  ;;  %v1441_v14 = vld [vmem:[%s2963_s12 + $0x44] sm:$0x1]  ;;  %v1443_v1 = vld [vmem:[%s2963_s12 + $0x4c] sm:$0x1] }
  0xab   : > { %1139 = vrot.lane.b32.xlu0 %v2265_v50, %s2551_s14  ;;  %v2266_v11 = vcombine.low %v3278_v52, %v1033_v2  ;;  %v1039_v52 = vsel %vm2638_vm2, %v2240_v17, %v1038_v53  ;;  %v1603_v48 = vsel %vm2638_vm2, %v2289_v18, %v1602_v37  ;;  %v1614_v2 = vshll.u32 %v1441_v14, 16 }
  0xac   : > { %v3377_v57 = vpop.permute.xlu1 %646  ;;  %v2267_v59 = vcombine.low %v3306_v32, %v1039_v52  ;;  %v2299_v32 = vcombine.low %v3183_v60, %v1555_v19  ;;  %v1611_v3 = vor.u32 %v1610_v34, %v1607_v39  ;;  %v2303_v12 = vcombine.low %v3207_v51, %v1603_v48 }
  0xad   : > { %v732_v4 = vpop.permute.xlu0 %731  ;;  %v1622_v52 = vrot.slane %v1441_v14, 5  ;;  %v1634_v39 = vshll.u32 %v1443_v1, 16  ;;  %v748_v0 = vsel %vm739_vm8, %v2701_v43, %v3377_v57 }
  0xae   : > { %1747 = vrot.lane.b32.xlu1 %v3198_v36, %s2556_s17  ;;  %v808_v26 = vsel %vm806_vm15, %v799_v46, %v732_v4  ;;  %v1442_v4 = vld [vmem:[%s2963_s12 + $0x48] sm:$0xf]  ;;  %v1612_v21 = vrot.slane %v1611_v3, 4  ;;  %s2192_s12 = sshll.u32 %s3694_s22, 3 }
  0xaf   : > { %1739 = vrot.lane.b32.xlu0 %v3371_v5, %s2551_s14  ;;  %2370 = vmatprep.mubr.msk.bf16.mxu0 %vm1255_vm0, %v808_v26  ;;  %v1616_v26 = vrot.slane %v1614_v2, 5  ;;  %v1625_v53 = vshrl.u32 %v1442_v4, 16  ;;  %v1628_v61 = vshll.u32 %v1442_v4, 16  ;;  %v1636_v3 = vrot.slane %v1634_v39, 5  ;;  %s388_s28 = sadd.s32 %s2192_s12, %s3700_s21 }
  0xb0   : > { %v3392_v6 = vpop.permute.xlu1 %1064  ;;  %v2316_v2 = vcombine.low %v3395_v55, %v1442_v4  ;;  %v2291_v60 = vrot.slane %v1442_v4, 9  ;;  %s2193_s11 = sshll.u32 %s388_s28, 1 }
  0xb1   : > { %v734_v36 = vpop.permute.xlu0 %733  ;;  %v1627_v22 = vrot.slane %v1625_v53, 4  ;;  %s390_s29 = scalar_lea.vmem %s3678_s6, %s2193_s11 }
  0xb2   : > { %v810_v9 = vsel %vm806_vm15, %v801_v41, %v734_v36  ;;  %1157 = vrot.lane.b32.xlu1 %v3228_v40, %s2557_s18  ;;  %v2307_v41 = vcombine.low %v3342_v29, %v3395_v55  ;;  %v2290_v36 = vrot.slane %v3395_v55, 9 }
  0xb3   : > { %1149 = vrot.lane.b32.xlu0 %v2266_v11, %s2556_s17  ;;  %2371 = vmatmul.mubr.msk.bf16.vlgmr.msra.gmra.mrb[0].mxu0 %vm1255_vm0, %v810_v9  ;;  %v1617_v9 = vsel %vm2708_vm5, %v1612_v21, %v1616_v26 }
  0xb4   : > { %v3414_v50 = vpop.permute.xlu1 %666  ;;  %2379 = vmatpush3.bf16.msra.mxu0 %v3351_v58  ;;  %v1623_v18 = vsel %vm2638_vm2, %v2290_v36, %v1622_v52 }
  0xb5   : > { %v3417_v40 = vpop.permute.xlu0 %648  ;;  %2380 = vmatprep.subr.bf16.mxu0 %v3401_v54 }
  0xb6   : > { %1757 = vrot.lane.b32.xlu1 %v3252_v33, %s2557_s18  ;;  %v3442_v33 = vsel %vm1264_vm6, %v3423_v31, 0 }
  0xb7   : > { %1749 = vrot.lane.b32.xlu0 %v2298_v10, %s2556_s17 }
  0xb8   : > { %v3432_v38 = vpop.permute.xlu1 %1084  ;;  %2381 = vmatpush3.bf16.msra.mxu0 %v3401_v54 }
  0xb9   : > { %v3436_v28 = vpop.permute.xlu0 %1066  ;;  %2416 = vmatprep.subr.msk.bf16.mxu0 %vm1264_vm6, %v3423_v31 }
  0xba   : > { %1672 = vrot.lane.b32.xlu1 %v2298_v10, %s2554_s9  ;;  %v1630_v10 = vrot.slane %v1628_v61, 5  ;;  %v2508_v61 = vld [vmem:[%s2721_s30] sm:$0xf] }
  0xbb   : > { %1159 = vrot.lane.b32.xlu0 %v2267_v59, %s2557_s18  ;;  %v2311_v59 = vcombine.low %v1555_v19, %v1617_v9 }
  0xbc   : > { %v3451_v46 = vpop.permute.xlu1 %679  ;;  %2383 = vmatpush3.bf16.msra.mxu0 %v3442_v33  ;;  %v1631_v37 = vor.u32 %v1630_v10, %v1627_v22 }
  0xbd   : > { %v3455_v17 = vpop.permute.xlu0 %668 }
  0xbe   : > { %1674 = vrot.lane.b32.xlu1 %v2299_v32, %s2554_s9  ;;  %v1632_v19 = vrot.slane %v1631_v37, 4 }
  0xbf   : > { %1759 = vrot.lane.b32.xlu0 %v2302_v8, %s2557_s18 }
  0xc0   : > { %v3460_v11 = vpop.permute.xlu1 %1097  ;;  %v1637_v62 = vsel %vm2708_vm5, %v1632_v19, %v1636_v3 }
  0xc1   : > { %v3462_v25 = vpop.permute.xlu0 %1086  ;;  %v2317_v55 = vcombine.low %v1617_v9, %v1637_v62  ;;  %v758_v9 = vsel %vm752_vm9, %v748_v0, %v3414_v50 }
  0xc2   : > { %1694 = vrot.lane.b32.xlu1 %v2303_v12, %s2552_s15 }
  0xc3   : > { %1692 = vrot.lane.b32.xlu0 %v2302_v8, %s2552_s15  ;;  %v2315_v8 = vcombine.low %v1603_v48, %v1623_v18  ;;  %v3496_v48 = vcombine.low %v3103_v7, %v3342_v29 }
  0xc4   : > { %v693_v20 = vpop.permute.xlu1 %692 }
  0xc5   : > { %v3472_v42 = vpop.permute.xlu0 %681 }
  0xc6   : > { %1707 = vrot.lane.b32.xlu1 %v2307_v41, %s2550_s13  ;;  %v2509_v41 = vld [vmem:[%s2721_s30 + $0x8] sm:$0xf] }
  0xc7   : > { %1705 = vrot.lane.b32.xlu0 %v2306_v23, %s2550_s13  ;;  %v2241_v36 = vcombine.low %v2508_v61, %v2509_v41  ;;  %s2189_s13 = sshll.u32 %s3700_s21, 3 }
  0xc8   : > { %v1111_v34 = vpop.permute.xlu1 %1110 }
  0xc9   : > { %v3481_v14 = vpop.permute.xlu0 %1099 }
  0xca   : > { %1720 = vrot.lane.b32.xlu1 %v2311_v59, %s2555_s16 }
  0xcb   : > { %1718 = vrot.lane.b32.xlu0 %v2310_v45, %s2555_s16  ;;  %v1642_v45 = vrot.slane %v1443_v1, 5 }
  0xcc   : > { %v706_v47 = vpop.permute.xlu1 %705 }
  0xcd   : > { %v695_v23 = vpop.permute.xlu0 %694  ;;  %v1643_v44 = vsel %vm2638_vm2, %v2291_v60, %v1642_v45 }
  0xce   : > { %1733 = vrot.lane.b32.xlu1 %v2315_v8, %s2553_s19  ;;  %v2318_v49 = vcombine.low %v1623_v18, %v1643_v44 }
  0xcf   : > { %1731 = vrot.lane.b32.xlu0 %v2314_v35, %s2553_s19 }
  0xd0   : > { %v1124_v21 = vpop.permute.xlu1 %1123 }
  0xd1   : > { %v1113_v26 = vpop.permute.xlu0 %1112 }
  0xd2   : > { %1743 = vrot.lane.b32.xlu1 %v2316_v2, %s2551_s14 }
  0xd3   : > { %1741 = vrot.lane.b32.xlu0 %v3496_v48, %s2551_s14  ;;  %s2190_s14 = sshll.u32 %s3694_s22, 6 }
  0xd4   : > { %v716_v7 = vpop.permute.xlu1 %715  ;;  %s380_s15 = sadd.s32 %s2190_s14, %s2189_s13 }
  0xd5   : > { %v708_v51 = vpop.permute.xlu0 %707  ;;  %s2191_s19 = sshll.u32 %s380_s15, 3 }
  0xd6   : > { %1753 = vrot.lane.b32.xlu1 %v2317_v55, %s2556_s17 }
  0xd7   : > { %1751 = vrot.lane.b32.xlu0 %v2299_v32, %s2556_s17  ;;  %v767_v32 = vsel %vm761_vm10, %v758_v9, %v3451_v46 }
  0xd8   : > { %v1134_v35 = vpop.permute.xlu1 %1133  ;;  %v776_v22 = vsel %vm770_vm11, %v767_v32, %v693_v20 }
  0xd9   : > { %v1126_v29 = vpop.permute.xlu0 %1125  ;;  %v785_v1 = vsel %vm779_vm12, %v776_v22, %v706_v47 }
  0xda   : > { %1763 = vrot.lane.b32.xlu1 %v2318_v49, %s2557_s18  ;;  %v794_v57 = vsel %vm788_vm13, %v785_v1, %v716_v7 }
  0xdb   : > { %1761 = vrot.lane.b32.xlu0 %v2303_v12, %s2557_s18  ;;  %v1163_v12 = vsel %vm739_vm8, %v2241_v36, %v3392_v6  ;;  %s3642_s18 = scalar_lea.vmem %s3677_s5, %s2191_s19 }
  0xdc   : > { %v726_v4 = vpop.permute.xlu1 %725  ;;  %v1174_v43 = vsel %vm752_vm9, %v1163_v12, %v3432_v38  ;;  %v751_v38 = vsel %vm739_vm8, %v2971_v13, %v3417_v40  ;;  %v1166_v13 = vsel %vm739_vm8, %v2991_v56, %v3436_v28 }
  0xdd   : > { %v718_v53 = vpop.permute.xlu0 %717  ;;  %v1182_v50 = vsel %vm761_vm10, %v1174_v43, %v3460_v11  ;;  %v803_v59 = vsel %vm797_vm14, %v794_v57, %v726_v4  ;;  %v760_v11 = vsel %vm752_vm9, %v751_v38, %v3455_v17  ;;  %v1176_v17 = vsel %vm752_vm9, %v1166_v13, %v3462_v25 }
  0xde   : > { %v1190_v18 = vsel %vm770_vm11, %v1182_v50, %v1111_v34  ;;  %v769_v34 = vsel %vm761_vm10, %v760_v11, %v3472_v42  ;;  %v1184_v42 = vsel %vm761_vm10, %v1176_v17, %v3481_v14 }
  0xdf   : > { %v1198_v6 = vsel %vm779_vm12, %v1190_v18, %v1124_v21  ;;  %v778_v2 = vsel %vm770_vm11, %v769_v34, %v695_v23  ;;  %v1192_v21 = vsel %vm770_vm11, %v1184_v42, %v1113_v26 }
  0xe0   : > { %v1144_v52 = vpop.permute.xlu1 %1143  ;;  %v1206_v39 = vsel %vm788_vm13, %v1198_v6, %v1134_v35  ;;  %v787_v40 = vsel %vm779_vm12, %v778_v2, %v708_v51  ;;  %v1200_v56 = vsel %vm779_vm12, %v1192_v21, %v1126_v29 }
  0xe1   : > { %v1136_v10 = vpop.permute.xlu0 %1135  ;;  %v1214_v8 = vsel %vm797_vm14, %v1206_v39, %v1144_v52  ;;  %v796_v62 = vsel %vm788_vm13, %v787_v40, %v718_v53 }
  0xe2   : > { %v1208_v28 = vsel %vm788_vm13, %v1200_v56, %v1136_v10 }
  0xe4   : > { %v736_v46 = vpop.permute.xlu1 %735 }
  0xe5   : > { %v812_v20 = vsel %vm806_vm15, %v803_v59, %v736_v46  ;;  %v728_v37 = vpop.permute.xlu0 %727 }
  0xe6   : > { %2374 = vmatprep.mubr.msk.bf16.mxu0 %vm1255_vm0, %v812_v20  ;;  %v805_v45 = vsel %vm797_vm14, %v796_v62, %v728_v37 }
  0xe8   : > { %v1154_v19 = vpop.permute.xlu1 %1153 }
  0xe9   : > { %v1146_v3 = vpop.permute.xlu0 %1145  ;;  %v1222_v47 = vsel %vm806_vm15, %v1214_v8, %v1154_v19 }
  0xea   : > { %2356 = vmatprep.mubr.msk.bf16.mxu1 %vm1255_vm0, %v1222_v47  ;;  %v1216_v44 = vsel %vm797_vm14, %v1208_v28, %v1146_v3 }
  0xec   : > { %v1069_v60 = vpop.permute.xlu1 %1068 }
  0xed   : > { %v738_v23 = vpop.permute.xlu0 %737 }
  0xee   : > { %v814_v55 = vsel %vm806_vm15, %v805_v45, %v738_v23 }
  0xef   : > { %2375 = vmatmul.mubr.msk.bf16.gmra.mrb[4].mxu0 %vm1255_vm0, %v814_v55 }
  0xf0   : > { %v1669_v25 = vpop.permute.xlu1 %1668 }
  0xf1   : > { %v1156_v7 = vpop.permute.xlu0 %1155  ;;  %v1767_v20 = vsel %vm739_vm8, %v2292_v30, %v1669_v25 }
  0xf2   : > { %v1224_v51 = vsel %vm806_vm15, %v1216_v44, %v1156_v7 }
  0xf3   : > { %2357 = vmatmul.mubr.msk.bf16.vlgmr.msra.gmra.mrb[0].mxu1 %vm1255_vm0, %v1224_v51 }
  0xf4   : > { %v1089_v14 = vpop.permute.xlu1 %1088  ;;  %2395 = vmatpush3.bf16.msra.mxu1 %v3351_v58 }
  0xf5   : > { %v1071_v26 = vpop.permute.xlu0 %1070  ;;  %2393 = vmatprep.subr.bf16.mxu1 %v3401_v54 }
  0xf6   : > { %v1172_v27 = vsel %vm739_vm8, %v3314_v24, %v1071_v26 }
  0xf8   : > { %v1689_v49 = vpop.permute.xlu1 %1688  ;;  %2396 = vmatpush3.bf16.msra.mxu1 %v3401_v54 }
  0xf9   : > { %v1671_v35 = vpop.permute.xlu0 %1670  ;;  %2417 = vmatprep.subr.msk.bf16.mxu1 %vm1264_vm6, %v3423_v31  ;;  %v1778_v6 = vsel %vm752_vm9, %v1767_v20, %v1689_v49 }
  0xfc   : > { %v1102_v29 = vpop.permute.xlu1 %1101  ;;  %2397 = vmatpush3.bf16.msra.mxu1 %v3442_v33  ;;  %v1169_v33 = vsel %vm739_vm8, %v3030_v63, %v1069_v60  ;;  %v1770_v60 = vsel %vm739_vm8, %v3334_v15, %v1671_v35 }
  0xfd   : > { %v1091_v4 = vpop.permute.xlu0 %1090  ;;  %v1178_v57 = vsel %vm752_vm9, %v1169_v33, %v1089_v14 }
  0xfe   : > { %v1186_v50 = vsel %vm761_vm10, %v1178_v57, %v1102_v29  ;;  %v1180_v3 = vsel %vm752_vm9, %v1172_v27, %v1091_v4 }
 0x100   : > { %v1702_v53 = vpop.permute.xlu1 %1701 }
 0x101   : > { %v1691_v0 = vpop.permute.xlu0 %1690  ;;  %v1786_v63 = vsel %vm761_vm10, %v1778_v6, %v1702_v53 }
 0x102   : > { %v1780_v42 = vsel %vm752_vm9, %v1770_v60, %v1691_v0 }
 0x104   : > { %v1115_v61 = vpop.permute.xlu1 %1114 }
 0x105   : > { %v1104_v41 = vpop.permute.xlu0 %1103  ;;  %v1194_v46 = vsel %vm770_vm11, %v1186_v50, %v1115_v61 }
 0x106   : > { %v1188_v13 = vsel %vm761_vm10, %v1180_v3, %v1104_v41 }
 0x108   : > { %v1715_v36 = vpop.permute.xlu1 %1714 }
 0x109   : > { %v1704_v58 = vpop.permute.xlu0 %1703  ;;  %v1794_v8 = vsel %vm770_vm11, %v1786_v63, %v1715_v36 }
 0x10a   : > { %v1788_v21 = vsel %vm761_vm10, %v1780_v42, %v1704_v58 }
 0x10c   : > { %v1128_v9 = vpop.permute.xlu1 %1127 }
 0x10d   : > { %v1117_v32 = vpop.permute.xlu0 %1116  ;;  %v1202_v37 = vsel %vm779_vm12, %v1194_v46, %v1128_v9 }
 0x10e   : > { %v1196_v62 = vsel %vm770_vm11, %v1188_v13, %v1117_v32 }
 0x110   : > { %v1728_v52 = vpop.permute.xlu1 %1727 }
 0x111   : > { %v1717_v22 = vpop.permute.xlu0 %1716  ;;  %v1802_v16 = vsel %vm779_vm12, %v1794_v8, %v1728_v52 }
 0x112   : > { %v1796_v28 = vsel %vm770_vm11, %v1788_v21, %v1717_v22 }
 0x114   : > { %v1138_v10 = vpop.permute.xlu1 %1137 }
 0x115   : > { %v1130_v54 = vpop.permute.xlu0 %1129  ;;  %v1210_v38 = vsel %vm788_vm13, %v1202_v37, %v1138_v10 }
 0x116   : > { %v1204_v24 = vsel %vm779_vm12, %v1196_v62, %v1130_v54  ;;  %v2326_v62 = vld [vmem:[%s3676_s4] ss:$0 sm:$0xff] }
 0x118   : > { %v1738_v12 = vpop.permute.xlu1 %1737 }
 0x119   : > { %v1730_v1 = vpop.permute.xlu0 %1729  ;;  %v1810_v30 = vsel %vm788_vm13, %v1802_v16, %v1738_v12 }
 0x11a   : > { %v1804_v44 = vsel %vm779_vm12, %v1796_v28, %v1730_v1 }
 0x11c   : > { %v1148_v43 = vpop.permute.xlu1 %1147 }
 0x11d   : > { %v1140_v31 = vpop.permute.xlu0 %1139  ;;  %v1218_v39 = vsel %vm797_vm14, %v1210_v38, %v1148_v43 }
 0x11e   : > { %v1212_v45 = vsel %vm788_vm13, %v1204_v24, %v1140_v31 }
 0x120   : > { %v1748_v59 = vpop.permute.xlu1 %1747 }
 0x121   : > { %v1740_v18 = vpop.permute.xlu0 %1739  ;;  %v1818_v47 = vsel %vm797_vm14, %v1810_v30, %v1748_v59 }
 0x122   : > { %v1812_v15 = vsel %vm788_vm13, %v1804_v44, %v1740_v18 }
 0x124   : > { %v1158_v11 = vpop.permute.xlu1 %1157 }
 0x125   : > { %v1226_v19 = vsel %vm806_vm15, %v1218_v39, %v1158_v11  ;;  %v1150_v34 = vpop.permute.xlu0 %1149 }
 0x126   : > { %2360 = vmatprep.mubr.msk.bf16.mxu1 %vm1255_vm0, %v1226_v19  ;;  %v1220_v55 = vsel %vm797_vm14, %v1212_v45, %v1150_v34 }
 0x128   : > { %v1758_v2 = vpop.permute.xlu1 %1757 }
 0x129   : > { %v1826_v40 = vsel %vm806_vm15, %v1818_v47, %v1758_v2  ;;  %v1750_v17 = vpop.permute.xlu0 %1749 }
 0x12a   : > { %2384 = vmatprep.mubr.msk.bf16.mxu0 %vm1255_vm0, %v1826_v40  ;;  %v1820_v51 = vsel %vm797_vm14, %v1812_v15, %v1750_v17 }
 0x12c   : > { %v1673_v23 = vpop.permute.xlu1 %1672 }
 0x12d   : > { %v1160_v56 = vpop.permute.xlu0 %1159  ;;  %v1773_v32 = vsel %vm739_vm8, %v3371_v5, %v1673_v23 }
 0x12e   : > { %v1228_v25 = vsel %vm806_vm15, %v1220_v55, %v1160_v56 }
 0x12f   : > { %2361 = vmatmul.mubr.msk.bf16.gmra.mrb[4].mxu1 %vm1255_vm0, %v1228_v25 }
 0x130   : > { %v1675_v7 = vpop.permute.xlu1 %1674 }
 0x131   : > { %v1760_v14 = vpop.permute.xlu0 %1759  ;;  %v1776_v9 = vsel %vm739_vm8, %v3496_v48, %v1675_v7 }
 0x132   : > { %v1828_v26 = vsel %vm806_vm15, %v1820_v51, %v1760_v14 }
 0x133   : > { %2385 = vmatmul.mubr.msk.bf16.vlgmr.msra.gmra.mrb[0].mxu0 %vm1255_vm0, %v1828_v26 }
 0x134   : > { %v1695_v49 = vpop.permute.xlu1 %1694 }
 0x135   : > { %v1693_v35 = vpop.permute.xlu0 %1692  ;;  %v1784_v52 = vsel %vm752_vm9, %v1776_v9, %v1695_v49 }
 0x136   : > { %v1782_v22 = vsel %vm752_vm9, %v1773_v32, %v1693_v35 }
 0x138   : > { %v1708_v29 = vpop.permute.xlu1 %1707 }
 0x139   : > { %v1706_v4 = vpop.permute.xlu0 %1705  ;;  %v1792_v10 = vsel %vm761_vm10, %v1784_v52, %v1708_v29 }
 0x13a   : > { %v1790_v12 = vsel %vm761_vm10, %v1782_v22, %v1706_v4 }
 0x13c   : > { %v1721_v53 = vpop.permute.xlu1 %1720 }
 0x13d   : > { %v1719_v0 = vpop.permute.xlu0 %1718  ;;  %v1800_v1 = vsel %vm770_vm11, %v1792_v10, %v1721_v53 }
 0x13e   : > { %v1798_v31 = vsel %vm770_vm11, %v1790_v12, %v1719_v0 }
 0x140   : > { %v1734_v61 = vpop.permute.xlu1 %1733 }
 0x141   : > { %v1732_v41 = vpop.permute.xlu0 %1731  ;;  %v1808_v33 = vsel %vm779_vm12, %v1800_v1, %v1734_v61 }
 0x142   : > { %v1806_v48 = vsel %vm779_vm12, %v1798_v31, %v1732_v41 }
 0x144   : > { %v1744_v36 = vpop.permute.xlu1 %1743 }
 0x145   : > { %v1742_v58 = vpop.permute.xlu0 %1741  ;;  %v1816_v5 = vsel %vm788_vm13, %v1808_v33, %v1744_v36 }
 0x146   : > { %v1814_v57 = vsel %vm788_vm13, %v1806_v48, %v1742_v58 }
 0x148   : > { %v1754_v54 = vpop.permute.xlu1 %1753 }
 0x149   : > { %v1752_v43 = vpop.permute.xlu0 %1751  ;;  %v1824_v50 = vsel %vm797_vm14, %v1816_v5, %v1754_v54 }
 0x14a   : > { %v1822_v46 = vsel %vm797_vm14, %v1814_v57, %v1752_v43 }
 0x14c   : > { %v1764_v59 = vpop.permute.xlu1 %1763 }
 0x14d   : > { %v1832_v18 = vsel %vm806_vm15, %v1824_v50, %v1764_v59  ;;  %v1762_v20 = vpop.permute.xlu0 %1761 }
 0x14e   : > { %v1830_v37 = vsel %vm806_vm15, %v1822_v46, %v1762_v20 }
 0x14f   : > { %2388 = vmatprep.mubr.msk.bf16.mxu1 %vm1255_vm0, %v1830_v37 }
 0x150   : > { %2389 = vmatmul.mubr.msk.bf16.vlgmr.msra.gmra.mrb[8].mxu1 %vm1255_vm0, %v1832_v18 }
 0x1c2   : > { %v2376_v6 = vpop.f32.mrb[4].mxu0 }
 0x1c3   : > { %v1409_v38 = vpop.f32.mrb[5].mxu0 }
 0x1c4   : > { %v2377_v63 = vpop.f32.mrb[6].mxu0 }
 0x1c5   : > { %v1412_v39 = vpop.f32.mrb[7].mxu0 }
 0x1c6   : > { %v2358_v11 = vpop.f32.mrb[0].mxu1 }
 0x1c7   : > { %v1302_v8 = vpop.f32.mrb[1].mxu1 }
 0x1c8   : > { %v2359_v19 = vpop.f32.mrb[2].mxu1 }
 0x1c9   : > { %v1305_v34 = vpop.f32.mrb[3].mxu1 }
 0x202   : > { %v2362_v16 = vpop.f32.mrb[4].mxu1 }
 0x203   : > { %v1418_v27 = vadd.f32 %v2376_v6, %v2362_v16  ;;  %v1318_v30 = vpop.f32.mrb[5].mxu1 }
 0x204   : > { %v1410_v3 = vadd.f32 %v1409_v38, %v1318_v30  ;;  %v2363_v47 = vpop.f32.mrb[6].mxu1 }
 0x205   : > { %v1421_v2 = vadd.f32 %v2377_v63, %v2363_v47  ;;  %v1321_v13 = vpop.f32.mrb[7].mxu1 }
 0x206   : > { %v1413_v40 = vadd.f32 %v1412_v39, %v1321_v13  ;;  %v2386_v17 = vpop.f32.mrb[0].mxu0 }
 0x207   : > { %v2398_v60 = vadd.f32 %v2386_v17, %v2358_v11  ;;  %v1898_v24 = vpop.f32.mrb[1].mxu0 }
 0x208   : > { %v2399_v42 = vadd.f32 %v1898_v24, %v1302_v8  ;;  %v2387_v45 = vpop.f32.mrb[2].mxu0 }
 0x209   : > { %v1946_v23 = vadd.f32 %v2398_v60, %v2326_v62  ;;  %v2400_v21 = vadd.f32 %v2387_v45, %v2359_v19  ;;  %v1901_v55 = vpop.f32.mrb[3].mxu0 }
 0x20a   : > { %v1944_v56 = vadd.f32 %v2399_v42, %v2326_v62  ;;  %v2401_v28 = vadd.f32 %v1901_v55, %v1305_v34 }
 0x20b   : > { %1954 = vst [vmem:[%s3642_s18 + $0x10] sm:$0xff] %v1946_v23  ;;  %v1947_v25 = vadd.f32 %v2400_v21, %v2326_v62  ;;  %v1975_v14 = vmul.f32 %v1946_v23, %v1946_v23 }
 0x20c   : > { %1952 = vst [vmem:[%s3642_s18] sm:$0xff] %v1944_v56  ;;  %v1945_v44 = vadd.f32 %v2401_v28, %v2326_v62  ;;  %v1973_v15 = vmul.f32 %v1944_v56, %v1944_v56 }
 0x20d   : > { %1955 = vst [vmem:[%s3642_s18 + $0x18] sm:$0xff] %v1947_v25  ;;  %v1976_v35 = vmul.f32 %v1947_v25, %v1947_v25 }
 0x20e   : > { %1953 = vst [vmem:[%s3642_s18 + $0x8] sm:$0xff] %v1945_v44  ;;  %v1960_v7 = vadd.f32 %v1945_v44, %v1944_v56  ;;  %v1974_v51 = vmul.f32 %v1945_v44, %v1945_v44 }
 0x210   : > { %v1961_v26 = vadd.f32 %v1960_v7, %v1946_v23  ;;  %v1981_v49 = vadd.f32 %v1974_v51, %v1973_v15 }
 0x212   : > { %v1982_v29 = vadd.f32 %v1981_v49, %v1975_v14  ;;  %v1962_v4 = vadd.f32 %v1961_v26, %v1947_v25 }
 0x214   : > { %v1983_v53 = vadd.f32 %v1982_v29, %v1976_v35 }
 0x223   : > { %v2390_v0 = vpop.f32.mrb[8].mxu1 }
 0x224   : > { %v1935_v61 = vadd.f32 %v2390_v0, %v1418_v27  ;;  %v1914_v41 = vpop.f32.mrb[9].mxu1 }
 0x225   : > { %v1933_v36 = vadd.f32 %v1914_v41, %v1410_v3  ;;  %v2391_v58 = vpop.f32.mrb[10].mxu1 }
 0x226   : > { %v1950_v9 = vadd.f32 %v2326_v62, %v1935_v61  ;;  %v1936_v32 = vadd.f32 %v2391_v58, %v1421_v2  ;;  %v1917_v52 = vpop.f32.mrb[11].mxu1 }
 0x227   : > { %v1948_v22 = vadd.f32 %v2326_v62, %v1933_v36  ;;  %v1934_v10 = vadd.f32 %v1917_v52, %v1413_v40 }
 0x228   : > { %1958 = vst [vmem:[%s3642_s18 + $0x30] sm:$0xff] %v1950_v9  ;;  %v1951_v54 = vadd.f32 %v2326_v62, %v1936_v32  ;;  %v1979_v5 = vmul.f32 %v1950_v9, %v1950_v9 }
 0x229   : > { %1956 = vst [vmem:[%s3642_s18 + $0x20] sm:$0xff] %v1948_v22  ;;  %v1963_v12 = vadd.f32 %v1962_v4, %v1948_v22  ;;  %v1977_v1 = vmul.f32 %v1948_v22, %v1948_v22  ;;  %v1949_v43 = vadd.f32 %v2326_v62, %v1934_v10 }
 0x22a   : > { %1959 = vst [vmem:[%s3642_s18 + $0x38] sm:$0xff] %v1951_v54  ;;  %v1980_v59 = vmul.f32 %v1951_v54, %v1951_v54 }
 0x22b   : > { %v1984_v31 = vadd.f32 %v1983_v53, %v1977_v1  ;;  %1957 = vst [vmem:[%s3642_s18 + $0x28] sm:$0xff] %v1949_v43  ;;  %v1964_v33 = vadd.f32 %v1963_v12, %v1949_v43  ;;  %v1978_v48 = vmul.f32 %v1949_v43, %v1949_v43 }
 0x22d   : > { %v1965_v57 = vadd.f32 %v1964_v33, %v1950_v9  ;;  %v1985_v50 = vadd.f32 %v1984_v31, %v1978_v48 }
 0x22f   : > { %v1966_v46 = vadd.f32 %v1965_v57, %v1951_v54  ;;  %v1986_v18 = vadd.f32 %v1985_v50, %v1979_v5 }
 0x231   : > { %v1967_v20 = vrot.slane %v1966_v46, 4  ;;  %v1987_v37 = vadd.f32 %v1986_v18, %v1980_v59 }
 0x233   : > { %v1968_v6 = vadd.f32 %v1967_v20, %v1966_v46  ;;  %v1988_v38 = vrot.slane %v1987_v37, 4 }
 0x235   : > { %v1969_v63 = vrot.slane %v1968_v6, 2  ;;  %v1989_v39 = vadd.f32 %v1988_v38, %v1987_v37 }
 0x237   : > { %v1970_v11 = vadd.f32 %v1969_v63, %v1968_v6  ;;  %v1990_v8 = vrot.slane %v1989_v39, 2 }
 0x239   : > { %v1971_v19 = vrot.slane %v1970_v11, 1  ;;  %v1991_v34 = vadd.f32 %v1990_v8, %v1989_v39 }
 0x23b   : > { %v1992_v16 = vrot.slane %v1991_v34, 1  ;;  %v1972_v27 = vadd.f32 %v1971_v19, %v1970_v11 }
 0x23d   : > { %v1993_v30 = vadd.f32 %v1992_v16, %v1991_v34 }
 0x23f   : > { %v1995_v3 = vsel %vm1994_vm1, %v1972_v27, %v1993_v30 }
 0x240   : > { %1996 = vst [vmem:[%s390_s29] sm:$0x3] %v1995_v3 }
 0x241 PF: > { %s17_s25 = sadd.s32 1, %s2548_s25   ;;  %s3683_s21 = smov %s2540_s23 }
 0x242   : > { %p14_p10 = scmp.ge.s32.totalorder %s17_s25, 18   ;;  %s3684_s22 = smov %s2544_s24 }
 0x243   : > { %s3685_s23 = smov %s3688_s26  ;;  %s3686_s24 = smov %s3692_s27 }
 0x244   :  { %16 = sbr.rel (!%p14_p10) target bundleno = 3 (0x3), region = 88 }

// kernel: down_forward.9
= control target key start
LH: loop header
LB: loop body
LE: loop exit
PB: predicated region body
PF: predicated region fallthrough
CT: control target
= control target key end

     0   :  { %s471_s12 = smov 0   ;;  %s473_s13 = smov 0   ;;  %s528_s0 = inlined_call_operand.vmem [shape: f32[2,8,64,128], index: 0, kind: input, shape index: {}]   ;;  %s529_s1 = inlined_call_operand.vmem [shape: f32[1,128], index: 1, kind: input, shape index: {}]   ;;  %s530_s2 = inlined_call_operand.vmem [shape: f32[1,128], index: 2, kind: input, shape index: {}]   ;;  %s531_s3 = inlined_call_operand.vmem [shape: f32[2,8,64,128], index: 3, kind: output, shape index: {}]  }
   0x1   :  { %s475_s14 = smov 0   ;;  %s477_s15 = smov 0  }
   0x2   :  { %s479_s16 = smov 0  }
   0x3 LB: > { %s22_s17 = sadd.s32 1, %s441_s14  ;;  %s25_s18 = sadd.s32 1, %s445_s15  ;;  %s449_s16 = sphi %s479_s16, %s13_s16   ;;  %s445_s15 = sphi %s477_s15, %s535_s15   ;;  %s441_s14 = sphi %s475_s14, %s534_s14   ;;  %s437_s13 = sphi %s473_s13, %s533_s13   ;;  %s433_s12 = sphi %s471_s12, %s532_s12  }
   0x4   : > { %p23_p0 = scmp.ge.s32.totalorder %s22_s17, 8  ;;  %p360_p1 = scmp.ge.s32.totalorder %s449_s16, 1 }
   0x5   : > { %p157_p2 = scmp.lt.s32.totalorder %s449_s16, 17 }
   0x6   : > { %s537_s17 = smov (%p23_p0, %s22_s17), 0  ;;  %s539_s18 = smov (!%p23_p0, %s25_s18), %s445_s15 }
   0x7   : > { %p158_p3 = pnand %p360_p1, %p157_p2  ;;  %p27_p4 = scmp.ge.s32.totalorder %s539_s18, 2 }
   0x8   : > { %p189_p5 = scmp.lt.s32.totalorder (!%p158_p3), %s437_s13, 1  ;;  %p191_p6 = scmp.lt.s32.totalorder (!%p158_p3), %s433_s12, 7  ;;  %v367_v0 = vld [vmem:[%s529_s1] ss:$0 sm:$0xff] (!%p158_p3) }
   0x9   : > { %s541_s18 = smov (%p27_p4, %s539_s18), 0  ;;  %161 = sbr.rel (%p158_p3) target bundleno = 32 (0x20), region = 32 }
   0xa   : > { %v368_v1 = vld [vmem:[%s530_s2] ss:$0 sm:$0xff] (!%p158_p3) }
  0x10   : > { %s543_s13 = smov (!%p189_p5, %s437_s13), 1  ;;  %s545_s12 = smov (!%p191_p6, %s433_s12), 7 }
  0x11   : > { %s362_s19 = sshll.u32 %s543_s13, 6  ;;  %s361_s20 = sshll.u32 %s545_s12, 3 }
  0x12   : > { %s195_s21 = sadd.s32 %s362_s19, %s361_s20 }
  0x13   : > { %s363_s22 = sshll.u32 %s195_s21, 3 }
  0x14   : > { %s197_s27 = scalar_lea.vmem %s528_s0, %s363_s22  ;;  %s206_s5 = scalar_lea.vmem %s531_s3, %s363_s22 }
  0x15   : > { %v207_v2 = vld [vmem:[%s197_s27] sm:$0xff]  ;;  %v208_v3 = vld [vmem:[%s197_s27 + $0x8] sm:$0xff]  ;;  %v209_v4 = vld [vmem:[%s197_s27 + $0x10] sm:$0xff] }
  0x16   : > { %v222_v5 = vmul.f32 %v367_v0, %v207_v2  ;;  %v223_v6 = vmul.f32 %v367_v0, %v208_v3  ;;  %v224_v7 = vmul.f32 %v367_v0, %v209_v4  ;;  %v210_v8 = vld [vmem:[%s197_s27 + $0x18] sm:$0xff]  ;;  %v211_v9 = vld [vmem:[%s197_s27 + $0x20] sm:$0xff]  ;;  %v212_v10 = vld [vmem:[%s197_s27 + $0x28] sm:$0xff] }
  0x17   : > { %v225_v11 = vmul.f32 %v367_v0, %v210_v8  ;;  %v226_v12 = vmul.f32 %v367_v0, %v211_v9  ;;  %v227_v13 = vmul.f32 %v367_v0, %v212_v10  ;;  %v213_v14 = vld [vmem:[%s197_s27 + $0x30] sm:$0xff]  ;;  %v214_v15 = vld [vmem:[%s197_s27 + $0x38] sm:$0xff] }
  0x18   : > { %v237_v16 = vadd.f32 %v368_v1, %v222_v5  ;;  %v238_v17 = vadd.f32 %v368_v1, %v223_v6  ;;  %v239_v18 = vadd.f32 %v368_v1, %v224_v7  ;;  %v228_v19 = vmul.f32 %v367_v0, %v213_v14 }
  0x19   : > { %v240_v20 = vadd.f32 %v368_v1, %v225_v11  ;;  %v241_v21 = vadd.f32 %v368_v1, %v226_v12  ;;  %v242_v22 = vadd.f32 %v368_v1, %v227_v13  ;;  %v229_v23 = vmul.f32 %v367_v0, %v214_v15 }
  0x1a   : > { %v245_v24 = vmax.f32 %v237_v16, 0.0  ;;  %v246_v25 = vmax.f32 %v238_v17, 0.0  ;;  %v247_v26 = vmax.f32 %v239_v18, 0.0  ;;  %v243_v27 = vadd.f32 %v368_v1, %v228_v19 }
  0x1b   : > { %v248_v28 = vmax.f32 %v240_v20, 0.0  ;;  %v249_v29 = vmax.f32 %v241_v21, 0.0  ;;  %v250_v30 = vmax.f32 %v242_v22, 0.0  ;;  %v244_v31 = vadd.f32 %v368_v1, %v229_v23 }
  0x1c   : > { %253 = vst [vmem:[%s206_s5] sm:$0xff] %v245_v24  ;;  %254 = vst [vmem:[%s206_s5 + $0x8] sm:$0xff] %v246_v25  ;;  %v251_v32 = vmax.f32 %v243_v27, 0.0 }
  0x1d   : > { %255 = vst [vmem:[%s206_s5 + $0x10] sm:$0xff] %v247_v26  ;;  %256 = vst [vmem:[%s206_s5 + $0x18] sm:$0xff] %v248_v28  ;;  %v252_v33 = vmax.f32 %v244_v31, 0.0 }
  0x1e   : > { %257 = vst [vmem:[%s206_s5 + $0x20] sm:$0xff] %v249_v29  ;;  %258 = vst [vmem:[%s206_s5 + $0x28] sm:$0xff] %v250_v30 }
  0x1f   : > { %259 = vst [vmem:[%s206_s5 + $0x30] sm:$0xff] %v251_v32  ;;  %260 = vst [vmem:[%s206_s5 + $0x38] sm:$0xff] %v252_v33 }
  0x20 PF: > { %s13_s16 = sadd.s32 1, %s449_s16   ;;  %s532_s12 = smov %s441_s14 }
  0x21   : > { %p10_p7 = scmp.ge.s32.totalorder %s13_s16, 18   ;;  %s533_s13 = smov %s445_s15 }
  0x22   : > { %s534_s14 = smov %s537_s17  ;;  %s535_s15 = smov %s541_s18 }
  0x23   :  { %12 = sbr.rel (!%p10_p7) target bundleno = 3 (0x3), region = 62 }

// kernel: down_forward.8
= control target key start
LH: loop header
LB: loop body
LE: loop exit
PB: predicated region body
PF: predicated region fallthrough
CT: control target
= control target key end

     0   :  { %s5638_s21 = smov 0   ;;  %s5640_s22 = smov 0   ;;  %s7174_s0 = inlined_call_operand.vmem [shape: bf16[2,10,10,10,128], index: 0, kind: input, shape index: {}, may-alias: {0,1,2}]   ;;  %s7175_s1 = inlined_call_operand.vmem [shape: bf16[2,10,10,10,128], index: 1, kind: input, shape index: {}, may-alias: {0,1,2}]   ;;  %s7176_s2 = inlined_call_operand.vmem [shape: bf16[2,10,10,10,128], index: 2, kind: input, shape index: {}, may-alias: {0,1,2}]   ;;  %s7177_s3 = inlined_call_operand.vmem [shape: bf16[3456,128], index: 3, kind: input, shape index: {}]   ;;  %s7178_s4 = inlined_call_operand.vmem [shape: f32[1,128], index: 4, kind: input, shape index: {}]   ;;  %s7179_s5 = inlined_call_operand.vmem [shape: f32[2,8,64,128], index: 5, kind: output, shape index: {0}]   ;;  %s7180_s6 = inlined_call_operand.vmem [shape: f32[2,8,2,128], index: 6, kind: output, shape index: {1}]  }
   0x1   :  { %s5642_s23 = smov 0   ;;  %s5644_s24 = smov 0  }
   0x2   :  { %s5646_s25 = smov 0  }
   0x3 LB: > { %s26_s26 = sadd.s32 1, %s5593_s23  ;;  %s29_s27 = sadd.s32 1, %s5597_s24  ;;  %s5601_s25 = sphi %s5646_s25, %s17_s25   ;;  %s5597_s24 = sphi %s5644_s24, %s7189_s24   ;;  %s5593_s23 = sphi %s5642_s23, %s7188_s23   ;;  %s5589_s22 = sphi %s5640_s22, %s7187_s22   ;;  %s5585_s21 = sphi %s5638_s21, %s7186_s21  }
   0x4   : > { %p27_p0 = scmp.ge.s32.totalorder %s26_s26, 8  ;;  %p4269_p1 = scmp.ge.s32.totalorder %s5601_s25, 1 }
   0x5   : > { %p277_p2 = scmp.lt.s32.totalorder %s5601_s25, 17 }
   0x6   : > { %s7191_s26 = smov (%p27_p0, %s26_s26), 0  ;;  %s7193_s27 = smov (!%p27_p0, %s29_s27), %s5597_s24 }
   0x7   : > { %p278_p3 = pnand %p4269_p1, %p277_p2  ;;  %p31_p4 = scmp.ge.s32.totalorder %s7193_s27, 2 }
   0x8   : > { %v5320_v0 = vld [vmem:[%s7177_s3 + $0x280] sm:$0xff] (!%p278_p3)   ;;  %v5324_v4 = vld [vmem:[%s7177_s3 + $0x288] sm:$0xff] (!%p278_p3)   ;;  %v5328_v8 = vld [vmem:[%s7177_s3 + $0x290] sm:$0xff] (!%p278_p3)   ;;  %s352_s29 = sadd.s32 (!%p278_p3), 1, %s5585_s21  ;;  %p343_p5 = scmp.lt.s32.totalorder (!%p278_p3), %s5589_s22, 1  ;;  %vm543_vm0 = vcmask (!%p278_p3), 1042432  }
   0x9   : > { %s7195_s27 = smov (%p31_p4, %s7193_s27), 0  ;;  %281 = sbr.rel (%p278_p3) target bundleno = 524 (0x20c), region = 40 }
   0xa   : > { %v5321_v1 = vld [vmem:[%s7177_s3 + $0x300] sm:$0xff] (!%p278_p3)   ;;  %4608 = vmatprep.subr.bf16.mxu0 (!%p278_p3), %v5320_v0  ;;  %v5325_v5 = vld [vmem:[%s7177_s3 + $0x308] sm:$0xff] (!%p278_p3)   ;;  %v5329_v9 = vld [vmem:[%s7177_s3 + $0x310] sm:$0xff] (!%p278_p3)   ;;  %p355_p6 = scmp.lt.s32.totalorder (!%p278_p3), %s352_s29, 9  ;;  %vm544_vm1 = vcmask (!%p278_p3), 1046532   ;;  %p345_p7 = scmp.lt.s32.totalorder (!%p278_p3), %s5585_s21, 9 }
   0xb   : > { %v5322_v2 = vld [vmem:[%s7177_s3 + $0x240] sm:$0xff] (!%p278_p3)   ;;  %4648 = vmatprep.subr.bf16.mxu1 (!%p278_p3), %v5321_v1  ;;  %v5326_v6 = vld [vmem:[%s7177_s3 + $0x248] sm:$0xff] (!%p278_p3)   ;;  %v5330_v10 = vld [vmem:[%s7177_s3 + $0x250] sm:$0xff] (!%p278_p3)   ;;  %vm412_vm2 = vsmask.f32 (!%p278_p3), 3328  ;;  %p376_p9 = scmp.lt.s32.totalorder (!%p278_p3), %s5585_s21, 7 }
   0xc   : > { %v5323_v3 = vld [vmem:[%s7177_s3 + $0x2c0] sm:$0xff] (!%p278_p3)   ;;  %4609 = vmatpush3.bf16.msra.mxu0 (!%p278_p3), %v5322_v2  ;;  %v5327_v7 = vld [vmem:[%s7177_s3 + $0x2c8] sm:$0xff] (!%p278_p3)   ;;  %v5331_v11 = vld [vmem:[%s7177_s3 + $0x2d0] sm:$0xff] (!%p278_p3)   ;;  %vm413_vm3 = vsmask.f32 (!%p278_p3), 7440  ;;  %vm4078_vm6 = vcmask (!%p278_p3), 1040384  }
   0xd   : > { %4649 = vmatpush3.bf16.msra.mxu1 (!%p278_p3), %v5323_v3  ;;  %4610 = vmatprep.subr.bf16.mxu0 (!%p278_p3), %v5324_v4  ;;  %v5332_v12 = vld [vmem:[%s7177_s3 + $0x298] sm:$0xff] (!%p278_p3)   ;;  %v5336_v16 = vld [vmem:[%s7177_s3 + $0x2a0] sm:$0xff] (!%p278_p3)   ;;  %v5340_v20 = vld [vmem:[%s7177_s3 + $0x2a8] sm:$0xff] (!%p278_p3)  }
   0xe   : > { %4650 = vmatprep.subr.bf16.mxu1 (!%p278_p3), %v5325_v5  ;;  %v5333_v13 = vld [vmem:[%s7177_s3 + $0x318] sm:$0xff] (!%p278_p3)   ;;  %v5337_v17 = vld [vmem:[%s7177_s3 + $0x320] sm:$0xff] (!%p278_p3)   ;;  %v5341_v21 = vld [vmem:[%s7177_s3 + $0x328] sm:$0xff] (!%p278_p3)  }
   0xf   : > { %v5334_v14 = vld [vmem:[%s7177_s3 + $0x258] sm:$0xff] (!%p278_p3)   ;;  %v5338_v18 = vld [vmem:[%s7177_s3 + $0x260] sm:$0xff] (!%p278_p3)   ;;  %v5342_v22 = vld [vmem:[%s7177_s3 + $0x268] sm:$0xff] (!%p278_p3)  }
  0x10   : > { %4611 = vmatpush3.bf16.msra.mxu0 %v5326_v6  ;;  %s7197_s22 = smov (!%p343_p5, %s5589_s22), 1  ;;  %v5335_v15 = vld [vmem:[%s7177_s3 + $0x2d8] sm:$0xff]   ;;  %s7199_s29 = smov (!%p355_p6, %s352_s29), 9  ;;  %v5339_v19 = vld [vmem:[%s7177_s3 + $0x2e0] sm:$0xff]   ;;  %v5343_v23 = vld [vmem:[%s7177_s3 + $0x2e8] sm:$0xff]  }
  0x11   : > { %4651 = vmatpush3.bf16.msra.mxu1 %v5327_v7  ;;  %4612 = vmatprep.subr.bf16.mxu0 %v5328_v8  ;;  %s5735_s10 = smul.u32 200, %s7197_s22  ;;  %v5344_v24 = vld [vmem:[%s7177_s3 + $0x2b0] sm:$0xff]   ;;  %v5348_v28 = vld [vmem:[%s7177_s3 + $0x2b8] sm:$0xff]   ;;  %v5354_v50 = vld [vmem:[%s7177_s3 + $0x380] sm:$0xff]  }
  0x12   : > { %4652 = vmatprep.subr.bf16.mxu1 %v5329_v9  ;;  %s5278_s13 = smul.u32 20, %s7199_s29  ;;  %v5345_v25 = vld [vmem:[%s7177_s3 + $0x330] sm:$0xff]   ;;  %v5349_v29 = vld [vmem:[%s7177_s3 + $0x338] sm:$0xff]   ;;  %vm5807_vm4 = vmor %vm543_vm0, %vm544_vm1 }
  0x13   : > { %v5346_v26 = vld [vmem:[%s7177_s3 + $0x270] sm:$0xff]   ;;  %v5350_v30 = vld [vmem:[%s7177_s3 + $0x278] sm:$0xff]   ;;  %vm5813_vm5 = vmor %vm412_vm2, %vm413_vm3  ;;  %s346_s28 = scalar_select %p345_p7, %s5585_s21, 9 }
  0x14   : > { %4613 = vmatpush3.bf16.msra.mxu0 %v5330_v10  ;;  %s359_s29 = sadd.s32 %s5278_s13, %s5735_s10  ;;  %v5347_v27 = vld [vmem:[%s7177_s3 + $0x2f0] sm:$0xff]   ;;  %v5351_v31 = vld [vmem:[%s7177_s3 + $0x2f8] sm:$0xff]   ;;  %v5355_v61 = vld [vmem:[%s7177_s3 + $0x400] sm:$0xff]  }
  0x15   : > { %4653 = vmatpush3.bf16.msra.mxu1 %v5331_v11  ;;  %4614 = vmatprep.subr.bf16.mxu0 %v5332_v12  ;;  %s4271_s14 = sshll.u32 %s359_s29, 2  ;;  %v5357_v7 = vld [vmem:[%s7177_s3 + $0x3c0] sm:$0xff]   ;;  %v5359_v12 = vld [vmem:[%s7177_s3 + $0x408] sm:$0xff]   ;;  %s5276_s11 = smul.u32 20, %s346_s28 }
  0x16   : > { %4654 = vmatprep.subr.bf16.mxu1 %v5333_v13  ;;  %s5774_s30 = scalar_lea.vmem %s7175_s1, %s4271_s14  ;;  %v5356_v11 = vld [vmem:[%s7177_s3 + $0x340] sm:$0xff]  }
  0x17   : > { %v5783_v32 = vld [vmem:[%s5774_s30] sm:$0xf]  ;;  %v847_v33 = vld [vmem:[%s5774_s30 + $0x4] sm:$0x1]  ;;  %v5787_v34 = vld [vmem:[%s5774_s30 + $0x8] sm:$0xf]  ;;  %s6090_s29 = sadd.s32 %s5735_s10, %s5276_s11 }
  0x18   : > { %4615 = vmatpush3.bf16.msra.mxu0 %v5334_v14  ;;  %v867_v35 = vshrl.u32 %v5783_v32, 16  ;;  %v870_v36 = vshll.u32 %v5783_v32, 16  ;;  %v849_v37 = vld [vmem:[%s5774_s30 + $0xc] sm:$0x1]  ;;  %v5793_v38 = vld [vmem:[%s5774_s30 + $0x10] sm:$0xf]  ;;  %v4325_v9 = vcombine.low %v5783_v32, %v5787_v34 }
  0x19   : > { %4655 = vmatpush3.bf16.msra.mxu1 %v5335_v15  ;;  %4616 = vmatprep.subr.bf16.mxu0 %v5336_v16  ;;  %v5796_v39 = vld [vmem:[%s5774_s30 + $0x14] sm:$0x1]  ;;  %v876_v42 = vshll.u32 %v847_v33, 16  ;;  %v881_v43 = vshrl.u32 %v5787_v34, 16  ;;  %v884_v44 = vshll.u32 %v5787_v34, 16  ;;  %v890_v45 = vshll.u32 %v849_v37, 16 }
  0x1a   : > { %4656 = vmatprep.subr.bf16.mxu1 %v5337_v17  ;;  %v869_v40 = vrot.slane %v867_v35, 4  ;;  %v872_v41 = vrot.slane %v870_v36, 5  ;;  %v895_v46 = vshrl.u32 %v5793_v38, 16  ;;  %v898_v47 = vshll.u32 %v5793_v38, 16  ;;  %v5365_v35 = vld [vmem:[%s7177_s3 + $0x410] sm:$0xff]   ;;  %s4270_s12 = sshll.u32 %s6090_s29, 2 }
  0x1b   : > { %v883_v49 = vrot.slane %v881_v43, 4  ;;  %v878_v51 = vrot.slane %v876_v42, 5  ;;  %v886_v52 = vrot.slane %v884_v44, 5  ;;  %v904_v58 = vshll.u32 %v5796_v39, 16  ;;  %v5367_v42 = vld [vmem:[%s7177_s3 + $0x3d0] sm:$0xff]   ;;  %s6142_s9 = scalar_lea.vmem %s7174_s0, %s4270_s12  ;;  %s4274_s29 = sshll.u32 %s7197_s22, 6 }
  0x1c   : > { %4617 = vmatpush3.bf16.msra.mxu0 %v5338_v18  ;;  %v873_v48 = vor.u32 %v872_v41, %v869_v40  ;;  %v897_v53 = vrot.slane %v895_v46, 4  ;;  %v900_v54 = vrot.slane %v898_v47, 5  ;;  %v996_v59 = vrot.slane %v847_v33, 5  ;;  %v5366_v44 = vld [vmem:[%s7177_s3 + $0x350] sm:$0xff]  }
  0x1d   : > { %4657 = vmatpush3.bf16.msra.mxu1 %v5339_v19  ;;  %4618 = vmatprep.subr.bf16.mxu0 %v5340_v20  ;;  %v1000_v60 = vrot.slane %v849_v37, 5  ;;  %v887_v62 = vor.u32 %v886_v52, %v883_v49  ;;  %v892_v63 = vrot.slane %v890_v45, 5  ;;  %v4337_v0 = vcombine.low %v5787_v34, %v5793_v38  ;;  %v5358_v19 = vld [vmem:[%s7177_s3 + $0x388] sm:$0xff]   ;;  %v852_v20 = vld [vmem:[%s5774_s30 + $0x18] sm:$0xf] }
  0x1e   : > { %4658 = vmatprep.subr.bf16.mxu1 %v5341_v21  ;;  %v874_v57 = vrot.slane %v873_v48, 4  ;;  %v4315_v1 = vrot.slane %v5783_v32, 9  ;;  %v901_v2 = vor.u32 %v900_v54, %v897_v53  ;;  %v4316_v3 = vrot.slane %v5787_v34, 9  ;;  %v853_v21 = vld [vmem:[%s5774_s30 + $0x1c] sm:$0x1]  ;;  %v5364_v34 = vld [vmem:[%s7177_s3 + $0x390] sm:$0xff]  }
  0x1f   : > { %v888_v5 = vrot.slane %v887_v62, 4  ;;  %1823 = vmatprep.mubr.bf16.mxu1 %v4337_v0  ;;  %v906_v8 = vrot.slane %v904_v58, 5  ;;  %v4317_v15 = vrot.slane %v5793_v38, 9  ;;  %v1004_v16 = vrot.slane %v5796_v39, 5  ;;  %v5369_v48 = vld [vmem:[%s7177_s3 + $0x418] sm:$0xff]  }
  0x20   : > { %4619 = vmatpush3.bf16.msra.mxu0 %v5342_v22  ;;  %v879_v4 = vsel %vm5813_vm5, %v874_v57, %v878_v51  ;;  %v997_v6 = vsel %vm5807_vm4, %v4315_v1, %v996_v59  ;;  %v5836_v10 = vsel %vm5807_vm4, %v4316_v3, %v1000_v60  ;;  %v902_v17 = vrot.slane %v901_v2, 4  ;;  %v5858_v22 = vld [vmem:[%s5774_s30 + $0x20] sm:$0xf]  ;;  %v5368_v49 = vld [vmem:[%s7177_s3 + $0x398] sm:$0xff]   ;;  %v855_v59 = vld [vmem:[%s5774_s30 + $0x24] sm:$0x1] }
  0x21   : > { %4659 = vmatpush3.bf16.msra.mxu1 %v5343_v23  ;;  %4620 = vmatprep.subr.bf16.mxu0 %v5344_v24  ;;  %v5846_v13 = vsel %vm5813_vm5, %v888_v5, %v892_v63  ;;  %v4333_v14 = vcombine.low %v997_v6, %v5836_v10  ;;  %v5360_v23 = vld [vmem:[%s7177_s3 + $0x348] sm:$0xff]   ;;  %v923_v39 = vshrl.u32 %v5858_v22, 16  ;;  %v926_v43 = vshll.u32 %v5858_v22, 16  ;;  %v5370_v53 = vld [vmem:[%s7177_s3 + $0x358] sm:$0xff]   ;;  %v5926_v2 = vld [vmem:[%s5774_s30 + $0x30] sm:$0xf] }
  0x22   : > { %4660 = vmatprep.subr.bf16.mxu1 %v5345_v25  ;;  %v4329_v18 = vcombine.low %v879_v4, %v5846_v13  ;;  %v5361_v24 = vld [vmem:[%s7177_s3 + $0x3c8] sm:$0xff]   ;;  %v909_v25 = vshrl.u32 %v852_v20, 16  ;;  %v5895_v46 = vsel %vm5813_vm5, %v902_v17, %v906_v8  ;;  %v5909_v52 = vcombine.low %v5793_v38, %v852_v20  ;;  %v5371_v54 = vld [vmem:[%s7177_s3 + $0x3d8] sm:$0xff]  }
  0x23   : > { %v925_v45 = vrot.slane %v923_v39, 4  ;;  %v4319_v57 = vrot.slane %v5858_v22, 9  ;;  %v856_v38 = vld [vmem:[%s5774_s30 + $0x28] sm:$0xf]  ;;  %v857_v60 = vld [vmem:[%s5774_s30 + $0x2c] sm:$0x1] }
  0x24   : > { %4621 = vmatpush3.bf16.msra.mxu0 %v5346_v26  ;;  %1758 = vmatprep.mubr.bf16.mxu0 %v4329_v18  ;;  %v912_v26 = vshll.u32 %v852_v20, 16  ;;  %v911_v32 = vrot.slane %v909_v25, 4  ;;  %v932_v62 = vshll.u32 %v855_v59, 16  ;;  %v937_v63 = vshrl.u32 %v856_v38, 16  ;;  %v5376_v18 = vld [vmem:[%s7177_s3 + $0x360] sm:$0xff]  }
  0x25   : > { %4661 = vmatpush3.bf16.msra.mxu1 %v5347_v27  ;;  %4622 = vmatprep.subr.bf16.mxu0 %v5348_v28  ;;  %v918_v27 = vshll.u32 %v853_v21, 16  ;;  %v4338_v28 = vcombine.low %v852_v20, %v5858_v22  ;;  %v940_v0 = vshll.u32 %v856_v38, 16  ;;  %v946_v1 = vshll.u32 %v857_v60, 16  ;;  %v859_v39 = vld [vmem:[%s5774_s30 + $0x34] sm:$0x1] }
  0x26   : > { %4662 = vmatprep.subr.bf16.mxu1 %v5349_v29  ;;  %v5869_v29 = vsel %vm5807_vm4, %v4317_v15, %v1004_v16  ;;  %v914_v33 = vrot.slane %v912_v26, 5  ;;  %v4339_v4 = vcombine.low %v856_v38, %v5926_v2  ;;  %v1012_v5 = vrot.slane %v855_v59, 5 }
  0x27   : > { %v920_v36 = vrot.slane %v918_v27, 5  ;;  %v934_v6 = vrot.slane %v932_v62, 5  ;;  %v942_v8 = vrot.slane %v940_v0, 5  ;;  %v4320_v15 = vrot.slane %v856_v38, 9  ;;  %v5378_v27 = vld [vmem:[%s7177_s3 + $0x3a8] sm:$0xff]  }
  0x28   : > { %4623 = vmatpush3.bf16.msra.mxu0 %v5350_v30  ;;  %v4318_v30 = vrot.slane %v852_v20, 9  ;;  %v915_v40 = vor.u32 %v914_v33, %v911_v32  ;;  %v1016_v16 = vrot.slane %v857_v60, 5  ;;  %v5972_v32 = vcombine.low %v5858_v22, %v856_v38  ;;  %v5380_v33 = vld [vmem:[%s7177_s3 + $0x368] sm:$0xff]   ;;  %v5384_v60 = vld [vmem:[%s7177_s3 + $0x3b0] sm:$0xff]  }
  0x29   : > { %4663 = vmatpush3.bf16.msra.mxu1 %v5351_v31  ;;  %4688 = vmatprep.subr.bf16.mxu0 %v5354_v50  ;;  %v1008_v31 = vrot.slane %v853_v21, 5  ;;  %v928_v50 = vrot.slane %v926_v43, 5  ;;  %v5377_v21 = vld [vmem:[%s7177_s3 + $0x3e0] sm:$0xff]   ;;  %v5381_v22 = vld [vmem:[%s7177_s3 + $0x3e8] sm:$0xff]  }
  0x2a   : > { %4728 = vmatprep.subr.bf16.mxu1 %v5355_v61  ;;  %v916_v47 = vrot.slane %v915_v40, 4  ;;  %v5947_v20 = vsel %vm5807_vm4, %v4320_v15, %v1016_v16  ;;  %v860_v40 = vld [vmem:[%s5774_s30 + $0x38] sm:$0xf] }
  0x2b   : > { %1759 = vmatmul.mubr.bf16.vlgmr.msra.gmra.mrb[0].mxu0 %v4325_v9  ;;  %v5879_v37 = vsel %vm5807_vm4, %v4318_v30, %v1008_v31  ;;  %v929_v61 = vor.u32 %v928_v50, %v925_v45  ;;  %v948_v9 = vrot.slane %v946_v1, 5  ;;  %v965_v45 = vshrl.u32 %v860_v40, 16 }
  0x2c   : > { %1824 = vmatmul.mubr.bf16.vlgmr.msra.gmra.mrb[0].mxu1 %v4333_v14  ;;  %4689 = vmatpush3.bf16.msra.mxu0 %v5356_v11  ;;  %v5884_v41 = vcombine.low %v5869_v29, %v5879_v37  ;;  %v5906_v51 = vsel %vm5813_vm5, %v916_v47, %v920_v36  ;;  %v5374_v11 = vld [vmem:[%s7177_s3 + $0x3a0] sm:$0xff]   ;;  %v5939_v14 = vsel %vm5807_vm4, %v4319_v57, %v1012_v5  ;;  %v4321_v36 = vrot.slane %v5926_v2, 9 }
  0x2d   : > { %4729 = vmatpush3.bf16.msra.mxu1 %v5357_v7  ;;  %1831 = vmatprep.mubr.bf16.mxu1 %v4338_v28  ;;  %v5920_v58 = vcombine.low %v5895_v46, %v5906_v51  ;;  %v930_v3 = vrot.slane %v929_v61, 4  ;;  %v939_v7 = vrot.slane %v937_v63, 4  ;;  %v5959_v26 = vcombine.low %v5939_v14, %v5947_v20  ;;  %v5379_v28 = vld [vmem:[%s7177_s3 + $0x428] sm:$0xff]   ;;  %v5385_v61 = vld [vmem:[%s7177_s3 + $0x430] sm:$0xff]  }
  0x2e   : > { %4730 = vmatprep.subr.bf16.mxu1 %v5359_v12  ;;  %4690 = vmatprep.subr.bf16.mxu0 %v5358_v19  ;;  %v5375_v12 = vld [vmem:[%s7177_s3 + $0x420] sm:$0xff]   ;;  %v951_v19 = vshrl.u32 %v5926_v2, 16  ;;  %v968_v47 = vshll.u32 %v860_v40, 16  ;;  %v967_v59 = vrot.slane %v965_v45, 4  ;;  %v4322_v63 = vrot.slane %v860_v40, 9 }
  0x2f   : > { %1766 = vmatprep.mubr.bf16.mxu0 %v5920_v58  ;;  %v943_v17 = vor.u32 %v942_v8, %v939_v7  ;;  %v6034_v16 = vcombine.low %v5926_v2, %v860_v40  ;;  %v6116_v45 = vld [vmem:[%s5774_s30 + $0x48] sm:$0xf] }
  0x30   : > { %4691 = vmatpush3.bf16.msra.mxu0 %v5360_v23  ;;  %v954_v23 = vshll.u32 %v5926_v2, 16  ;;  %v953_v30 = vrot.slane %v951_v19, 4  ;;  %v970_v38 = vrot.slane %v968_v47, 5  ;;  %v5391_v19 = vld [vmem:[%s7177_s3 + $0x3f8] sm:$0xff]   ;;  %v4345_v2 = vcombine.low %v5836_v10, %v5869_v29  ;;  %v5394_v10 = vld [vmem:[%s7177_s3] sm:$0xff]   ;;  %v5396_v29 = vld [vmem:[%s7177_s3 + $0x48] sm:$0xff]  }
  0x31   : > { %4731 = vmatpush3.bf16.msra.mxu1 %v5361_v24  ;;  %4692 = vmatprep.subr.bf16.mxu0 %v5364_v34  ;;  %v5955_v24 = vsel %vm5813_vm5, %v930_v3, %v934_v6  ;;  %v944_v25 = vrot.slane %v943_v17, 4  ;;  %v5387_v6 = vld [vmem:[%s7177_s3 + $0x3f0] sm:$0xff]   ;;  %v5390_v17 = vld [vmem:[%s7177_s3 + $0x378] sm:$0xff]  }
  0x32   : > { %4732 = vmatprep.subr.bf16.mxu1 %v5365_v35  ;;  %v956_v34 = vrot.slane %v954_v23, 5  ;;  %v971_v1 = vor.u32 %v970_v38, %v967_v59  ;;  %v5393_v23 = vld [vmem:[%s7177_s3 + $0x40] sm:$0xff]  }
  0x33   : > { %1767 = vmatmul.mubr.bf16.gmra.mrb[4].mxu0 %v5909_v52  ;;  %v5969_v31 = vsel %vm5813_vm5, %v944_v25, %v948_v9 }
  0x34   : > { %1832 = vmatmul.mubr.bf16.gmra.mrb[4].mxu1 %v5884_v41  ;;  %4693 = vmatpush3.bf16.msra.mxu0 %v5366_v44  ;;  %v5980_v35 = vcombine.low %v5955_v24, %v5969_v31  ;;  %v957_v43 = vor.u32 %v956_v34, %v953_v30  ;;  %v960_v44 = vshll.u32 %v859_v39, 16  ;;  %v972_v8 = vrot.slane %v971_v1, 4  ;;  %v5395_v30 = vld [vmem:[%s7177_s3 + $0x448] sm:$0xff]   ;;  %v5398_v34 = vld [vmem:[%s7177_s3 + $0x450] sm:$0xff]  }
  0x35   : > { %4733 = vmatpush3.bf16.msra.mxu1 %v5367_v42  ;;  %4694 = vmatprep.subr.bf16.mxu0 %v5368_v49  ;;  %v861_v42 = vld [vmem:[%s5774_s30 + $0x3c] sm:$0x1]  ;;  %v5991_v49 = vld [vmem:[%s5774_s30 + $0x40] sm:$0xf] }
  0x36   : > { %4734 = vmatprep.subr.bf16.mxu1 %v5369_v48  ;;  %1839 = vmatprep.mubr.bf16.mxu1 %v4339_v4  ;;  %v974_v48 = vshll.u32 %v861_v42, 16  ;;  %v4340_v50 = vcombine.low %v860_v40, %v5991_v49  ;;  %v962_v57 = vrot.slane %v960_v44, 5  ;;  %v1024_v0 = vrot.slane %v861_v42, 5  ;;  %v5386_v4 = vld [vmem:[%s7177_s3 + $0x370] sm:$0xff]   ;;  %v5406_v40 = vld [vmem:[%s7177_s3 + $0x20] sm:$0xff]  }
  0x37   : > { %1774 = vmatprep.mubr.bf16.mxu0 %v5980_v35  ;;  %v1030_v25 = vshll.u32 %v5991_v49, 16  ;;  %v863_v44 = vld [vmem:[%s5774_s30 + $0x44] sm:$0x1] }
  0x38   : > { %4695 = vmatpush3.bf16.msra.mxu0 %v5370_v53  ;;  %v1020_v53 = vrot.slane %v859_v39, 5  ;;  %v976_v3 = vrot.slane %v974_v48, 5  ;;  %v6010_v5 = vsel %vm5807_vm4, %v4322_v63, %v1024_v0  ;;  %v5403_v39 = vld [vmem:[%s7177_s3 + $0x18] sm:$0xff]   ;;  %v1044_v47 = vrot.slane %v863_v44, 5  ;;  %v5409_v63 = vld [vmem:[%s7177_s3 + $0x28] sm:$0xff]  }
  0x39   : > { %4735 = vmatpush3.bf16.msra.mxu1 %v5371_v54  ;;  %4696 = vmatprep.subr.bf16.mxu0 %v5374_v11  ;;  %v958_v54 = vrot.slane %v957_v43, 4  ;;  %v5388_v11 = vld [vmem:[%s7177_s3 + $0x3b8] sm:$0xff]   ;;  %v5404_v43 = vld [vmem:[%s7177_s3 + $0x460] sm:$0xff]   ;;  %v1036_v48 = vshll.u32 %v863_v44, 16 }
  0x3a   : > { %4736 = vmatprep.subr.bf16.mxu1 %v5375_v12  ;;  %v6003_v62 = vsel %vm5807_vm4, %v4321_v36, %v1020_v53  ;;  %v5389_v12 = vld [vmem:[%s7177_s3 + $0x438] sm:$0xff]   ;;  %v6031_v15 = vsel %vm5813_vm5, %v972_v8, %v976_v3  ;;  %v1050_v53 = vshll.u32 %v6116_v45, 16  ;;  %v4349_v8 = vcombine.low %v5991_v49, %v6116_v45 }
  0x3b   : > { %1775 = vmatmul.mubr.bf16.gmra.mrb[8].mxu0 %v5972_v32  ;;  %v6017_v7 = vsel %vm5813_vm5, %v958_v54, %v962_v57  ;;  %v6021_v9 = vcombine.low %v6003_v62, %v6010_v5  ;;  %v5401_v36 = vld [vmem:[%s7177_s3 + $0x458] sm:$0xff]   ;;  %v5408_v54 = vld [vmem:[%s7177_s3 + $0x68] sm:$0xff]   ;;  %v1038_v38 = vrot.slane %v1036_v48, 5 }
  0x3c   : > { %1840 = vmatmul.mubr.bf16.gmra.mrb[8].mxu1 %v5959_v26  ;;  %4697 = vmatpush3.bf16.msra.mxu0 %v5376_v18  ;;  %v4332_v18 = vcombine.low %v6017_v7, %v6031_v15  ;;  %v6222_v48 = vld [vmem:[%s6142_s9 + $0x18] sm:$0xf] }
  0x3d   : > { %4737 = vmatpush3.bf16.msra.mxu1 %v5377_v21  ;;  %4698 = vmatprep.subr.bf16.mxu0 %v5378_v27  ;;  %v5392_v21 = vld [vmem:[%s7177_s3 + $0x440] sm:$0xff]   ;;  %v4341_v27 = vcombine.low %v5846_v13, %v5895_v46  ;;  %v5399_v46 = vld [vmem:[%s7177_s3 + $0x50] sm:$0xff]  }
  0x3e   : > { %4738 = vmatprep.subr.bf16.mxu1 %v5379_v28  ;;  %1847 = vmatprep.mubr.bf16.mxu1 %v4340_v50  ;;  %v5397_v28 = vld [vmem:[%s7177_s3 + $0x8] sm:$0xff]   ;;  %v1047_v50 = vshrl.u32 %v6116_v45, 16 }
  0x3f   : > { %1782 = vmatprep.mubr.bf16.mxu0 %v4332_v18 }
  0x40   : > { %4699 = vmatpush3.bf16.msra.mxu0 %v5380_v33  ;;  %v4346_v33 = vcombine.low %v5879_v37, %v5939_v14  ;;  %v5402_v37 = vld [vmem:[%s7177_s3 + $0x58] sm:$0xff]  }
  0x41   : > { %4739 = vmatpush3.bf16.msra.mxu1 %v5381_v22  ;;  %4700 = vmatprep.subr.bf16.mxu0 %v5384_v60  ;;  %v4342_v22 = vcombine.low %v5906_v51, %v5955_v24  ;;  %v4347_v51 = vcombine.low %v5947_v20, %v6003_v62  ;;  %v5405_v24 = vld [vmem:[%s7177_s3 + $0x60] sm:$0xff]   ;;  %v6119_v20 = vld [vmem:[%s5774_s30 + $0x4c] sm:$0x1]  ;;  %v1049_v60 = vrot.slane %v1047_v50, 4  ;;  %v4343_v62 = vcombine.low %v5969_v31, %v6017_v7  ;;  %v5412_v7 = vld [vmem:[%s7177_s3 + $0x70] sm:$0xff]   ;;  %s363_s30 = sadd.s32 2, %s5585_s21 }
  0x42   : > { %4740 = vmatprep.subr.bf16.mxu1 %v5385_v61  ;;  %v1056_v57 = vshll.u32 %v6119_v20, 16  ;;  %v1052_v61 = vrot.slane %v1050_v53, 5  ;;  %v5407_v31 = vld [vmem:[%s7177_s3 + $0x468] sm:$0xff]   ;;  %v6225_v50 = vld [vmem:[%s6142_s9 + $0x1c] sm:$0x1]  ;;  %p6487_p8 = scmp.lt.s32.totalorder %s363_s30, 9 }
  0x43   : > { %1783 = vmatmul.mubr.bf16.gmra.mrb[12].mxu0 %v6034_v16  ;;  %s7203_s21 = smov (!%p376_p9, %s5585_s21), 7 }
  0x44   : > { %4701 = vmatpush3.bf16.msra.mxu0 %v5386_v4  ;;  %1848 = vmatmul.mubr.bf16.gmra.mrb[12].mxu1 %v6021_v9  ;;  %v1053_v0 = vor.u32 %v1052_v61, %v1049_v60  ;;  %v1058_v1 = vrot.slane %v1056_v57, 5  ;;  %v461_v60 = vshll.u32 %v6222_v48, 16  ;;  %v467_v61 = vshll.u32 %v6225_v50, 16  ;;  %s7201_s30 = smov (!%p6487_p8, %s363_s30), 9  ;;  %s4273_s14 = sshll.u32 %s7203_s21, 3 }
  0x45   : > { %4741 = vmatpush3.bf16.msra.mxu1 %v5387_v6  ;;  %4702 = vmatprep.subr.bf16.mxu0 %v5388_v11  ;;  %v6157_v11 = vld [vmem:[%s6142_s9] sm:$0xf]  ;;  %s5279_s11 = smul.u32 20, %s7201_s30  ;;  %s380_s12 = sadd.s32 %s4274_s29, %s4273_s14 }
  0x46   : > { %4742 = vmatprep.subr.bf16.mxu1 %v5389_v12  ;;  %1953 = vmatprep.mubr.bf16.mxu1 %v5920_v58  ;;  %v1027_v58 = vshrl.u32 %v5991_v49, 16  ;;  %v1054_v6 = vrot.slane %v1053_v0, 4  ;;  %v6160_v12 = vld [vmem:[%s6142_s9 + $0x4] sm:$0x1]  ;;  %s4275_s15 = sshll.u32 %s380_s12, 3 }
  0x47   : > { %1888 = vmatprep.mubr.bf16.mxu0 %v4345_v2  ;;  %v425_v2 = vshll.u32 %v6160_v12, 16  ;;  %s370_s20 = sadd.s32 %s5279_s11, %s5735_s10  ;;  %s7141_s18 = scalar_lea.vmem %s7179_s5, %s4275_s15 }
  0x48   : > { %4703 = vmatpush3.bf16.msra.mxu0 %v5390_v17  ;;  %v1029_v13 = vrot.slane %v1027_v58, 4  ;;  %v5411_v17 = vld [vmem:[%s7177_s3 + $0x470] sm:$0xff]   ;;  %s4272_s10 = sshll.u32 %s370_s20, 2 }
  0x49   : > { %4743 = vmatpush3.bf16.msra.mxu1 %v5391_v19  ;;  %5124 = vmatprep.subr.bf16.mxu0 %v5392_v21  ;;  %v416_v19 = vshrl.u32 %v6157_v11, 16  ;;  %s6586_s30 = scalar_lea.vmem %s7176_s2, %s4272_s10 }
  0x4a   : > { %4780 = vmatprep.subr.bf16.mxu1 %v5393_v23  ;;  %v5413_v23 = vld [vmem:[%s7177_s3 + $0x30] sm:$0xff]  }
  0x4b   : > { %1889 = vmatmul.mubr.bf16.vlgmr.msra.gmra.mrb[16].mxu0 %v4341_v27  ;;  %v5415_v27 = vld [vmem:[%s7177_s3 + $0x78] sm:$0xff]  }
  0x4c   : > { %1954 = vmatmul.mubr.bf16.vlgmr.msra.gmra.mrb[16].mxu1 %v5909_v52  ;;  %v1032_v52 = vrot.slane %v1030_v25, 5  ;;  %5125 = vmatpush3.bf16.msra.mxu0 %v5392_v21 }
  0x4d   : > { %4781 = vmatpush3.bf16.msra.mxu1 %v5394_v10  ;;  %1961 = vmatprep.mubr.bf16.mxu1 %v5980_v35  ;;  %v5400_v35 = vld [vmem:[%s7177_s3 + $0x10] sm:$0xff]  }
  0x4e   : > { %4782 = vmatprep.subr.bf16.mxu1 %v5396_v29  ;;  %5126 = vmatprep.subr.bf16.mxu0 %v5395_v30  ;;  %v1033_v14 = vor.u32 %v1032_v52, %v1029_v13  ;;  %v5416_v13 = vld [vmem:[%s7177_s3 + $0x38] sm:$0xff]  }
  0x4f   : > { %1896 = vmatprep.mubr.bf16.mxu0 %v4346_v33  ;;  %v5414_v33 = vld [vmem:[%s7177_s3 + $0x478] sm:$0xff]  }
  0x50   : > { %5127 = vmatpush3.bf16.msra.mxu0 %v5395_v30  ;;  %v1034_v42 = vrot.slane %v1033_v14, 4 }
  0x51   : > { %4783 = vmatpush3.bf16.msra.mxu1 %v5397_v28  ;;  %5128 = vmatprep.subr.bf16.mxu0 %v5398_v34  ;;  %v418_v28 = vrot.slane %v416_v19, 4 }
  0x52   : > { %4784 = vmatprep.subr.bf16.mxu1 %v5399_v46  ;;  %v1039_v4 = vsel %vm5813_vm5, %v1034_v42, %v1038_v38  ;;  %v427_v46 = vrot.slane %v425_v2, 5  ;;  %v5423_v42 = vld [vmem:[%s7177_s3 + $0x148] sm:$0xff]   ;;  %v458_v38 = vshrl.u32 %v6222_v48, 16  ;;  %v5429_v2 = vld [vmem:[%s7177_s3 + $0x90] sm:$0xff]  }
  0x53   : > { %1897 = vmatmul.mubr.bf16.gmra.mrb[20].mxu0 %v4342_v22  ;;  %v4344_v25 = vcombine.low %v6031_v15, %v1039_v4  ;;  %v5419_v22 = vld [vmem:[%s7177_s3 + $0x140] sm:$0xff]  }
  0x54   : > { %1962 = vmatmul.mubr.bf16.gmra.mrb[20].mxu1 %v5972_v32  ;;  %v4323_v32 = vrot.slane %v5991_v49, 9  ;;  %5129 = vmatpush3.bf16.msra.mxu0 %v5398_v34  ;;  %v419_v49 = vshll.u32 %v6157_v11, 16 }
  0x55   : > { %4785 = vmatpush3.bf16.msra.mxu1 %v5400_v35  ;;  %1969 = vmatprep.mubr.bf16.mxu1 %v4332_v18  ;;  %v6171_v18 = vld [vmem:[%s6142_s9 + $0xc] sm:$0x1] }
  0x56   : > { %4786 = vmatprep.subr.bf16.mxu1 %v5402_v37  ;;  %5130 = vmatprep.subr.bf16.mxu0 %v5401_v36  ;;  %v6129_v59 = vsel %vm5807_vm4, %v4323_v32, %v1044_v47  ;;  %v439_v58 = vshll.u32 %v6171_v18, 16  ;;  %v421_v30 = vrot.slane %v419_v49, 5  ;;  %v6219_v47 = vld [vmem:[%s6142_s9 + $0x14] sm:$0x1] }
  0x57   : > { %1904 = vmatprep.mubr.bf16.mxu0 %v4347_v51  ;;  %v4348_v3 = vcombine.low %v6010_v5, %v6129_v59  ;;  %v1059_v5 = vsel %vm5813_vm5, %v1054_v6, %v1058_v1  ;;  %v453_v57 = vshll.u32 %v6219_v47, 16 }
  0x58   : > { %5131 = vmatpush3.bf16.msra.mxu0 %v5401_v36  ;;  %v4350_v21 = vcombine.low %v1039_v4, %v1059_v5  ;;  %v441_v15 = vrot.slane %v439_v58, 5  ;;  %v422_v35 = vor.u32 %v421_v30, %v418_v28  ;;  %v463_v4 = vrot.slane %v461_v60, 5  ;;  %v6284_v28 = vld [vmem:[%s6142_s9 + $0x20] sm:$0xf] }
  0x59   : > { %4787 = vmatpush3.bf16.msra.mxu1 %v5403_v39  ;;  %5132 = vmatprep.subr.bf16.mxu0 %v5404_v43  ;;  %v5418_v39 = vld [vmem:[%s7177_s3 + $0xc0] sm:$0xff]   ;;  %v4278_v30 = vrot.slane %v6157_v11, 9 }
  0x5a   : > { %4788 = vmatprep.subr.bf16.mxu1 %v5405_v24  ;;  %v423_v14 = vrot.slane %v422_v35, 4  ;;  %v5421_v24 = vld [vmem:[%s7177_s3 + $0x100] sm:$0xff]   ;;  %v472_v35 = vshrl.u32 %v6284_v28, 16 }
  0x5b   : > { %1905 = vmatmul.mubr.bf16.gmra.mrb[24].mxu0 %v4343_v62  ;;  %v1064_v62 = vrot.slane %v6119_v20, 5  ;;  %v455_v20 = vrot.slane %v453_v57, 5 }
  0x5c   : > { %1970 = vmatmul.mubr.bf16.gmra.mrb[24].mxu1 %v6034_v16  ;;  %v6163_v16 = vld [vmem:[%s6142_s9 + $0x8] sm:$0xf]  ;;  %5133 = vmatpush3.bf16.msra.mxu0 %v5404_v43  ;;  %v428_v51 = vsel %vm5813_vm5, %v423_v14, %v427_v46  ;;  %v6214_v43 = vld [vmem:[%s6142_s9 + $0x10] sm:$0xf] }
  0x5d   : > { %4789 = vmatpush3.bf16.msra.mxu1 %v5406_v40  ;;  %5134 = vmatprep.subr.bf16.mxu0 %v5407_v31  ;;  %v430_v10 = vshrl.u32 %v6163_v16, 16  ;;  %v433_v29 = vshll.u32 %v6163_v16, 16  ;;  %v4288_v40 = vcombine.low %v6157_v11, %v6163_v16  ;;  %v444_v53 = vshrl.u32 %v6214_v43, 16  ;;  %v6295_v46 = vld [vmem:[%s6142_s9 + $0x28] sm:$0xf] }
  0x5e   : > { %4790 = vmatprep.subr.bf16.mxu1 %v5408_v54  ;;  %1912 = vmatprep.mubr.bf16.mxu0 %v4348_v3  ;;  %v447_v54 = vshll.u32 %v6214_v43, 16  ;;  %v5425_v3 = vld [vmem:[%s7177_s3 + $0x108] sm:$0xff]   ;;  %v4281_v11 = vrot.slane %v6222_v48, 9 }
  0x5f   : > { %1977 = vmatprep.mubr.bf16.mxu1 %v4350_v21  ;;  %v432_v52 = vrot.slane %v430_v10, 4  ;;  %v435_v34 = vrot.slane %v433_v29, 5  ;;  %v446_v0 = vrot.slane %v444_v53, 4  ;;  %v5430_v21 = vld [vmem:[%s7177_s3 + $0x110] sm:$0xff]   ;;  %v5431_v10 = vld [vmem:[%s7177_s3 + $0xd8] sm:$0xff]   ;;  %v5436_v53 = vld [vmem:[%s7177_s3 + $0xe0] sm:$0xff]  }
  0x60   : > { %5135 = vmatpush3.bf16.msra.mxu0 %v5407_v31  ;;  %v449_v1 = vrot.slane %v447_v54, 5  ;;  %v460_v31 = vrot.slane %v458_v38, 4  ;;  %v5432_v29 = vld [vmem:[%s7177_s3 + $0x158] sm:$0xff]   ;;  %v5438_v38 = vld [vmem:[%s7177_s3 + $0xa0] sm:$0xff]  }
  0x61   : > { %4791 = vmatpush3.bf16.msra.mxu1 %v5409_v63  ;;  %5136 = vmatprep.subr.bf16.mxu0 %v5411_v17  ;;  %v436_v37 = vor.u32 %v435_v34, %v432_v52  ;;  %v5422_v63 = vld [vmem:[%s7177_s3 + $0xc8] sm:$0xff]  }
  0x62   : > { %4792 = vmatprep.subr.bf16.mxu1 %v5412_v7  ;;  %v450_v6 = vor.u32 %v449_v1, %v446_v0  ;;  %v5428_v7 = vld [vmem:[%s7177_s3 + $0x150] sm:$0xff]   ;;  %v464_v5 = vor.u32 %v463_v4, %v460_v31  ;;  %v6298_v52 = vld [vmem:[%s6142_s9 + $0x2c] sm:$0x1]  ;;  %v4279_v4 = vrot.slane %v6163_v16, 9 }
  0x63   : > { %1913 = vmatmul.mubr.bf16.gmra.mrb[28].mxu0 %v4344_v25  ;;  %v437_v36 = vrot.slane %v436_v37, 4  ;;  %v6278_v25 = vcombine.low %v6214_v43, %v6222_v48  ;;  %v475_v37 = vshll.u32 %v6284_v28, 16  ;;  %v5441_v1 = vld [vmem:[%s7177_s3 + $0x168] sm:$0xff]  }
  0x64   : > { %1978 = vmatmul.mubr.bf16.gmra.mrb[28].mxu1 %v4349_v8  ;;  %5137 = vmatpush3.bf16.msra.mxu0 %v5411_v17  ;;  %v5424_v8 = vld [vmem:[%s7177_s3 + $0x88] sm:$0xff]   ;;  %v469_v17 = vrot.slane %v467_v61, 5  ;;  %v451_v19 = vrot.slane %v450_v6, 4  ;;  %v465_v49 = vrot.slane %v464_v5, 4  ;;  %v5439_v61 = vld [vmem:[%s7177_s3 + $0x120] sm:$0xff]   ;;  %v552_v5 = vrot.slane %v6171_v18, 5 }
  0x65   : > { %4793 = vmatpush3.bf16.msra.mxu1 %v5413_v23  ;;  %5140 = vmatprep.mubr.bf16.mxu0 %v5884_v41  ;;  %v6206_v32 = vsel %vm5813_vm5, %v437_v36, %v441_v15  ;;  %v4324_v41 = vrot.slane %v6116_v45, 9  ;;  %v5420_v45 = vld [vmem:[%s7177_s3 + $0x80] sm:$0xff]   ;;  %v4300_v15 = vcombine.low %v6163_v16, %v6214_v43  ;;  %v489_v36 = vshll.u32 %v6295_v46, 16 }
  0x66   : > { %4794 = vmatprep.subr.bf16.mxu1 %v5415_v27  ;;  %5138 = vmatprep.subr.bf16.mxu0 %v5414_v33  ;;  %v4292_v44 = vcombine.low %v428_v51, %v6206_v32  ;;  %v6264_v23 = vsel %vm5813_vm5, %v451_v19, %v455_v20  ;;  %v6274_v58 = vsel %vm5813_vm5, %v465_v49, %v469_v17  ;;  %v5434_v27 = vld [vmem:[%s7177_s3 + $0x118] sm:$0xff]   ;;  %v548_v51 = vrot.slane %v6160_v12, 5  ;;  %v6361_v17 = vld [vmem:[%s6142_s9 + $0x34] sm:$0x1] }
  0x67   : > { %v6347_v20 = vcombine.low %v6284_v28, %v6295_v46  ;;  %v6364_v19 = vld [vmem:[%s6142_s9 + $0x38] sm:$0xf] }
  0x68   : > { %5139 = vmatpush3.bf16.msra.mxu0 %v5414_v33  ;;  %2515 = vmatprep.mubr.bf16.mxu1 %v4292_v44  ;;  %v6289_v33 = vcombine.low %v6264_v23, %v6274_v58  ;;  %v491_v44 = vrot.slane %v489_v36, 5  ;;  %v514_v18 = vshrl.u32 %v6364_v19, 16  ;;  %v5451_v12 = vld [vmem:[%s7177_s3 + $0xb8] sm:$0xff]  }
  0x69   : > { %4795 = vmatpush3.bf16.msra.mxu1 %v5416_v13  ;;  %4820 = vmatprep.subr.bf16.mxu0 %v5418_v39  ;;  %v6292_v13 = vld [vmem:[%s6142_s9 + $0x24] sm:$0x1]  ;;  %v495_v39 = vshll.u32 %v6298_v52, 16 }
  0x6a   : > { %4860 = vmatprep.subr.bf16.mxu1 %v5419_v22  ;;  %v481_v14 = vshll.u32 %v6292_v13, 16  ;;  %v486_v22 = vshrl.u32 %v6295_v46, 16 }
  0x6b   : > { %5141 = vmatmul.mubr.bf16.vlgmr.msra.gmra.mrb[32].mxu0 %v5959_v26  ;;  %v5427_v26 = vld [vmem:[%s7177_s3 + $0xd0] sm:$0xff]   ;;  %v497_v60 = vrot.slane %v495_v39, 5 }
  0x6c   : > { %2516 = vmatmul.mubr.bf16.vlgmr.msra.gmra.mrb[32].mxu1 %v4288_v40  ;;  %4821 = vmatpush3.bf16.msra.mxu0 %v5420_v45  ;;  %v474_v40 = vrot.slane %v472_v35, 4  ;;  %v483_v57 = vrot.slane %v481_v14, 5  ;;  %v516_v35 = vrot.slane %v514_v18, 4  ;;  %v568_v18 = vrot.slane %v6298_v52, 5  ;;  %v5465_v52 = vld [vmem:[%s7177_s3 + $0x190] sm:$0xff]  }
  0x6d   : > { %4861 = vmatpush3.bf16.msra.mxu1 %v5421_v24  ;;  %5144 = vmatprep.mubr.bf16.mxu0 %v6021_v9  ;;  %v1065_v9 = vsel %vm5807_vm4, %v4324_v41, %v1064_v62  ;;  %v5433_v24 = vld [vmem:[%s7177_s3 + $0x98] sm:$0xff]   ;;  %v488_v41 = vrot.slane %v486_v22, 4  ;;  %v556_v22 = vrot.slane %v6219_v47, 5 }
  0x6e   : > { %4862 = vmatprep.subr.bf16.mxu1 %v5423_v42  ;;  %4822 = vmatprep.subr.bf16.mxu0 %v5422_v63  ;;  %v4351_v34 = vcombine.low %v6129_v59, %v1065_v9  ;;  %v5437_v59 = vld [vmem:[%s7177_s3 + $0x160] sm:$0xff]   ;;  %v477_v42 = vrot.slane %v475_v37, 5  ;;  %v5440_v63 = vld [vmem:[%s7177_s3 + $0xe8] sm:$0xff]   ;;  %v517_v9 = vshll.u32 %v6364_v19, 16  ;;  %v4280_v37 = vrot.slane %v6214_v43, 9  ;;  %v5449_v43 = vld [vmem:[%s7177_s3 + $0xf8] sm:$0xff]  }
  0x6f   : > { %2523 = vmatprep.mubr.bf16.mxu1 %v6289_v33  ;;  %v492_v45 = vor.u32 %v491_v44, %v488_v41  ;;  %v5450_v47 = vld [vmem:[%s7177_s3 + $0x178] sm:$0xff]  }
  0x70   : > { %4823 = vmatpush3.bf16.msra.mxu0 %v5424_v8  ;;  %v478_v54 = vor.u32 %v477_v42, %v474_v40  ;;  %v6353_v8 = vld [vmem:[%s6142_s9 + $0x30] sm:$0xf]  ;;  %v519_v14 = vrot.slane %v517_v9, 5 }
  0x71   : > { %4863 = vmatpush3.bf16.msra.mxu1 %v5425_v3  ;;  %4824 = vmatprep.subr.bf16.mxu0 %v5427_v26  ;;  %v493_v0 = vrot.slane %v492_v45, 4  ;;  %v5442_v3 = vld [vmem:[%s7177_s3 + $0xa8] sm:$0xff]   ;;  %v6367_v26 = vld [vmem:[%s6142_s9 + $0x3c] sm:$0x1]  ;;  %v500_v49 = vshrl.u32 %v6353_v8, 16  ;;  %v5448_v42 = vld [vmem:[%s7177_s3 + $0x130] sm:$0xff]  }
  0x72   : > { %4864 = vmatprep.subr.bf16.mxu1 %v5428_v7  ;;  %v479_v62 = vrot.slane %v478_v54, 4  ;;  %v5443_v7 = vld [vmem:[%s7177_s3 + $0x128] sm:$0xff]   ;;  %v553_v54 = vsel %vm5807_vm4, %v4279_v4, %v552_v5  ;;  %v5452_v45 = vld [vmem:[%s7177_s3 + $0x138] sm:$0xff]   ;;  %v564_v4 = vrot.slane %v6292_v13, 5 }
  0x73   : > { %5145 = vmatmul.mubr.bf16.gmra.mrb[36].mxu0 %v4351_v34  ;;  %v6343_v6 = vsel %vm5813_vm5, %v493_v0, %v497_v60  ;;  %v502_v34 = vrot.slane %v500_v49, 4  ;;  %v560_v60 = vrot.slane %v6225_v50, 5  ;;  %v5454_v0 = vld [vmem:[%s7177_s3 + $0x1c0] sm:$0xff]   ;;  %v4301_v50 = vcombine.low %v6222_v48, %v6284_v28  ;;  %v5458_v5 = vld [vmem:[%s7177_s3 + $0x1c8] sm:$0xff]  }
  0x74   : > { %2524 = vmatmul.mubr.bf16.gmra.mrb[36].mxu1 %v6278_v25  ;;  %4825 = vmatpush3.bf16.msra.mxu0 %v5429_v2  ;;  %v6335_v31 = vsel %vm5813_vm5, %v479_v62, %v483_v57  ;;  %v503_v2 = vshll.u32 %v6353_v8, 16  ;;  %v557_v57 = vsel %vm5807_vm4, %v4280_v37, %v556_v22  ;;  %v5460_v13 = vld [vmem:[%s7177_s3 + $0x188] sm:$0xff]   ;;  %v4283_v49 = vrot.slane %v6295_v46, 9  ;;  %v5469_v37 = vld [vmem:[%s7177_s3 + $0x198] sm:$0xff]   ;;  %v5466_v22 = vld [vmem:[%s7177_s3 + $0x490] sm:$0xff]  }
  0x75   : > { %4865 = vmatpush3.bf16.msra.mxu1 %v5430_v21  ;;  %4826 = vmatprep.subr.bf16.mxu0 %v5431_v10  ;;  %v6358_v16 = vcombine.low %v6335_v31, %v6343_v6  ;;  %v509_v21 = vshll.u32 %v6361_v17, 16  ;;  %v523_v10 = vshll.u32 %v6367_v26, 16  ;;  %v561_v48 = vsel %vm5807_vm4, %v4281_v11, %v560_v60  ;;  %v409_v11 = vld [vmem:[%s6142_s9 + $0x44] sm:$0x1] }
  0x76   : > { %4866 = vmatprep.subr.bf16.mxu1 %v5432_v29  ;;  %2580 = vmatprep.mubr.bf16.mxu0 %v4300_v15  ;;  %v5445_v29 = vld [vmem:[%s7177_s3 + $0xf0] sm:$0xff]   ;;  %v505_v15 = vrot.slane %v503_v2, 5  ;;  %v4304_v2 = vcombine.low %v6206_v32, %v6264_v23  ;;  %v6471_v32 = vcombine.low %v557_v57, %v561_v48  ;;  %v572_v23 = vrot.slane %v6361_v17, 5 }
  0x77   : > { %2531 = vmatprep.mubr.bf16.mxu1 %v6358_v16  ;;  %v511_v39 = vrot.slane %v509_v21, 5  ;;  %v525_v40 = vrot.slane %v523_v10, 5  ;;  %v5457_v21 = vld [vmem:[%s7177_s3 + $0x480] sm:$0xff]   ;;  %v5463_v10 = vld [vmem:[%s7177_s3 + $0x1d0] sm:$0xff]  }
  0x78   : > { %4827 = vmatpush3.bf16.msra.mxu0 %v5433_v24  ;;  %v506_v36 = vor.u32 %v505_v15, %v502_v34  ;;  %v520_v24 = vor.u32 %v519_v14, %v516_v35  ;;  %v4302_v34 = vcombine.low %v6295_v46, %v6353_v8  ;;  %v5461_v15 = vld [vmem:[%s7177_s3 + $0x488] sm:$0xff]   ;;  %v5467_v35 = vld [vmem:[%s7177_s3 + $0x1d8] sm:$0xff]   ;;  %v5464_v46 = vld [vmem:[%s7177_s3 + $0x4d0] sm:$0xff]   ;;  %v4305_v14 = vcombine.low %v6274_v58, %v6335_v31 }
  0x79   : > { %4867 = vmatpush3.bf16.msra.mxu1 %v5434_v27  ;;  %4828 = vmatprep.subr.bf16.mxu0 %v5436_v53  ;;  %v5446_v27 = vld [vmem:[%s7177_s3 + $0x170] sm:$0xff]   ;;  %v549_v53 = vsel %vm5807_vm4, %v4278_v30, %v548_v51  ;;  %v6421_v51 = vcombine.low %v6353_v8, %v6364_v19  ;;  %v5468_v58 = vld [vmem:[%s7177_s3 + $0x4d8] sm:$0xff]  }
  0x7a   : > { %4868 = vmatprep.subr.bf16.mxu1 %v5437_v59  ;;  %v5447_v59 = vld [vmem:[%s7177_s3 + $0xb0] sm:$0xff]   ;;  %v507_v41 = vrot.slane %v506_v36, 4  ;;  %v521_v44 = vrot.slane %v520_v24, 4  ;;  %v4296_v62 = vcombine.low %v549_v53, %v553_v54  ;;  %v5474_v24 = vld [vmem:[%s7177_s3 + $0x1a0] sm:$0xff]  }
  0x7c   : > { %4829 = vmatpush3.bf16.msra.mxu0 %v5438_v38  ;;  %2532 = vmatmul.mubr.bf16.gmra.mrb[40].mxu1 %v6347_v20  ;;  %v6409_v38 = vsel %vm5813_vm5, %v507_v41, %v511_v39  ;;  %v6417_v30 = vsel %vm5813_vm5, %v521_v44, %v525_v40  ;;  %v5472_v39 = vld [vmem:[%s7177_s3 + $0x1e0] sm:$0xff]   ;;  %v576_v40 = vrot.slane %v6367_v26, 5  ;;  %v5476_v41 = vld [vmem:[%s7177_s3 + $0x1e8] sm:$0xff]  }
  0x7d   : > { %4869 = vmatpush3.bf16.msra.mxu1 %v5439_v61  ;;  %4830 = vmatprep.subr.bf16.mxu0 %v5440_v63  ;;  %v6429_v61 = vcombine.low %v6409_v38, %v6417_v30  ;;  %v4308_v63 = vcombine.low %v553_v54, %v557_v57  ;;  %v5473_v26 = vld [vmem:[%s7177_s3 + $0x4e0] sm:$0xff]   ;;  %v5478_v44 = vld [vmem:[%s7177_s3 + $0x1a8] sm:$0xff]   ;;  %v4306_v53 = vcombine.low %v6343_v6, %v6409_v38  ;;  %v5481_v6 = vld [vmem:[%s7177_s3 + $0x1f0] sm:$0xff]   ;;  %v596_v38 = vrot.slane %v409_v11, 5 }
  0x7e   : > { %4870 = vmatprep.subr.bf16.mxu1 %v5441_v1  ;;  %v4282_v1 = vrot.slane %v6284_v28, 9  ;;  %v5477_v54 = vld [vmem:[%s7177_s3 + $0x4e8] sm:$0xff]   ;;  %v6551_v57 = vld [vmem:[%s6142_s9 + $0x40] sm:$0xf] }
  0x7f   : > { %2539 = vmatprep.mubr.bf16.mxu1 %v6429_v61  ;;  %v579_v60 = vshrl.u32 %v6551_v57, 16 }
  0x80   : > { %4831 = vmatpush3.bf16.msra.mxu0 %v5442_v3  ;;  %v5455_v3 = vld [vmem:[%s7177_s3 + $0x4c0] sm:$0xff]   ;;  %v565_v28 = vsel %vm5807_vm4, %v4282_v1, %v564_v4 }
  0x81   : > { %4871 = vmatpush3.bf16.msra.mxu1 %v5443_v7  ;;  %4832 = vmatprep.subr.bf16.mxu0 %v5445_v29  ;;  %v5456_v7 = vld [vmem:[%s7177_s3 + $0x180] sm:$0xff]   ;;  %v4309_v9 = vcombine.low %v561_v48, %v565_v28  ;;  %v4284_v29 = vrot.slane %v6353_v8, 9  ;;  %v569_v8 = vsel %vm5807_vm4, %v4283_v49, %v568_v18  ;;  %v5483_v48 = vld [vmem:[%s7177_s3 + $0x1b0] sm:$0xff]   ;;  %v5485_v49 = vld [vmem:[%s7177_s3 + $0x1f8] sm:$0xff]  }
  0x82   : > { %4872 = vmatprep.subr.bf16.mxu1 %v5446_v27  ;;  %v5459_v27 = vld [vmem:[%s7177_s3 + $0x4c8] sm:$0xff]   ;;  %v6519_v31 = vcombine.low %v565_v28, %v569_v8  ;;  %v5482_v28 = vld [vmem:[%s7177_s3 + $0x4f0] sm:$0xff]   ;;  %v5487_v18 = vld [vmem:[%s7177_s3 + $0x1b8] sm:$0xff]  }
  0x83   : > { %v573_v17 = vsel %vm5807_vm4, %v4284_v29, %v572_v23  ;;  %v6605_v29 = vld [vmem:[%s6586_s30] sm:$0xf]  ;;  %v6614_v23 = vld [vmem:[%s6586_s30 + $0xc] sm:$0x1] }
  0x84   : > { %4833 = vmatpush3.bf16.msra.mxu0 %v5447_v59  ;;  %2540 = vmatmul.mubr.bf16.gmra.mrb[44].mxu1 %v6421_v51  ;;  %v4310_v36 = vcombine.low %v569_v8, %v573_v17  ;;  %v4285_v59 = vrot.slane %v6364_v19, 9  ;;  %v5488_v8 = vld [vmem:[%s7177_s3 + $0x4b8] sm:$0xff]  }
  0x85   : > { %4873 = vmatpush3.bf16.msra.mxu1 %v5448_v42  ;;  %4834 = vmatprep.subr.bf16.mxu0 %v5449_v43  ;;  %v5470_v42 = vld [vmem:[%s7177_s3 + $0x498] sm:$0xff]   ;;  %v5475_v43 = vld [vmem:[%s7177_s3 + $0x4a0] sm:$0xff]  }
  0x86   : > { %4874 = vmatprep.subr.bf16.mxu1 %v5450_v47  ;;  %2645 = vmatprep.mubr.bf16.mxu1 %v4308_v63  ;;  %v577_v47 = vsel %vm5807_vm4, %v4285_v59, %v576_v40 }
  0x87   : > { %v6563_v63 = vcombine.low %v573_v17, %v577_v47 }
  0x88   : > { %4835 = vmatpush3.bf16.msra.mxu0 %v5451_v12  ;;  %v4303_v12 = vcombine.low %v6364_v19, %v6551_v57  ;;  %v581_v19 = vrot.slane %v579_v60, 4 }
  0x89   : > { %4875 = vmatpush3.bf16.msra.mxu1 %v5452_v45  ;;  %4900 = vmatprep.subr.bf16.mxu0 %v5454_v0  ;;  %v4286_v45 = vrot.slane %v6551_v57, 9  ;;  %v588_v0 = vshll.u32 %v409_v11, 16 }
  0x8a   : > { %4952 = vmatprep.subr.bf16.mxu1 %v5455_v3  ;;  %v5479_v3 = vld [vmem:[%s7177_s3 + $0x4a8] sm:$0xff]  }
  0x8b   : > { %2581 = vmatmul.mubr.bf16.vlgmr.msra.gmra.mrb[40].mxu0 %v4296_v62  ;;  %v582_v62 = vshll.u32 %v6551_v57, 16 }
  0x8c   : > { %4901 = vmatpush3.bf16.msra.mxu0 %v5456_v7  ;;  %2588 = vmatprep.mubr.bf16.mxu0 %v4301_v50  ;;  %v6570_v50 = vsel %vm5807_vm4, %v4286_v45, %v596_v38  ;;  %v5494_v38 = vld [vmem:[%s7177_s3 + $0x548] sm:$0xff]  }
  0x8d   : > { %4902 = vmatprep.subr.bf16.mxu0 %v5458_v5  ;;  %2646 = vmatmul.mubr.bf16.vlgmr.msra.gmra.mrb[48].mxu1 %v4304_v2  ;;  %v584_v1 = vrot.slane %v582_v62, 5  ;;  %v4311_v4 = vcombine.low %v577_v47, %v6570_v50  ;;  %v590_v5 = vrot.slane %v588_v0, 5  ;;  %v5484_v2 = vld [vmem:[%s7177_s3 + $0x4b0] sm:$0xff]  }
  0x8e   : > { %4953 = vmatpush3.bf16.msra.mxu1 %v5457_v21  ;;  %2653 = vmatprep.mubr.bf16.mxu1 %v4309_v9 }
  0x8f   : > { %4954 = vmatprep.subr.bf16.mxu1 %v5459_v27  ;;  %v585_v7 = vor.u32 %v584_v1, %v581_v19  ;;  %v6611_v27 = vld [vmem:[%s6586_s30 + $0x8] sm:$0xf] }
  0x90   : > { %4903 = vmatpush3.bf16.msra.mxu0 %v5460_v13  ;;  %v4506_v47 = vcombine.low %v6605_v29, %v6611_v27 }
  0x91   : > { %4904 = vmatprep.subr.bf16.mxu0 %v5463_v10  ;;  %v586_v13 = vrot.slane %v585_v7, 4  ;;  %v5486_v10 = vld [vmem:[%s7177_s3 + $0x4f8] sm:$0xff]  }
  0x92   : > { %4955 = vmatpush3.bf16.msra.mxu1 %v5461_v15  ;;  %v2843_v15 = vshrl.u32 %v6611_v27, 16 }
  0x93   : > { %2589 = vmatmul.mubr.bf16.gmra.mrb[44].mxu0 %v6471_v32  ;;  %4956 = vmatprep.subr.bf16.mxu1 %v5464_v46  ;;  %v6594_v21 = vsel %vm5813_vm5, %v586_v13, %v590_v5  ;;  %v2852_v46 = vshll.u32 %v6614_v23, 16 }
  0x94   : > { %4905 = vmatpush3.bf16.msra.mxu0 %v5465_v52  ;;  %2596 = vmatprep.mubr.bf16.mxu0 %v4302_v34  ;;  %v4307_v9 = vcombine.low %v6417_v30, %v6594_v21  ;;  %v2829_v52 = vshrl.u32 %v6605_v29, 16  ;;  %v2832_v34 = vshll.u32 %v6605_v29, 16 }
  0x95   : > { %4906 = vmatprep.subr.bf16.mxu0 %v5467_v35  ;;  %2654 = vmatmul.mubr.bf16.gmra.mrb[52].mxu1 %v4305_v14  ;;  %v2846_v35 = vshll.u32 %v6611_v27, 16  ;;  %v2854_v40 = vrot.slane %v2852_v46, 5  ;;  %v6703_v46 = vld [vmem:[%s6586_s30 + $0x2c] sm:$0x1] }
  0x96   : > { %4957 = vmatpush3.bf16.msra.mxu1 %v5466_v22  ;;  %2661 = vmatprep.mubr.bf16.mxu1 %v4310_v36  ;;  %v2831_v17 = vrot.slane %v2829_v52, 4  ;;  %v2845_v22 = vrot.slane %v2843_v15, 4 }
  0x97   : > { %4958 = vmatprep.subr.bf16.mxu1 %v5468_v58  ;;  %v2848_v36 = vrot.slane %v2846_v35, 5  ;;  %v5491_v58 = vld [vmem:[%s7177_s3 + $0x540] sm:$0xff]   ;;  %v6700_v35 = vld [vmem:[%s6586_s30 + $0x28] sm:$0xf] }
  0x98   : > { %4907 = vmatpush3.bf16.msra.mxu0 %v5469_v37  ;;  %v2834_v37 = vrot.slane %v2832_v34, 5  ;;  %v5501_v34 = vld [vmem:[%s7177_s3 + $0x558] sm:$0xff]  }
  0x99   : > { %4908 = vmatprep.subr.bf16.mxu0 %v5472_v39  ;;  %v5489_v39 = vld [vmem:[%s7177_s3 + $0x200] sm:$0xff]  }
  0x9a   : > { %4959 = vmatpush3.bf16.msra.mxu1 %v5470_v42  ;;  %v2835_v59 = vor.u32 %v2834_v37, %v2831_v17  ;;  %v5493_v42 = vld [vmem:[%s7177_s3 + $0x208] sm:$0xff]  }
  0x9b   : > { %2597 = vmatmul.mubr.bf16.gmra.mrb[48].mxu0 %v6519_v31  ;;  %4960 = vmatprep.subr.bf16.mxu1 %v5473_v26 }
  0x9c   : > { %4909 = vmatpush3.bf16.msra.mxu0 %v5474_v24  ;;  %2604 = vmatprep.mubr.bf16.mxu0 %v4303_v12  ;;  %v2849_v24 = vor.u32 %v2848_v36, %v2845_v22  ;;  %v6657_v12 = vld [vmem:[%s6586_s30 + $0x1c] sm:$0x1]  ;;  %v2899_v36 = vshrl.u32 %v6700_v35, 16 }
  0x9d   : > { %4910 = vmatprep.subr.bf16.mxu0 %v5476_v41  ;;  %2662 = vmatmul.mubr.bf16.gmra.mrb[56].mxu1 %v4306_v53  ;;  %v6651_v53 = vld [vmem:[%s6586_s30 + $0x14] sm:$0x1]  ;;  %v2880_v1 = vshll.u32 %v6657_v12, 16 }
  0x9e   : > { %4961 = vmatpush3.bf16.msra.mxu1 %v5475_v43  ;;  %2669 = vmatprep.mubr.bf16.mxu1 %v4311_v4  ;;  %v2850_v41 = vrot.slane %v2849_v24, 4  ;;  %v6642_v43 = vld [vmem:[%s6586_s30 + $0x10] sm:$0xf]  ;;  %v2866_v62 = vshll.u32 %v6651_v53, 16  ;;  %v2902_v24 = vshll.u32 %v6700_v35, 16 }
  0x9f   : > { %4962 = vmatprep.subr.bf16.mxu1 %v5477_v54  ;;  %v6654_v54 = vld [vmem:[%s6586_s30 + $0x18] sm:$0xf]  ;;  %v2857_v45 = vshrl.u32 %v6642_v43, 16  ;;  %v2860_v60 = vshll.u32 %v6642_v43, 16  ;;  %v2882_v13 = vrot.slane %v2880_v1, 5 }
  0xa0   : > { %4911 = vmatpush3.bf16.msra.mxu0 %v5478_v44  ;;  %v6646_v44 = vsel %vm5813_vm5, %v2850_v41, %v2854_v40  ;;  %v2871_v0 = vshrl.u32 %v6654_v54, 16  ;;  %v2874_v19 = vshll.u32 %v6654_v54, 16  ;;  %v2868_v5 = vrot.slane %v2866_v62, 5  ;;  %v5503_v40 = vld [vmem:[%s7177_s3 + $0x220] sm:$0xff]   ;;  %v6749_v1 = vld [vmem:[%s6142_s9 + $0x4c] sm:$0x1] }
  0xa1   : > { %4912 = vmatprep.subr.bf16.mxu0 %v5481_v6  ;;  %v5496_v6 = vld [vmem:[%s7177_s3 + $0x210] sm:$0xff]   ;;  %v2859_v4 = vrot.slane %v2857_v45, 4  ;;  %v2862_v7 = vrot.slane %v2860_v60, 5  ;;  %v2901_v41 = vrot.slane %v2899_v36, 4 }
  0xa2   : > { %4963 = vmatpush3.bf16.msra.mxu1 %v5479_v3  ;;  %v5495_v3 = vld [vmem:[%s7177_s3 + $0x508] sm:$0xff]  }
  0xa3   : > { %2605 = vmatmul.mubr.bf16.gmra.mrb[52].mxu0 %v6563_v63  ;;  %4964 = vmatprep.subr.bf16.mxu1 %v5482_v28  ;;  %v2876_v28 = vrot.slane %v2874_v19, 5  ;;  %v6746_v19 = vld [vmem:[%s6142_s9 + $0x48] sm:$0xf] }
  0xa4   : > { %4913 = vmatpush3.bf16.msra.mxu0 %v5483_v48  ;;  %2710 = vmatprep.mubr.bf16.mxu0 %v6289_v33  ;;  %v6608_v33 = vld [vmem:[%s6586_s30 + $0x4] sm:$0x1]  ;;  %v2873_v48 = vrot.slane %v2871_v0, 4 }
  0xa5   : > { %4914 = vmatprep.subr.bf16.mxu0 %v5485_v49  ;;  %2670 = vmatmul.mubr.bf16.gmra.mrb[60].mxu1 %v4307_v9  ;;  %v2838_v30 = vshll.u32 %v6608_v33, 16  ;;  %v5498_v49 = vld [vmem:[%s7177_s3 + $0x550] sm:$0xff]  }
  0xa6   : > { %4965 = vmatpush3.bf16.msra.mxu1 %v5484_v2  ;;  %v2863_v2 = vor.u32 %v2862_v7, %v2859_v4  ;;  %v5508_v4 = vld [vmem:[%s7177_s3 + $0x568] sm:$0xff]   ;;  %v599_v7 = vshrl.u32 %v6746_v19, 16 }
  0xa7   : > { %4966 = vmatprep.subr.bf16.mxu1 %v5486_v10  ;;  %v2840_v14 = vrot.slane %v2838_v30, 5  ;;  %v5499_v10 = vld [vmem:[%s7177_s3 + $0x510] sm:$0xff]   ;;  %v6690_v30 = vld [vmem:[%s6586_s30 + $0x20] sm:$0xf] }
  0xa8   : > { %4915 = vmatpush3.bf16.msra.mxu0 %v5487_v18  ;;  %v2877_v18 = vor.u32 %v2876_v28, %v2873_v48  ;;  %v2864_v9 = vrot.slane %v2863_v2, 4  ;;  %v2888_v17 = vshll.u32 %v6690_v30, 16  ;;  %v608_v48 = vshll.u32 %v6749_v1, 16  ;;  %v6761_v28 = vld [vmem:[%s6586_s30 + $0x30] sm:$0xf] }
  0xa9   : > { %5148 = vmatprep.subr.bf16.mxu0 %v5489_v39  ;;  %v6775_v2 = vld [vmem:[%s6586_s30 + $0x34] sm:$0x1]  ;;  %v2916_v36 = vshll.u32 %v6761_v28, 16 }
  0xaa   : > { %4967 = vmatpush3.bf16.msra.mxu1 %v5488_v8  ;;  %v2878_v52 = vrot.slane %v2877_v18, 4  ;;  %v6697_v15 = vsel %vm5813_vm5, %v2864_v9, %v2868_v5  ;;  %v2885_v8 = vshrl.u32 %v6690_v30, 16  ;;  %v602_v5 = vshll.u32 %v6746_v19, 16  ;;  %v6778_v18 = vld [vmem:[%s6586_s30 + $0x38] sm:$0xf] }
  0xab   : > { %2711 = vmatmul.mubr.bf16.vlgmr.msra.gmra.mrb[56].mxu0 %v6278_v25  ;;  %v2836_v25 = vrot.slane %v2835_v59, 4  ;;  %4992 = vmatprep.subr.bf16.mxu1 %v5491_v58  ;;  %v2890_v59 = vrot.slane %v2888_v17, 5  ;;  %v6781_v9 = vld [vmem:[%s6586_s30 + $0x3c] sm:$0x1]  ;;  %v5513_v17 = vld [vmem:[%s7177_s3 + $0x570] sm:$0xff]  }
  0xac   : > { %2718 = vmatprep.mubr.bf16.mxu0 %v6358_v16  ;;  %5149 = vmatpush3.bf16.msra.mxu0 %v5489_v39  ;;  %v5492_v16 = vld [vmem:[%s7177_s3 + $0x500] sm:$0xff]   ;;  %v6709_v37 = vsel %vm5813_vm5, %v2878_v52, %v2882_v13  ;;  %v2887_v58 = vrot.slane %v2885_v8, 4  ;;  %v601_v52 = vrot.slane %v599_v7, 4  ;;  %v610_v8 = vrot.slane %v608_v48, 5 }
  0xad   : > { %v2841_v26 = vsel %vm5813_vm5, %v2836_v25, %v2840_v14  ;;  %5150 = vmatprep.subr.bf16.mxu0 %v5493_v42  ;;  %v6713_v14 = vcombine.low %v6642_v43, %v6654_v54  ;;  %v6720_v39 = vcombine.low %v6697_v15, %v6709_v37  ;;  %v5502_v25 = vld [vmem:[%s7177_s3 + $0x518] sm:$0xff]  }
  0xae   : > { %v4510_v11 = vcombine.low %v2841_v26, %v6646_v44  ;;  %v2891_v26 = vor.u32 %v2890_v59, %v2887_v58  ;;  %v2922_v58 = vshll.u32 %v6775_v2, 16  ;;  %v2927_v59 = vshrl.u32 %v6778_v18, 16 }
  0xb0   : > { %5151 = vmatpush3.bf16.msra.mxu0 %v5493_v42  ;;  %3720 = vmatprep.mubr.bf16.mxu1 %v4510_v11  ;;  %v5507_v11 = vld [vmem:[%s7177_s3 + $0x228] sm:$0xff]   ;;  %v2892_v45 = vrot.slane %v2891_v26, 4  ;;  %v5514_v26 = vld [vmem:[%s7177_s3 + $0x530] sm:$0xff]  }
  0xb1   : > { %5152 = vmatprep.subr.bf16.mxu0 %v5496_v6  ;;  %3721 = vmatmul.mubr.bf16.vlgmr.msra.gmra.mrb[64].mxu1 %v4506_v47  ;;  %v5505_v47 = vld [vmem:[%s7177_s3 + $0x560] sm:$0xff]  }
  0xb2   : > { %4993 = vmatpush3.bf16.msra.mxu1 %v5492_v16  ;;  %3728 = vmatprep.mubr.bf16.mxu1 %v6720_v39  ;;  %v2904_v16 = vrot.slane %v2902_v24, 5 }
  0xb3   : > { %2719 = vmatmul.mubr.bf16.gmra.mrb[60].mxu0 %v6347_v20  ;;  %v5500_v20 = vld [vmem:[%s7177_s3 + $0x218] sm:$0xff]   ;;  %4994 = vmatprep.subr.bf16.mxu1 %v5494_v38 }
  0xb4   : > { %2726 = vmatprep.mubr.bf16.mxu0 %v6429_v61  ;;  %5153 = vmatpush3.bf16.msra.mxu0 %v5496_v6  ;;  %v6693_v61 = vld [vmem:[%s6586_s30 + $0x24] sm:$0x1]  ;;  %v2905_v60 = vor.u32 %v2904_v16, %v2901_v41  ;;  %v2918_v41 = vrot.slane %v2916_v36, 5  ;;  %v4496_v36 = vrot.slane %v6605_v29, 9 }
  0xb5   : > { %5154 = vmatprep.subr.bf16.mxu0 %v5500_v20  ;;  %v2894_v22 = vshll.u32 %v6693_v61, 16  ;;  %v5506_v6 = vld [vmem:[%s7177_s3 + $0x520] sm:$0xff]  }
  0xb6   : > { %4995 = vmatpush3.bf16.msra.mxu1 %v5495_v3  ;;  %v2906_v0 = vrot.slane %v2905_v60, 4  ;;  %v5511_v3 = vld [vmem:[%s7177_s3 + $0x230] sm:$0xff]   ;;  %v5521_v29 = vld [vmem:[%s7177_s3 + $0x580] sm:$0xff]  }
  0xb7   : > { %4996 = vmatprep.subr.bf16.mxu1 %v5498_v49  ;;  %v2896_v42 = vrot.slane %v2894_v22, 5  ;;  %v6769_v49 = vcombine.low %v6690_v30, %v6700_v35  ;;  %v2913_v22 = vshrl.u32 %v6761_v28, 16 }
  0xb8   : > { %5155 = vmatpush3.bf16.msra.mxu0 %v5500_v20  ;;  %v5509_v20 = vld [vmem:[%s7177_s3 + $0x528] sm:$0xff]  }
  0xb9   : > { %3729 = vmatmul.mubr.bf16.gmra.mrb[68].mxu1 %v6713_v14  ;;  %5156 = vmatprep.subr.bf16.mxu0 %v5503_v40  ;;  %v6743_v38 = vsel %vm5813_vm5, %v2892_v45, %v2896_v42  ;;  %v2915_v42 = vrot.slane %v2913_v22, 4  ;;  %v5515_v45 = vld [vmem:[%s7177_s3 + $0x238] sm:$0xff]  }
  0xba   : > { %4997 = vmatpush3.bf16.msra.mxu1 %v5499_v10 }
  0xbb   : > { %2727 = vmatmul.mubr.bf16.gmra.mrb[64].mxu0 %v6421_v51  ;;  %v2908_v51 = vshll.u32 %v6703_v46, 16  ;;  %4998 = vmatprep.subr.bf16.mxu1 %v5501_v34  ;;  %v604_v34 = vrot.slane %v602_v5, 5  ;;  %v2919_v60 = vor.u32 %v2918_v41, %v2915_v42  ;;  %v5522_v41 = vld [vmem:[%s7177_s3 + $0x600] sm:$0xff]  }
  0xbc   : > { %5157 = vmatpush3.bf16.msra.mxu0 %v5503_v40  ;;  %v2930_v40 = vshll.u32 %v6778_v18, 16 }
  0xbd   : > { %v2910_v62 = vrot.slane %v2908_v51, 5  ;;  %5158 = vmatprep.subr.bf16.mxu0 %v5507_v11  ;;  %v605_v24 = vor.u32 %v604_v34, %v601_v52  ;;  %v2929_v51 = vrot.slane %v2927_v59, 4  ;;  %v2920_v5 = vrot.slane %v2919_v60, 4  ;;  %v5517_v34 = vld [vmem:[%s7177_s3 + $0x538] sm:$0xff]  }
  0xbe   : > { %4999 = vmatpush3.bf16.msra.mxu1 %v5502_v25  ;;  %v2936_v25 = vshll.u32 %v6781_v9, 16  ;;  %v2958_v52 = vrot.slane %v6608_v33, 5  ;;  %v6830_v33 = vcombine.low %v6761_v28, %v6778_v18  ;;  %v4287_v59 = vrot.slane %v6746_v19, 9 }
  0xbf   : > { %5000 = vmatprep.subr.bf16.mxu1 %v5505_v47  ;;  %v6765_v13 = vsel %vm5813_vm5, %v2906_v0, %v2910_v62  ;;  %v606_v16 = vrot.slane %v605_v24, 4  ;;  %v2924_v47 = vrot.slane %v2922_v58, 5  ;;  %v4497_v58 = vrot.slane %v6611_v27, 9 }
  0xc0   : > { %v6785_v10 = vcombine.low %v6743_v38, %v6765_v13  ;;  %5159 = vmatpush3.bf16.msra.mxu0 %v5507_v11  ;;  %v2932_v11 = vrot.slane %v2930_v40, 5  ;;  %v2938_v0 = vrot.slane %v2936_v25, 5  ;;  %v5523_v40 = vld [vmem:[%s7177_s3 + $0x5c8] sm:$0xff]   ;;  %v4498_v25 = vrot.slane %v6642_v43, 9 }
  0xc1   : > { %5160 = vmatprep.subr.bf16.mxu0 %v5511_v3  ;;  %v611_v62 = vsel %vm5813_vm5, %v606_v16, %v610_v8  ;;  %v5526_v16 = vld [vmem:[%s7177_s3 + $0x608] sm:$0xff]   ;;  %v4500_v60 = vrot.slane %v6690_v30, 9 }
  0xc2   : > { %5001 = vmatpush3.bf16.msra.mxu1 %v5506_v6  ;;  %3736 = vmatprep.mubr.bf16.mxu1 %v6785_v10  ;;  %v2933_v6 = vor.u32 %v2932_v11, %v2929_v51  ;;  %v4313_v7 = vcombine.low %v6594_v21, %v611_v62  ;;  %v2962_v21 = vrot.slane %v6614_v23, 5  ;;  %v4518_v23 = vcombine.low %v6611_v27, %v6642_v43 }
  0xc3   : > { %5002 = vmatprep.subr.bf16.mxu1 %v5508_v4  ;;  %3737 = vmatmul.mubr.bf16.gmra.mrb[72].mxu1 %v6769_v49  ;;  %v4312_v4 = vcombine.low %v6551_v57, %v6746_v19  ;;  %v6818_v57 = vsel %vm5813_vm5, %v2920_v5, %v2924_v47  ;;  %v616_v27 = vrot.slane %v6749_v1, 5  ;;  %v2966_v19 = vrot.slane %v6651_v53, 5  ;;  %v5525_v1 = vld [vmem:[%s7177_s3 + $0x588] sm:$0xff]  }
  0xc4   : > { %5161 = vmatpush3.bf16.msra.mxu0 %v5511_v3  ;;  %v5516_v3 = vld [vmem:[%s7177_s3 + $0x578] sm:$0xff]   ;;  %v2934_v48 = vrot.slane %v2933_v6, 4  ;;  %2734 = vmatprep.mubr.bf16.mxu0 %v4313_v7  ;;  %v2963_v24 = vsel %vm5807_vm4, %v4497_v58, %v2962_v21  ;;  %v4499_v51 = vrot.slane %v6654_v54, 9  ;;  %v2970_v53 = vrot.slane %v6657_v12, 5  ;;  %v5529_v12 = vld [vmem:[%s7177_s3 + $0x650] sm:$0xff]  }
  0xc5   : > { %5162 = vmatprep.subr.bf16.mxu0 %v5515_v45  ;;  %2735 = vmatmul.mubr.bf16.gmra.mrb[68].mxu0 %v4312_v4  ;;  %v617_v43 = vsel %vm5807_vm4, %v4287_v59, %v616_v27  ;;  %v2974_v62 = vrot.slane %v6693_v61, 5  ;;  %v5531_v4 = vld [vmem:[%s7177_s3 + $0x610] sm:$0xff]   ;;  %v5534_v7 = vld [vmem:[%s7177_s3 + $0x598] sm:$0xff]   ;;  %v4520_v5 = vcombine.low %v6700_v35, %v6761_v28  ;;  %v4502_v21 = vrot.slane %v6761_v28, 9  ;;  %v5540_v59 = vld [vmem:[%s7177_s3 + $0x620] sm:$0xff]  }
  0xc6   : > { %5003 = vmatpush3.bf16.msra.mxu1 %v5509_v20  ;;  %v5519_v20 = vld [vmem:[%s7177_s3 + $0x5c0] sm:$0xff]   ;;  %v6826_v8 = vsel %vm5813_vm5, %v2934_v48, %v2938_v0  ;;  %5164 = vmatprep.mubr.bf16.mxu0 %v6471_v32  ;;  %v2959_v32 = vsel %vm5807_vm4, %v4496_v36, %v2958_v52  ;;  %v4314_v47 = vcombine.low %v6570_v50, %v617_v43  ;;  %v5532_v50 = vld [vmem:[%s7177_s3 + $0x5d8] sm:$0xff]   ;;  %v4503_v28 = vrot.slane %v6778_v18, 9  ;;  %v5544_v27 = vld [vmem:[%s7177_s3 + $0x628] sm:$0xff]  }
  0xc7   : > { %5004 = vmatprep.subr.bf16.mxu1 %v5513_v17  ;;  %v5520_v17 = vld [vmem:[%s7177_s3 + $0x640] sm:$0xff]   ;;  %v6837_v22 = vcombine.low %v6818_v57, %v6826_v8  ;;  %v4514_v42 = vcombine.low %v2959_v32, %v2963_v24  ;;  %v6891_v11 = vsel %vm5807_vm4, %v4499_v51, %v2970_v53  ;;  %v5533_v61 = vld [vmem:[%s7177_s3 + $0x658] sm:$0xff]   ;;  %v5543_v32 = vld [vmem:[%s7177_s3 + $0x5a8] sm:$0xff]  }
  0xc8   : > { %5163 = vmatpush3.bf16.msra.mxu0 %v5515_v45  ;;  %v5530_v45 = vld [vmem:[%s7177_s3 + $0x590] sm:$0xff]   ;;  %v5537_v48 = vld [vmem:[%s7177_s3 + $0x5e0] sm:$0xff]   ;;  %v5551_v43 = vld [vmem:[%s7177_s3 + $0x678] sm:$0xff]  }
  0xc9   : > { %5032 = vmatprep.subr.bf16.mxu0 %v5519_v20  ;;  %3744 = vmatprep.mubr.bf16.mxu1 %v6837_v22  ;;  %v6926_v20 = vsel %vm5807_vm4, %v4500_v60, %v2974_v62  ;;  %v5538_v52 = vld [vmem:[%s7177_s3 + $0x660] sm:$0xff]   ;;  %v5549_v51 = vld [vmem:[%s7177_s3 + $0x630] sm:$0xff]  }
  0xca   : > { %5005 = vmatpush3.bf16.msra.mxu1 %v5514_v26  ;;  %v4519_v26 = vcombine.low %v6654_v54, %v6690_v30  ;;  %v2967_v54 = vsel %vm5807_vm4, %v4498_v25, %v2966_v19  ;;  %v2978_v30 = vrot.slane %v6703_v46, 5  ;;  %v5535_v46 = vld [vmem:[%s7177_s3 + $0x618] sm:$0xff]   ;;  %v6944_v36 = vld [vmem:[%s6586_s30 + $0x40] sm:$0xf]  ;;  %v5548_v19 = vld [vmem:[%s7177_s3 + $0x5b0] sm:$0xff]   ;;  %v4527_v60 = vcombine.low %v6891_v11, %v6926_v20 }
  0xcb   : > { %5006 = vmatprep.subr.bf16.mxu1 %v5516_v3  ;;  %3745 = vmatmul.mubr.bf16.gmra.mrb[76].mxu1 %v6830_v33  ;;  %v4526_v6 = vcombine.low %v2963_v24, %v2967_v54  ;;  %v6902_v0 = vcombine.low %v2967_v54, %v6891_v11  ;;  %v4501_v3 = vrot.slane %v6700_v35, 9  ;;  %v5542_v24 = vld [vmem:[%s7177_s3 + $0x668] sm:$0xff]   ;;  %v5554_v53 = vld [vmem:[%s7177_s3 + $0x680] sm:$0xff]  }
  0xcc   : > { %3785 = vmatprep.mubr.bf16.mxu1 %v4518_v23  ;;  %v2982_v23 = vrot.slane %v6775_v2, 5  ;;  %v2986_v2 = vrot.slane %v6781_v9, 5  ;;  %v5547_v9 = vld [vmem:[%s7177_s3 + $0x670] sm:$0xff]  }
  0xcd   : > { %5165 = vmatmul.mubr.bf16.vlgmr.msra.gmra.mrb[32].mxu0 %v6519_v31  ;;  %v5524_v31 = vld [vmem:[%s7177_s3 + $0x648] sm:$0xff]   ;;  %v6930_v35 = vsel %vm5807_vm4, %v4501_v3, %v2978_v30 }
  0xce   : > { %5007 = vmatpush3.bf16.msra.mxu1 %v5517_v34  ;;  %5033 = vmatpush3.bf16.msra.mxu0 %v5521_v29  ;;  %v5539_v34 = vld [vmem:[%s7177_s3 + $0x5a0] sm:$0xff]   ;;  %v6948_v58 = vcombine.low %v6926_v20, %v6930_v35  ;;  %v4521_v29 = vcombine.low %v6778_v18, %v6944_v36  ;;  %v6975_v25 = vsel %vm5807_vm4, %v4502_v21, %v2982_v23  ;;  %v5556_v20 = vld [vmem:[%s7177_s3 + $0x690] sm:$0xff]  }
  0xcf   : > { %5072 = vmatprep.subr.bf16.mxu1 %v5520_v17  ;;  %5168 = vmatprep.mubr.bf16.mxu0 %v6563_v63  ;;  %v5528_v63 = vld [vmem:[%s7177_s3 + $0x5d0] sm:$0xff]   ;;  %v5541_v17 = vld [vmem:[%s7177_s3 + $0x5e8] sm:$0xff]   ;;  %v6979_v18 = vsel %vm5807_vm4, %v4503_v28, %v2986_v2  ;;  %v4523_v21 = vcombine.low %v6709_v37, %v6743_v38  ;;  %v2825_v23 = vld [vmem:[%s6586_s30 + $0x44] sm:$0x1]  ;;  %v4528_v37 = vcombine.low %v6930_v35, %v6975_v25 }
  0xd0   : > { %5034 = vmatprep.subr.bf16.mxu0 %v5523_v40  ;;  %v5546_v40 = vld [vmem:[%s7177_s3 + $0x5f0] sm:$0xff]   ;;  %v5557_v2 = vld [vmem:[%s7177_s3 + $0x698] sm:$0xff]   ;;  %v2998_v38 = vshll.u32 %v2825_v23, 16  ;;  %v5558_v35 = vld [vmem:[%s7177_s3 + $0x6a0] sm:$0xff]  }
  0xd2   : > { %5035 = vmatpush3.bf16.msra.mxu0 %v5525_v1  ;;  %v5552_v1 = vld [vmem:[%s7177_s3 + $0x5b8] sm:$0xff]  }
  0xd3   : > { %3786 = vmatmul.mubr.bf16.vlgmr.msra.gmra.mrb[80].mxu1 %v4514_v42  ;;  %5036 = vmatprep.subr.bf16.mxu0 %v5528_v63  ;;  %v5550_v42 = vld [vmem:[%s7177_s3 + $0x5f8] sm:$0xff]  }
  0xd4   : > { %5073 = vmatpush3.bf16.msra.mxu1 %v5522_v41  ;;  %3793 = vmatprep.mubr.bf16.mxu1 %v4519_v26  ;;  %v6989_v41 = vcombine.low %v6975_v25, %v6979_v18  ;;  %v5553_v63 = vld [vmem:[%s7177_s3 + $0x638] sm:$0xff]   ;;  %v3000_v25 = vrot.slane %v2998_v38, 5 }
  0xd5   : > { %5074 = vmatprep.subr.bf16.mxu1 %v5524_v31  ;;  %5169 = vmatmul.mubr.bf16.gmra.mrb[36].mxu0 %v4314_v47  ;;  %v4522_v31 = vcombine.low %v6646_v44, %v6697_v15 }
  0xd6   : > { %5037 = vmatpush3.bf16.msra.mxu0 %v5530_v45  ;;  %3850 = vmatprep.mubr.bf16.mxu0 %v4526_v6  ;;  %v2989_v45 = vshrl.u32 %v6944_v36, 16 }
  0xd7   : > { %5038 = vmatprep.subr.bf16.mxu0 %v5532_v50  ;;  %v2992_v50 = vshll.u32 %v6944_v36, 16 }
  0xd8   : > { %5075 = vmatpush3.bf16.msra.mxu1 %v5526_v16  ;;  %v7007_v16 = vld [vmem:[%s6586_s30 + $0x48] sm:$0xf] }
  0xd9   : > { %5076 = vmatprep.subr.bf16.mxu1 %v5529_v12  ;;  %v5555_v12 = vld [vmem:[%s7177_s3 + $0x688] sm:$0xff]  }
  0xda   : > { %5039 = vmatpush3.bf16.msra.mxu0 %v5534_v7 }
  0xdb   : > { %3794 = vmatmul.mubr.bf16.gmra.mrb[84].mxu1 %v6902_v0  ;;  %5040 = vmatprep.subr.bf16.mxu0 %v5537_v48  ;;  %v2991_v48 = vrot.slane %v2989_v45, 4 }
  0xdc   : > { %5077 = vmatpush3.bf16.msra.mxu1 %v5531_v4  ;;  %3801 = vmatprep.mubr.bf16.mxu1 %v4520_v5  ;;  %v3009_v4 = vshrl.u32 %v7007_v16, 16 }
  0xdd   : > { %5078 = vmatprep.subr.bf16.mxu1 %v5533_v61 }
  0xde   : > { %5041 = vmatpush3.bf16.msra.mxu0 %v5539_v34 }
  0xdf   : > { %5042 = vmatprep.subr.bf16.mxu0 %v5541_v17 }
  0xe0   : > { %5079 = vmatpush3.bf16.msra.mxu1 %v5535_v46  ;;  %v2994_v46 = vrot.slane %v2992_v50, 5 }
  0xe1   : > { %5080 = vmatprep.subr.bf16.mxu1 %v5538_v52  ;;  %v3011_v52 = vrot.slane %v3009_v4, 4 }
  0xe2   : > { %5043 = vmatpush3.bf16.msra.mxu0 %v5543_v32 }
  0xe3   : > { %3802 = vmatmul.mubr.bf16.gmra.mrb[88].mxu1 %v6948_v58  ;;  %5044 = vmatprep.subr.bf16.mxu0 %v5546_v40 }
  0xe4   : > { %5081 = vmatpush3.bf16.msra.mxu1 %v5540_v59  ;;  %3809 = vmatprep.mubr.bf16.mxu1 %v4521_v29  ;;  %v7034_v59 = vld [vmem:[%s6586_s30 + $0x4c] sm:$0x1]  ;;  %s4276_s30 = sshll.u32 %s7197_s22, 3 }
  0xe5   : > { %5082 = vmatprep.subr.bf16.mxu1 %v5542_v24  ;;  %v3018_v40 = vshll.u32 %v7034_v59, 16  ;;  %s388_s19 = sadd.s32 %s4276_s30, %s7203_s21 }
  0xe6   : > { %5045 = vmatpush3.bf16.msra.mxu0 %v5548_v19  ;;  %v4504_v19 = vrot.slane %v6944_v36, 9  ;;  %s4277_s20 = sshll.u32 %s388_s19, 1 }
  0xe7   : > { %5046 = vmatprep.subr.bf16.mxu0 %v5550_v42  ;;  %s390_s10 = scalar_lea.vmem %s7180_s6, %s4277_s20 }
  0xe8   : > { %5083 = vmatpush3.bf16.msra.mxu1 %v5544_v27 }
  0xe9   : > { %5084 = vmatprep.subr.bf16.mxu1 %v5547_v9 }
  0xea   : > { %5047 = vmatpush3.bf16.msra.mxu0 %v5552_v1 }
  0xeb   : > { %3810 = vmatmul.mubr.bf16.gmra.mrb[92].mxu1 %v6989_v41  ;;  %5172 = vmatprep.subr.bf16.mxu0 %v5554_v53 }
  0xec   : > { %5085 = vmatpush3.bf16.msra.mxu1 %v5549_v51  ;;  %3915 = vmatprep.mubr.bf16.mxu1 %v6720_v39  ;;  %v3012_v39 = vshll.u32 %v7007_v16, 16 }
  0xed   : > { %5086 = vmatprep.subr.bf16.mxu1 %v5551_v43  ;;  %3851 = vmatmul.mubr.bf16.vlgmr.msra.gmra.mrb[72].mxu0 %v4522_v31  ;;  %v3020_v31 = vrot.slane %v3018_v40, 5 }
  0xee   : > { %5173 = vmatpush3.bf16.msra.mxu0 %v5554_v53  ;;  %3858 = vmatprep.mubr.bf16.mxu0 %v4527_v60  ;;  %v3014_v34 = vrot.slane %v3012_v39, 5 }
  0xef   : > { %5174 = vmatprep.subr.bf16.mxu0 %v5555_v12 }
  0xf0   : > { %5087 = vmatpush3.bf16.msra.mxu1 %v5553_v63  ;;  %v3015_v27 = vor.u32 %v3014_v34, %v3011_v52  ;;  %v3026_v34 = vrot.slane %v7034_v59, 5 }
  0xf1   : > { %5196 = vmatprep.subr.bf16.mxu1 %v5554_v53 }
  0xf2   : > { %5175 = vmatpush3.bf16.msra.mxu0 %v5555_v12 }
  0xf3   : > { %3916 = vmatmul.mubr.bf16.vlgmr.msra.gmra.mrb[96].mxu1 %v6713_v14  ;;  %v2995_v14 = vor.u32 %v2994_v46, %v2991_v48  ;;  %5176 = vmatprep.subr.bf16.mxu0 %v5556_v20  ;;  %v5562_v48 = vld [vmem:[%s7177_s3 + $0x6b8] sm:$0xff]  }
  0xf4   : > { %5204 = vmatpush3.bf16.msra.mxu1 %v5554_v53  ;;  %3923 = vmatprep.mubr.bf16.mxu1 %v6785_v10  ;;  %v3006_v10 = vrot.slane %v2825_v23, 5  ;;  %v3016_v53 = vrot.slane %v3015_v27, 4 }
  0xf5   : > { %5197 = vmatprep.subr.bf16.mxu1 %v5555_v12  ;;  %3859 = vmatmul.mubr.bf16.gmra.mrb[76].mxu0 %v4523_v21  ;;  %v2996_v1 = vrot.slane %v2995_v14, 4 }
  0xf6   : > { %5177 = vmatpush3.bf16.msra.mxu0 %v5556_v20  ;;  %3866 = vmatprep.mubr.bf16.mxu0 %v4528_v37  ;;  %v3021_v45 = vsel %vm5813_vm5, %v3016_v53, %v3020_v31 }
  0xf7   : > { %5178 = vmatprep.subr.bf16.mxu0 %v5557_v2 }
  0xf8   : > { %5205 = vmatpush3.bf16.msra.mxu1 %v5555_v12  ;;  %v7052_v12 = vsel %vm5807_vm4, %v4504_v19, %v3006_v10 }
  0xf9   : > { %5198 = vmatprep.subr.bf16.mxu1 %v5556_v20 }
  0xfa   : > { %5179 = vmatpush3.bf16.msra.mxu0 %v5557_v2 }
  0xfb   : > { %3924 = vmatmul.mubr.bf16.gmra.mrb[100].mxu1 %v6769_v49  ;;  %v5559_v49 = vld [vmem:[%s7177_s3 + $0x6a8] sm:$0xff]   ;;  %5180 = vmatprep.subr.bf16.mxu0 %v5558_v35 }
  0xfc   : > { %5206 = vmatpush3.bf16.msra.mxu1 %v5556_v20  ;;  %3931 = vmatprep.mubr.bf16.mxu1 %v6837_v22 }
  0xfd   : > { %5199 = vmatprep.subr.bf16.mxu1 %v5557_v2 }
  0xfe   : > { %v4624_v44 = vpop.f32.mrb[0].mxu0  ;;  %5181 = vmatpush3.bf16.msra.mxu0 %v5558_v35 }
  0xff   : > { %v4664_v26 = vpop.f32.mrb[0].mxu1  ;;  %v4625_v62 = vpop.f32.mrb[1].mxu0  ;;  %5182 = vmatprep.subr.bf16.mxu0 %v5559_v49 }
 0x100   : > { %v4665_v47 = vpop.f32.mrb[1].mxu1  ;;  %v4626_v3 = vadd.f32 %v4625_v62, %v4624_v44  ;;  %v4627_v7 = vpop.f32.mrb[2].mxu0  ;;  %5207 = vmatpush3.bf16.msra.mxu1 %v5557_v2 }
 0x101   : > { %v4666_v15 = vadd.f32 %v4665_v47, %v4664_v26  ;;  %v4667_v54 = vpop.f32.mrb[2].mxu1  ;;  %v4628_v61 = vpop.f32.mrb[3].mxu0  ;;  %v4524_v47 = vcombine.low %v6765_v13, %v6818_v57  ;;  %v4529_v13 = vcombine.low %v6979_v18, %v7052_v12  ;;  %v3001_v57 = vsel %vm5813_vm5, %v2996_v1, %v3000_v25  ;;  %5200 = vmatprep.subr.bf16.mxu1 %v5558_v35  ;;  %v5561_v18 = vld [vmem:[%s7177_s3 + $0x6b0] sm:$0xff]  }
 0x102   : > { %v4668_v6 = vpop.f32.mrb[3].mxu1  ;;  %v4629_v11 = vadd.f32 %v4628_v61, %v4627_v7  ;;  %v4531_v4 = vcombine.low %v3001_v57, %v3021_v45  ;;  %v4525_v7 = vcombine.low %v6826_v8, %v3001_v57  ;;  %5183 = vmatpush3.bf16.msra.mxu0 %v5559_v49  ;;  %v4530_v8 = vcombine.low %v6944_v36, %v7007_v16 }
 0x103   : > { %v4669_v30 = vadd.f32 %v4668_v6, %v4667_v54  ;;  %v7022_v5 = vadd.f32 %v4666_v15, %v4626_v3  ;;  %3867 = vmatmul.mubr.bf16.gmra.mrb[80].mxu0 %v4524_v47  ;;  %3932 = vmatmul.mubr.bf16.gmra.mrb[104].mxu1 %v6830_v33  ;;  %v4505_v33 = vrot.slane %v7007_v16, 9 }
 0x104   : > { %3874 = vmatprep.mubr.bf16.mxu0 %v4529_v13  ;;  %5208 = vmatpush3.bf16.msra.mxu1 %v5558_v35 }
 0x105   : > { %v7030_v17 = vadd.f32 %v4669_v30, %v4629_v11  ;;  %5201 = vmatprep.subr.bf16.mxu1 %v5559_v49  ;;  %3939 = vmatprep.mubr.bf16.mxu1 %v4531_v4  ;;  %v3027_v36 = vsel %vm5807_vm4, %v4505_v33, %v3026_v34 }
 0x106   : > { %v4630_v51 = vpop.f32.mrb[4].mxu0  ;;  %5184 = vmatprep.subr.bf16.mxu0 %v5561_v18 }
 0x107   : > { %v4670_v28 = vpop.f32.mrb[4].mxu1  ;;  %v4631_v43 = vpop.f32.mrb[5].mxu0  ;;  %5185 = vmatpush3.bf16.msra.mxu0 %v5561_v18 }
 0x108   : > { %v4671_v32 = vpop.f32.mrb[5].mxu1  ;;  %v4632_v26 = vadd.f32 %v4631_v43, %v4630_v51  ;;  %v4633_v63 = vpop.f32.mrb[6].mxu0  ;;  %5209 = vmatpush3.bf16.msra.mxu1 %v5559_v49  ;;  %5186 = vmatprep.subr.bf16.mxu0 %v5562_v48 }
 0x109   : > { %v4672_v24 = vadd.f32 %v4671_v32, %v4670_v28  ;;  %v4673_v29 = vpop.f32.mrb[6].mxu1  ;;  %v4634_v44 = vpop.f32.mrb[7].mxu0  ;;  %5202 = vmatprep.subr.bf16.mxu1 %v5561_v18 }
 0x10a   : > { %v4674_v9 = vpop.f32.mrb[7].mxu1  ;;  %v4635_v54 = vadd.f32 %v4634_v44, %v4633_v63 }
 0x10b   : > { %v4675_v42 = vadd.f32 %v4674_v9, %v4673_v29  ;;  %v7054_v15 = vadd.f32 %v4672_v24, %v4632_v26  ;;  %3875 = vmatmul.mubr.bf16.gmra.mrb[84].mxu0 %v4525_v7  ;;  %3940 = vmatmul.mubr.bf16.gmra.mrb[108].mxu1 %v4530_v8  ;;  %v4532_v29 = vcombine.low %v7052_v12, %v3027_v36 }
 0x10c   : > { %5188 = vmatprep.mubr.bf16.mxu0 %v6902_v0  ;;  %5210 = vmatpush3.bf16.msra.mxu1 %v5561_v18 }
 0x10d   : > { %v7066_v50 = vadd.f32 %v4675_v42, %v4635_v54  ;;  %5187 = vmatpush3.bf16.msra.mxu0 %v5562_v48  ;;  %5203 = vmatprep.subr.bf16.mxu1 %v5562_v48 }
 0x10e   : > { %v4636_v56 = vpop.f32.mrb[8].mxu0  ;;  %5192 = vmatprep.mubr.bf16.mxu1 %v6989_v41 }
 0x10f   : > { %v4676_v60 = vpop.f32.mrb[8].mxu1  ;;  %v4637_v30 = vpop.f32.mrb[9].mxu0 }
 0x110   : > { %v4677_v62 = vpop.f32.mrb[9].mxu1  ;;  %v4638_v61 = vadd.f32 %v4637_v30, %v4636_v56  ;;  %v4639_v11 = vpop.f32.mrb[10].mxu0  ;;  %5211 = vmatpush3.bf16.msra.mxu1 %v5562_v48 }
 0x111   : > { %v4678_v22 = vadd.f32 %v4677_v62, %v4676_v60  ;;  %v4679_v6 = vpop.f32.mrb[10].mxu1  ;;  %v4640_v46 = vpop.f32.mrb[11].mxu0 }
 0x112   : > { %v4680_v39 = vpop.f32.mrb[11].mxu1  ;;  %v4641_v52 = vadd.f32 %v4640_v46, %v4639_v11 }
 0x113   : > { %v4681_v3 = vadd.f32 %v4680_v39, %v4679_v6  ;;  %v7076_v20 = vadd.f32 %v4678_v22, %v4638_v61  ;;  %5189 = vmatmul.mubr.bf16.vlgmr.msra.gmra.mrb[32].mxu0 %v6948_v58  ;;  %5193 = vmatmul.mubr.bf16.vlgmr.msra.gmra.mrb[112].mxu1 %v4532_v29 }
 0x115   : > { %v7082_v21 = vadd.f32 %v4681_v3, %v4641_v52 }
 0x116   : > { %v4642_v59 = vpop.f32.mrb[12].mxu0 }
 0x117   : > { %v4682_v23 = vpop.f32.mrb[12].mxu1  ;;  %v4643_v24 = vpop.f32.mrb[13].mxu0 }
 0x118   : > { %v4683_v28 = vpop.f32.mrb[13].mxu1  ;;  %v4644_v0 = vadd.f32 %v4643_v24, %v4642_v59  ;;  %v4645_v37 = vpop.f32.mrb[14].mxu0 }
 0x119   : > { %v4684_v32 = vadd.f32 %v4683_v28, %v4682_v23  ;;  %v4685_v2 = vpop.f32.mrb[14].mxu1  ;;  %v4646_v38 = vpop.f32.mrb[15].mxu0 }
 0x11a   : > { %v4686_v16 = vpop.f32.mrb[15].mxu1  ;;  %v4647_v55 = vadd.f32 %v4646_v38, %v4645_v37 }
 0x11b   : > { %v4687_v14 = vadd.f32 %v4686_v16, %v4685_v2  ;;  %v7090_v27 = vadd.f32 %v4684_v32, %v4644_v0 }
 0x11d   : > { %v1853_v19 = vadd.f32 %v4687_v14, %v4647_v55 }
 0x11e   : > { %v4704_v51 = vpop.f32.mrb[16].mxu0 }
 0x11f   : > { %v4744_v40 = vpop.f32.mrb[16].mxu1  ;;  %v4705_v43 = vpop.f32.mrb[17].mxu0 }
 0x120   : > { %v4745_v9 = vpop.f32.mrb[17].mxu1  ;;  %v4706_v35 = vadd.f32 %v4705_v43, %v4704_v51  ;;  %v4707_v25 = vpop.f32.mrb[18].mxu0 }
 0x121   : > { %v4746_v10 = vadd.f32 %v4745_v9, %v4744_v40  ;;  %v4747_v41 = vpop.f32.mrb[18].mxu1  ;;  %v4708_v58 = vpop.f32.mrb[19].mxu0 }
 0x122   : > { %v4748_v42 = vpop.f32.mrb[19].mxu1  ;;  %v1891_v53 = vadd.f32 %v4706_v35, %v7022_v5  ;;  %v4709_v31 = vadd.f32 %v4708_v58, %v4707_v25 }
 0x123   : > { %v4749_v1 = vadd.f32 %v4748_v42, %v4747_v41 }
 0x124   : > { %v1894_v47 = vadd.f32 %v4709_v31, %v7030_v17  ;;  %v1956_v12 = vadd.f32 %v4746_v10, %v1891_v53 }
 0x126   : > { %v1959_v13 = vadd.f32 %v4749_v1, %v1894_v47  ;;  %v4710_v57 = vpop.f32.mrb[20].mxu0 }
 0x127   : > { %v4750_v26 = vpop.f32.mrb[20].mxu1  ;;  %v4711_v60 = vpop.f32.mrb[21].mxu0 }
 0x128   : > { %v4751_v63 = vpop.f32.mrb[21].mxu1  ;;  %v4712_v62 = vadd.f32 %v4711_v60, %v4710_v57  ;;  %v4713_v22 = vpop.f32.mrb[22].mxu0 }
 0x129   : > { %v4752_v44 = vadd.f32 %v4751_v63, %v4750_v26  ;;  %v4753_v54 = vpop.f32.mrb[22].mxu1  ;;  %v4714_v6 = vpop.f32.mrb[23].mxu0 }
 0x12a   : > { %v4754_v49 = vpop.f32.mrb[23].mxu1  ;;  %v1899_v4 = vadd.f32 %v4712_v62, %v7054_v15  ;;  %v4715_v39 = vadd.f32 %v4714_v6, %v4713_v22 }
 0x12b   : > { %v4755_v45 = vadd.f32 %v4754_v49, %v4753_v54 }
 0x12c   : > { %v1902_v56 = vadd.f32 %v4715_v39, %v7066_v50  ;;  %v1964_v3 = vadd.f32 %v4752_v44, %v1899_v4 }
 0x12e   : > { %v1967_v61 = vadd.f32 %v4755_v45, %v1902_v56  ;;  %v4716_v11 = vpop.f32.mrb[24].mxu0 }
 0x12f   : > { %v4756_v5 = vpop.f32.mrb[24].mxu1  ;;  %v4717_v46 = vpop.f32.mrb[25].mxu0 }
 0x130   : > { %v4757_v18 = vpop.f32.mrb[25].mxu1  ;;  %v4718_v52 = vadd.f32 %v4717_v46, %v4716_v11  ;;  %v4719_v8 = vpop.f32.mrb[26].mxu0 }
 0x131   : > { %v4758_v17 = vadd.f32 %v4757_v18, %v4756_v5  ;;  %v4759_v7 = vpop.f32.mrb[26].mxu1  ;;  %v4720_v33 = vpop.f32.mrb[27].mxu0 }
 0x132   : > { %v4760_v30 = vpop.f32.mrb[27].mxu1  ;;  %v1907_v34 = vadd.f32 %v4718_v52, %v7076_v20  ;;  %v4721_v23 = vadd.f32 %v4720_v33, %v4719_v8 }
 0x133   : > { %v4761_v48 = vadd.f32 %v4760_v30, %v4759_v7 }
 0x134   : > { %v1910_v28 = vadd.f32 %v4721_v23, %v7082_v21  ;;  %v1972_v32 = vadd.f32 %v4758_v17, %v1907_v34 }
 0x136   : > { %v1975_v16 = vadd.f32 %v4761_v48, %v1910_v28  ;;  %v4722_v59 = vpop.f32.mrb[28].mxu0 }
 0x137   : > { %v4762_v15 = vpop.f32.mrb[28].mxu1  ;;  %v4723_v24 = vpop.f32.mrb[29].mxu0 }
 0x138   : > { %v4763_v2 = vpop.f32.mrb[29].mxu1  ;;  %v4724_v0 = vadd.f32 %v4723_v24, %v4722_v59  ;;  %v4725_v37 = vpop.f32.mrb[30].mxu0 }
 0x139   : > { %v4764_v50 = vadd.f32 %v4763_v2, %v4762_v15  ;;  %v4765_v36 = vpop.f32.mrb[30].mxu1  ;;  %v4726_v38 = vpop.f32.mrb[31].mxu0 }
 0x13a   : > { %v4766_v14 = vpop.f32.mrb[31].mxu1  ;;  %v1915_v55 = vadd.f32 %v4724_v0, %v7090_v27  ;;  %v4727_v40 = vadd.f32 %v4726_v38, %v4725_v37 }
 0x13b   : > { %v4767_v29 = vadd.f32 %v4766_v14, %v4765_v36 }
 0x13c   : > { %v1918_v20 = vadd.f32 %v4727_v40, %v1853_v19  ;;  %v1980_v9 = vadd.f32 %v4764_v50, %v1915_v55 }
 0x13e   : > { %v1983_v21 = vadd.f32 %v4767_v29, %v1918_v20 }
 0x13f   : > { %v4796_v10 = vpop.f32.mrb[32].mxu1 }
 0x140   : > { %v4797_v41 = vpop.f32.mrb[33].mxu1 }
 0x141   : > { %v4798_v42 = vadd.f32 %v4797_v41, %v4796_v10  ;;  %v4799_v51 = vpop.f32.mrb[34].mxu1 }
 0x142   : > { %v4800_v1 = vpop.f32.mrb[35].mxu1 }
 0x143   : > { %v5218_v43 = vadd.f32 %v4798_v42, %v1956_v12  ;;  %v4801_v35 = vadd.f32 %v4800_v1, %v4799_v51 }
 0x145   : > { %v5230_v25 = vadd.f32 %v4801_v35, %v1959_v13 }
 0x147   : > { %v4802_v58 = vpop.f32.mrb[36].mxu1 }
 0x148   : > { %v4803_v53 = vpop.f32.mrb[37].mxu1 }
 0x149   : > { %v4804_v31 = vadd.f32 %v4803_v53, %v4802_v58  ;;  %v4805_v26 = vpop.f32.mrb[38].mxu1 }
 0x14a   : > { %v4806_v63 = vpop.f32.mrb[39].mxu1 }
 0x14b   : > { %v5212_v47 = vadd.f32 %v4804_v31, %v1964_v3  ;;  %v4807_v44 = vadd.f32 %v4806_v63, %v4805_v26 }
 0x14d   : > { %v5224_v27 = vadd.f32 %v4807_v44, %v1967_v61 }
 0x14f   : > { %v4808_v54 = vpop.f32.mrb[40].mxu1 }
 0x150   : > { %v4809_v19 = vpop.f32.mrb[41].mxu1 }
 0x151   : > { %v4810_v49 = vadd.f32 %v4809_v19, %v4808_v54  ;;  %v4811_v57 = vpop.f32.mrb[42].mxu1 }
 0x152   : > { %v4812_v45 = vpop.f32.mrb[43].mxu1 }
 0x153   : > { %v5243_v60 = vadd.f32 %v4810_v49, %v1972_v32  ;;  %v4813_v62 = vadd.f32 %v4812_v45, %v4811_v57 }
 0x155   : > { %v5257_v22 = vadd.f32 %v4813_v62, %v1975_v16 }
 0x157   : > { %v4814_v6 = vpop.f32.mrb[44].mxu1 }
 0x158   : > { %v4815_v12 = vpop.f32.mrb[45].mxu1 }
 0x159   : > { %v4816_v13 = vadd.f32 %v4815_v12, %v4814_v6  ;;  %v4817_v39 = vpop.f32.mrb[46].mxu1 }
 0x15a   : > { %v4818_v18 = vpop.f32.mrb[47].mxu1 }
 0x15b   : > { %v5236_v3 = vadd.f32 %v4816_v13, %v1980_v9  ;;  %v4819_v7 = vadd.f32 %v4818_v18, %v4817_v39 }
 0x15d   : > { %v5250_v48 = vadd.f32 %v4819_v7, %v1983_v21 }
 0x15e   : > { %v4836_v4 = vpop.f32.mrb[40].mxu0 }
 0x15f   : > { %v4837_v5 = vpop.f32.mrb[41].mxu0 }
 0x160   : > { %v4838_v56 = vadd.f32 %v4837_v5, %v4836_v4  ;;  %v4839_v17 = vpop.f32.mrb[42].mxu0  ;;  %v4876_v52 = vpop.f32.mrb[48].mxu1 }
 0x161   : > { %v4840_v30 = vpop.f32.mrb[43].mxu0  ;;  %v4877_v8 = vpop.f32.mrb[49].mxu1 }
 0x162   : > { %v5219_v61 = vadd.f32 %v5218_v43, %v4838_v56  ;;  %v4841_v11 = vadd.f32 %v4840_v30, %v4839_v17  ;;  %v4878_v33 = vadd.f32 %v4877_v8, %v4876_v52  ;;  %v4879_v34 = vpop.f32.mrb[50].mxu1 }
 0x163   : > { %v4880_v15 = vpop.f32.mrb[51].mxu1 }
 0x164   : > { %v5231_v46 = vadd.f32 %v5230_v25, %v4841_v11  ;;  %v5220_v32 = vadd.f32 %v5219_v61, %v4878_v33  ;;  %v4881_v2 = vadd.f32 %v4880_v15, %v4879_v34 }
 0x166   : > { %v4842_v23 = vpop.f32.mrb[44].mxu0  ;;  %v5232_v59 = vadd.f32 %v5231_v46, %v4881_v2 }
 0x167   : > { %v4843_v28 = vpop.f32.mrb[45].mxu0 }
 0x168   : > { %v4844_v50 = vadd.f32 %v4843_v28, %v4842_v23  ;;  %v4845_v36 = vpop.f32.mrb[46].mxu0  ;;  %v4882_v29 = vpop.f32.mrb[52].mxu1 }
 0x169   : > { %v4846_v16 = vpop.f32.mrb[47].mxu0  ;;  %v4883_v37 = vpop.f32.mrb[53].mxu1 }
 0x16a   : > { %v5213_v14 = vadd.f32 %v5212_v47, %v4844_v50  ;;  %v4847_v24 = vadd.f32 %v4846_v16, %v4845_v36  ;;  %v4884_v38 = vadd.f32 %v4883_v37, %v4882_v29  ;;  %v4885_v55 = vpop.f32.mrb[54].mxu1 }
 0x16b   : > { %v4886_v20 = vpop.f32.mrb[55].mxu1 }
 0x16c   : > { %v5225_v0 = vadd.f32 %v5224_v27, %v4847_v24  ;;  %v5214_v10 = vadd.f32 %v5213_v14, %v4884_v38  ;;  %v4887_v41 = vadd.f32 %v4886_v20, %v4885_v55 }
 0x16e   : > { %v4848_v40 = vpop.f32.mrb[48].mxu0  ;;  %v5226_v1 = vadd.f32 %v5225_v0, %v4887_v41 }
 0x16f   : > { %v4849_v9 = vpop.f32.mrb[49].mxu0 }
 0x170   : > { %v4850_v21 = vadd.f32 %v4849_v9, %v4848_v40  ;;  %v4851_v42 = vpop.f32.mrb[50].mxu0  ;;  %v4888_v25 = vpop.f32.mrb[56].mxu1 }
 0x171   : > { %v4852_v51 = vpop.f32.mrb[51].mxu0  ;;  %v4889_v53 = vpop.f32.mrb[57].mxu1 }
 0x172   : > { %v5244_v43 = vadd.f32 %v5243_v60, %v4850_v21  ;;  %v4853_v35 = vadd.f32 %v4852_v51, %v4851_v42  ;;  %v4890_v31 = vadd.f32 %v4889_v53, %v4888_v25  ;;  %v4891_v26 = vpop.f32.mrb[58].mxu1 }
 0x173   : > { %v4892_v47 = vpop.f32.mrb[59].mxu1 }
 0x174   : > { %v5258_v58 = vadd.f32 %v5257_v22, %v4853_v35  ;;  %v5245_v27 = vadd.f32 %v5244_v43, %v4890_v31  ;;  %v4893_v54 = vadd.f32 %v4892_v47, %v4891_v26 }
 0x176   : > { %v4854_v63 = vpop.f32.mrb[52].mxu0  ;;  %v5259_v45 = vadd.f32 %v5258_v58, %v4893_v54 }
 0x177   : > { %v4855_v44 = vpop.f32.mrb[53].mxu0 }
 0x178   : > { %v4856_v19 = vadd.f32 %v4855_v44, %v4854_v63  ;;  %v4857_v49 = vpop.f32.mrb[54].mxu0  ;;  %v4894_v12 = vpop.f32.mrb[60].mxu1 }
 0x179   : > { %v4858_v57 = vpop.f32.mrb[55].mxu0  ;;  %v4895_v60 = vpop.f32.mrb[61].mxu1 }
 0x17a   : > { %v5237_v62 = vadd.f32 %v5236_v3, %v4856_v19  ;;  %v4859_v6 = vadd.f32 %v4858_v57, %v4857_v49  ;;  %v4896_v13 = vadd.f32 %v4895_v60, %v4894_v12  ;;  %v4897_v39 = vpop.f32.mrb[62].mxu1 }
 0x17b   : > { %v4898_v5 = vpop.f32.mrb[63].mxu1 }
 0x17c   : > { %v5251_v4 = vadd.f32 %v5250_v48, %v4859_v6  ;;  %v5238_v56 = vadd.f32 %v5237_v62, %v4896_v13  ;;  %v4899_v17 = vadd.f32 %v4898_v5, %v4897_v39 }
 0x17e   : > { %v4916_v22 = vpop.f32.mrb[56].mxu0  ;;  %v5252_v11 = vadd.f32 %v5251_v4, %v4899_v17 }
 0x17f   : > { %v4917_v18 = vpop.f32.mrb[57].mxu0 }
 0x180   : > { %v4918_v7 = vadd.f32 %v4917_v18, %v4916_v22  ;;  %v4919_v30 = vpop.f32.mrb[58].mxu0 }
 0x181   : > { %v4920_v61 = vpop.f32.mrb[59].mxu0 }
 0x182   : > { %v7099_v46 = vadd.f32 %v5220_v32, %v4918_v7  ;;  %v4921_v52 = vadd.f32 %v4920_v61, %v4919_v30 }
 0x184   : > { %v7101_v8 = vadd.f32 %v5232_v59, %v4921_v52  ;;  %v4968_v48 = vpop.f32.mrb[64].mxu1 }
 0x185   : > { %v4969_v15 = vpop.f32.mrb[65].mxu1 }
 0x186   : > { %v4922_v3 = vpop.f32.mrb[60].mxu0  ;;  %v4970_v2 = vadd.f32 %v4969_v15, %v4968_v48  ;;  %v4971_v50 = vpop.f32.mrb[66].mxu1 }
 0x187   : > { %v4923_v33 = vpop.f32.mrb[61].mxu0  ;;  %v4972_v14 = vpop.f32.mrb[67].mxu1 }
 0x188   : > { %v4924_v34 = vadd.f32 %v4923_v33, %v4922_v3  ;;  %v4925_v23 = vpop.f32.mrb[62].mxu0  ;;  %v4973_v24 = vadd.f32 %v4972_v14, %v4971_v50 }
 0x189   : > { %v4926_v28 = vpop.f32.mrb[63].mxu0 }
 0x18a   : > { %v7103_v36 = vadd.f32 %v5214_v10, %v4924_v34  ;;  %v4927_v16 = vadd.f32 %v4926_v28, %v4925_v23 }
 0x18c   : > { %v7105_v29 = vadd.f32 %v5226_v1, %v4927_v16  ;;  %v4974_v55 = vpop.f32.mrb[68].mxu1 }
 0x18d   : > { %v4975_v9 = vpop.f32.mrb[69].mxu1 }
 0x18e   : > { %v4928_v32 = vpop.f32.mrb[64].mxu0  ;;  %v4976_v41 = vadd.f32 %v4975_v9, %v4974_v55  ;;  %v4977_v21 = vpop.f32.mrb[70].mxu1 }
 0x18f   : > { %v4929_v0 = vpop.f32.mrb[65].mxu0  ;;  %v4978_v51 = vpop.f32.mrb[71].mxu1 }
 0x190   : > { %v4930_v59 = vadd.f32 %v4929_v0, %v4928_v32  ;;  %v4931_v37 = vpop.f32.mrb[66].mxu0  ;;  %v4979_v10 = vadd.f32 %v4978_v51, %v4977_v21 }
 0x191   : > { %v4932_v38 = vpop.f32.mrb[67].mxu0 }
 0x192   : > { %v4933_v40 = vadd.f32 %v4932_v38, %v4931_v37  ;;  %v5246_v20 = vadd.f32 %v5245_v27, %v4930_v59 }
 0x194   : > { %v5260_v42 = vadd.f32 %v5259_v45, %v4933_v40 }
 0x196   : > { %v4980_v43 = vpop.f32.mrb[72].mxu1 }
 0x197   : > { %v4981_v35 = vpop.f32.mrb[73].mxu1 }
 0x198   : > { %v4982_v25 = vadd.f32 %v4981_v35, %v4980_v43  ;;  %v4983_v58 = vpop.f32.mrb[74].mxu1  ;;  %v4934_v31 = vpop.f32.mrb[68].mxu0 }
 0x199   : > { %v4984_v1 = vpop.f32.mrb[75].mxu1  ;;  %v4935_v26 = vpop.f32.mrb[69].mxu0 }
 0x19a   : > { %v4985_v53 = vadd.f32 %v4984_v1, %v4983_v58  ;;  %v4936_v63 = vadd.f32 %v4935_v26, %v4934_v31  ;;  %v4937_v47 = vpop.f32.mrb[70].mxu0 }
 0x19b   : > { %v4938_v44 = vpop.f32.mrb[71].mxu0 }
 0x19c   : > { %v4939_v54 = vadd.f32 %v4938_v44, %v4937_v47  ;;  %v5239_v27 = vadd.f32 %v5238_v56, %v4936_v63 }
 0x19e   : > { %v4986_v19 = vpop.f32.mrb[76].mxu1  ;;  %v5253_v45 = vadd.f32 %v5252_v11, %v4939_v54 }
 0x19f   : > { %v4987_v49 = vpop.f32.mrb[77].mxu1 }
 0x1a0   : > { %v4988_v57 = vadd.f32 %v4987_v49, %v4986_v19  ;;  %v4989_v62 = vpop.f32.mrb[78].mxu1 }
 0x1a1   : > { %v4990_v6 = vpop.f32.mrb[79].mxu1 }
 0x1a2   : > { %v4991_v12 = vadd.f32 %v4990_v6, %v4989_v62 }
 0x1a6   : > { %v5008_v4 = vpop.f32.mrb[80].mxu1 }
 0x1a7   : > { %v5009_v60 = vpop.f32.mrb[81].mxu1 }
 0x1a8   : > { %v5010_v13 = vadd.f32 %v5009_v60, %v5008_v4  ;;  %v5011_v39 = vpop.f32.mrb[82].mxu1  ;;  %v5170_v17 = vpop.f32.mrb[36].mxu0 }
 0x1a9   : > { %v5012_v22 = vpop.f32.mrb[83].mxu1  ;;  %v7107_v7 = vadd.f32 %v5239_v27, %v5170_v17  ;;  %v2793_v30 = vpop.f32.mrb[37].mxu0 }
 0x1aa   : > { %v3788_v5 = vadd.f32 %v5010_v13, %v4970_v2  ;;  %v5013_v18 = vadd.f32 %v5012_v22, %v5011_v39  ;;  %v7109_v52 = vadd.f32 %v5246_v20, %v2793_v30  ;;  %v5171_v56 = vpop.f32.mrb[38].mxu0 }
 0x1ab   : > { %v7111_v3 = vadd.f32 %v5253_v45, %v5171_v56  ;;  %v2796_v11 = vpop.f32.mrb[39].mxu0 }
 0x1ac   : > { %v3791_v61 = vadd.f32 %v5013_v18, %v4973_v24  ;;  %v7113_v48 = vadd.f32 %v5260_v42, %v2796_v11 }
 0x1ae   : > { %v5014_v33 = vpop.f32.mrb[84].mxu1 }
 0x1af   : > { %v5015_v34 = vpop.f32.mrb[85].mxu1 }
 0x1b0   : > { %v5016_v23 = vadd.f32 %v5015_v34, %v5014_v33  ;;  %v5017_v15 = vpop.f32.mrb[86].mxu1 }
 0x1b1   : > { %v5018_v28 = vpop.f32.mrb[87].mxu1 }
 0x1b2   : > { %v3796_v2 = vadd.f32 %v5016_v23, %v4976_v41  ;;  %v5019_v50 = vadd.f32 %v5018_v28, %v5017_v15 }
 0x1b4   : > { %v3799_v16 = vadd.f32 %v5019_v50, %v4979_v10 }
 0x1b6   : > { %v5020_v14 = vpop.f32.mrb[88].mxu1 }
 0x1b7   : > { %v5021_v32 = vpop.f32.mrb[89].mxu1 }
 0x1b8   : > { %v5022_v0 = vadd.f32 %v5021_v32, %v5020_v14  ;;  %v5023_v24 = vpop.f32.mrb[90].mxu1 }
 0x1b9   : > { %v5024_v59 = vpop.f32.mrb[91].mxu1 }
 0x1ba   : > { %v3804_v37 = vadd.f32 %v5022_v0, %v4982_v25  ;;  %v5025_v38 = vadd.f32 %v5024_v59, %v5023_v24 }
 0x1bc   : > { %v3807_v55 = vadd.f32 %v5025_v38, %v4985_v53 }
 0x1be   : > { %v5026_v40 = vpop.f32.mrb[92].mxu1 }
 0x1bf   : > { %v5027_v20 = vpop.f32.mrb[93].mxu1 }
 0x1c0   : > { %v5028_v9 = vadd.f32 %v5027_v20, %v5026_v40  ;;  %v5029_v21 = vpop.f32.mrb[94].mxu1  ;;  %v5048_v35 = vpop.f32.mrb[72].mxu0 }
 0x1c1   : > { %v5030_v42 = vpop.f32.mrb[95].mxu1  ;;  %v5049_v41 = vpop.f32.mrb[73].mxu0 }
 0x1c2   : > { %v7115_v51 = vadd.f32 %v5028_v9, %v4988_v57  ;;  %v5031_v43 = vadd.f32 %v5030_v42, %v5029_v21  ;;  %v5050_v10 = vadd.f32 %v5049_v41, %v5048_v35  ;;  %v5051_v1 = vpop.f32.mrb[74].mxu0 }
 0x1c3   : > { %v5052_v31 = vpop.f32.mrb[75].mxu0 }
 0x1c4   : > { %v7117_v58 = vadd.f32 %v5031_v43, %v4991_v12  ;;  %v3853_v26 = vadd.f32 %v5050_v10, %v3788_v5  ;;  %v5053_v25 = vadd.f32 %v5052_v31, %v5051_v1 }
 0x1c6   : > { %v5088_v63 = vpop.f32.mrb[96].mxu1  ;;  %v3856_v53 = vadd.f32 %v5053_v25, %v3791_v61 }
 0x1c7   : > { %v5089_v47 = vpop.f32.mrb[97].mxu1 }
 0x1c8   : > { %v5090_v44 = vadd.f32 %v5089_v47, %v5088_v63  ;;  %v5091_v54 = vpop.f32.mrb[98].mxu1  ;;  %v5054_v57 = vpop.f32.mrb[76].mxu0 }
 0x1c9   : > { %v5092_v19 = vpop.f32.mrb[99].mxu1  ;;  %v5055_v62 = vpop.f32.mrb[77].mxu0 }
 0x1ca   : > { %v3918_v27 = vadd.f32 %v5090_v44, %v3853_v26  ;;  %v5093_v49 = vadd.f32 %v5092_v19, %v5091_v54  ;;  %v5056_v6 = vadd.f32 %v5055_v62, %v5054_v57  ;;  %v5057_v4 = vpop.f32.mrb[78].mxu0 }
 0x1cb   : > { %v5058_v60 = vpop.f32.mrb[79].mxu0 }
 0x1cc   : > { %v3921_v45 = vadd.f32 %v5093_v49, %v3856_v53  ;;  %v5222_v12 = vadd.f32 %v7099_v46, %v3918_v27  ;;  %v3861_v13 = vadd.f32 %v5056_v6, %v3796_v2  ;;  %v5059_v22 = vadd.f32 %v5058_v60, %v5057_v4 }
 0x1ce   : > { %v5094_v39 = vpop.f32.mrb[100].mxu1  ;;  %v7121_v5 = vadd.f32 %v7101_v8, %v3921_v45  ;;  %v3864_v17 = vadd.f32 %v5059_v22, %v3799_v16 }
 0x1cf   : > { %v5095_v18 = vpop.f32.mrb[101].mxu1 }
 0x1d0   : > { %v5096_v30 = vadd.f32 %v5095_v18, %v5094_v39  ;;  %v5097_v61 = vpop.f32.mrb[102].mxu1 }
 0x1d1   : > { %v5098_v56 = vpop.f32.mrb[103].mxu1 }
 0x1d2   : > { %v3926_v11 = vadd.f32 %v5096_v30, %v3861_v13  ;;  %v5099_v33 = vadd.f32 %v5098_v56, %v5097_v61 }
 0x1d4   : > { %v3929_v15 = vadd.f32 %v5099_v33, %v3864_v17  ;;  %v5216_v2 = vadd.f32 %v7103_v36, %v3926_v11 }
 0x1d6   : > { %v5060_v34 = vpop.f32.mrb[80].mxu0  ;;  %v5100_v14 = vpop.f32.mrb[104].mxu1  ;;  %v5228_v16 = vadd.f32 %v7105_v29, %v3929_v15 }
 0x1d7   : > { %v5061_v23 = vpop.f32.mrb[81].mxu0  ;;  %v5101_v0 = vpop.f32.mrb[105].mxu1 }
 0x1d8   : > { %v5062_v46 = vadd.f32 %v5061_v23, %v5060_v34  ;;  %v5063_v28 = vpop.f32.mrb[82].mxu0  ;;  %v5102_v59 = vadd.f32 %v5101_v0, %v5100_v14  ;;  %v5103_v38 = vpop.f32.mrb[106].mxu1 }
 0x1d9   : > { %v5064_v50 = vpop.f32.mrb[83].mxu0  ;;  %v5104_v40 = vpop.f32.mrb[107].mxu1 }
 0x1da   : > { %v3869_v8 = vadd.f32 %v5062_v46, %v3804_v37  ;;  %v5065_v32 = vadd.f32 %v5064_v50, %v5063_v28  ;;  %v5105_v9 = vadd.f32 %v5104_v40, %v5103_v38 }
 0x1dc   : > { %v3872_v24 = vadd.f32 %v5065_v32, %v3807_v55  ;;  %v3934_v20 = vadd.f32 %v5102_v59, %v3869_v8 }
 0x1de   : > { %v5066_v21 = vpop.f32.mrb[84].mxu0  ;;  %v3937_v36 = vadd.f32 %v5105_v9, %v3872_v24  ;;  %v5248_v35 = vadd.f32 %v7109_v52, %v3934_v20  ;;  %v5106_v10 = vpop.f32.mrb[108].mxu1  ;;  %v4605_v52 = vld [vmem:[%s7178_s4] ss:$0 sm:$0xff] }
 0x1df   : > { %v5067_v42 = vpop.f32.mrb[85].mxu0  ;;  %v5107_v31 = vpop.f32.mrb[109].mxu1 }
 0x1e0   : > { %v5068_v37 = vadd.f32 %v5067_v42, %v5066_v21  ;;  %v5069_v43 = vpop.f32.mrb[86].mxu0  ;;  %v5262_v55 = vadd.f32 %v7113_v48, %v3937_v36  ;;  %v5108_v63 = vadd.f32 %v5107_v31, %v5106_v10  ;;  %v5109_v25 = vpop.f32.mrb[110].mxu1 }
 0x1e1   : > { %v5070_v29 = vpop.f32.mrb[87].mxu0  ;;  %v5110_v47 = vpop.f32.mrb[111].mxu1 }
 0x1e2   : > { %v3877_v41 = vadd.f32 %v5068_v37, %v7115_v51  ;;  %v5071_v1 = vadd.f32 %v5070_v29, %v5069_v43  ;;  %v5111_v44 = vadd.f32 %v5110_v47, %v5109_v25 }
 0x1e4   : > { %v3880_v26 = vadd.f32 %v5071_v1, %v7117_v58  ;;  %v3942_v53 = vadd.f32 %v5108_v63, %v3877_v41 }
 0x1e6   : > { %v5190_v54 = vpop.f32.mrb[32].mxu0  ;;  %v3945_v27 = vadd.f32 %v5111_v44, %v3880_v26  ;;  %v5241_v48 = vadd.f32 %v7107_v7, %v3942_v53  ;;  %v5194_v6 = vpop.f32.mrb[112].mxu1 }
 0x1e7   : > { %v5217_v51 = vadd.f32 %v5216_v2, %v5190_v54  ;;  %v3982_v19 = vpop.f32.mrb[33].mxu0  ;;  %v3998_v22 = vpop.f32.mrb[113].mxu1 }
 0x1e8   : > { %v5223_v58 = vadd.f32 %v5222_v12, %v3982_v19  ;;  %v5191_v49 = vpop.f32.mrb[34].mxu0  ;;  %v5255_v60 = vadd.f32 %v7111_v3, %v3945_v27  ;;  %v5242_v39 = vadd.f32 %v5241_v48, %v5194_v6  ;;  %v5249_v7 = vadd.f32 %v5248_v35, %v3998_v22  ;;  %v5195_v12 = vpop.f32.mrb[114].mxu1 }
 0x1e9   : > { %v4030_v57 = vadd.f32 %v5217_v51, %v4605_v52  ;;  %v5229_v62 = vadd.f32 %v5228_v16, %v5191_v49  ;;  %v3985_v45 = vpop.f32.mrb[35].mxu0  ;;  %v4001_v11 = vpop.f32.mrb[115].mxu1 }
 0x1ea   : > { %v4028_v4 = vadd.f32 %v5223_v58, %v4605_v52  ;;  %v5235_v13 = vadd.f32 %v7121_v5, %v3985_v45  ;;  %v4034_v30 = vadd.f32 %v5242_v39, %v4605_v52  ;;  %v5256_v56 = vadd.f32 %v5255_v60, %v5195_v12 }
 0x1eb   : > { %4038 = vst [vmem:[%s7141_s18 + $0x10] sm:$0xff] %v4030_v57  ;;  %v4031_v18 = vadd.f32 %v5229_v62, %v4605_v52  ;;  %v4032_v3 = vadd.f32 %v5249_v7, %v4605_v52  ;;  %v5263_v34 = vadd.f32 %v5262_v55, %v4001_v11  ;;  %v4059_v15 = vmul.f32 %v4030_v57, %v4030_v57 }
 0x1ec   : > { %4036 = vst [vmem:[%s7141_s18] sm:$0xff] %v4028_v4  ;;  %v4029_v17 = vadd.f32 %v5235_v13, %v4605_v52  ;;  %v4057_v61 = vmul.f32 %v4028_v4, %v4028_v4  ;;  %4042 = vst [vmem:[%s7141_s18 + $0x30] sm:$0xff] %v4034_v30  ;;  %v4035_v23 = vadd.f32 %v5256_v56, %v4605_v52 }
 0x1ed   : > { %4039 = vst [vmem:[%s7141_s18 + $0x18] sm:$0xff] %v4031_v18  ;;  %4040 = vst [vmem:[%s7141_s18 + $0x20] sm:$0xff] %v4032_v3  ;;  %v4033_v2 = vadd.f32 %v5263_v34, %v4605_v52  ;;  %v4060_v50 = vmul.f32 %v4031_v18, %v4031_v18  ;;  %v4061_v32 = vmul.f32 %v4032_v3, %v4032_v3 }
 0x1ee   : > { %4037 = vst [vmem:[%s7141_s18 + $0x8] sm:$0xff] %v4029_v17  ;;  %v4044_v5 = vadd.f32 %v4029_v17, %v4028_v4  ;;  %v4058_v33 = vmul.f32 %v4029_v17, %v4029_v17  ;;  %4043 = vst [vmem:[%s7141_s18 + $0x38] sm:$0xff] %v4035_v23  ;;  %v4063_v40 = vmul.f32 %v4034_v30, %v4034_v30 }
 0x1ef   : > { %4041 = vst [vmem:[%s7141_s18 + $0x28] sm:$0xff] %v4033_v2  ;;  %v4062_v59 = vmul.f32 %v4033_v2, %v4033_v2  ;;  %v4064_v21 = vmul.f32 %v4035_v23, %v4035_v23 }
 0x1f0   : > { %v4045_v46 = vadd.f32 %v4044_v5, %v4030_v57  ;;  %v4065_v28 = vadd.f32 %v4058_v33, %v4057_v61 }
 0x1f2   : > { %v4066_v8 = vadd.f32 %v4065_v28, %v4059_v15  ;;  %v4046_v14 = vadd.f32 %v4045_v46, %v4031_v18 }
 0x1f4   : > { %v4047_v16 = vadd.f32 %v4046_v14, %v4032_v3  ;;  %v4067_v0 = vadd.f32 %v4066_v8, %v4060_v50 }
 0x1f6   : > { %v4048_v24 = vadd.f32 %v4047_v16, %v4033_v2  ;;  %v4068_v38 = vadd.f32 %v4067_v0, %v4061_v32 }
 0x1f8   : > { %v4049_v20 = vadd.f32 %v4048_v24, %v4034_v30  ;;  %v4069_v9 = vadd.f32 %v4068_v38, %v4062_v59 }
 0x1fa   : > { %v4050_v42 = vadd.f32 %v4049_v20, %v4035_v23  ;;  %v4070_v36 = vadd.f32 %v4069_v9, %v4063_v40 }
 0x1fc   : > { %v4051_v37 = vrot.slane %v4050_v42, 4  ;;  %v4071_v43 = vadd.f32 %v4070_v36, %v4064_v21 }
 0x1fe   : > { %v4052_v35 = vadd.f32 %v4051_v37, %v4050_v42  ;;  %v4072_v29 = vrot.slane %v4071_v43, 4 }
 0x200   : > { %v4053_v41 = vrot.slane %v4052_v35, 2  ;;  %v4073_v10 = vadd.f32 %v4072_v29, %v4071_v43 }
 0x202   : > { %v4054_v1 = vadd.f32 %v4053_v41, %v4052_v35  ;;  %v4074_v55 = vrot.slane %v4073_v10, 2 }
 0x204   : > { %v4055_v31 = vrot.slane %v4054_v1, 1  ;;  %v4075_v26 = vadd.f32 %v4074_v55, %v4073_v10 }
 0x206   : > { %v4076_v63 = vrot.slane %v4075_v26, 1  ;;  %v4056_v25 = vadd.f32 %v4055_v31, %v4054_v1 }
 0x208   : > { %v4077_v47 = vadd.f32 %v4076_v63, %v4075_v26 }
 0x20a   : > { %v4079_v53 = vsel %vm4078_vm6, %v4056_v25, %v4077_v47 }
 0x20b   : > { %4080 = vst [vmem:[%s390_s10] sm:$0x3] %v4079_v53 }
 0x20c PF: > { %s17_s25 = sadd.s32 1, %s5601_s25   ;;  %s7186_s21 = smov %s5593_s23 }
 0x20d   : > { %p14_p10 = scmp.ge.s32.totalorder %s17_s25, 18   ;;  %s7187_s22 = smov %s5597_s24 }
 0x20e   : > { %s7188_s23 = smov %s7191_s26  ;;  %s7189_s24 = smov %s7195_s27 }
 0x20f   :  { %16 = sbr.rel (!%p14_p10) target bundleno = 3 (0x3), region = 88 }

</bundles_post_ra>
